<compile_context>
chip_gen: v5e
topology: v5e:2x2
jax: 0.10.0
libtpu: 0.0.40
codegen_flags: <defaults>
</compile_context>

<pallas_src>
import jax
import jax.numpy as jnp
from jax.experimental import pallas as pl
from jax.experimental.pallas import tpu as pltpu


B, C, H, W = 2, 2048, 4, 4          # small feature map consistent with the module
HW = H * W
NUM_CLASSES = 196
NUM_DOMAINS = 7
FUSED_OUT = NUM_CLASSES + NUM_DOMAINS      # 203
FUSED_PAD = 256                            # pad N to a lane-dense multiple of 128
BN_EPS = 1e-5


def marketnet_head_kernel(feat_ref, gamma_ref, beta_ref, bf_ref,
                          wf_hbm_ref, xbn_ref, fused_ref, wf_vmem, dma_sem):
    # Kick off the dominant HBM->VMEM transfer (bf16 fused fc weight, ~1 MiB)
    # immediately so it overlaps with the pooling + BatchNorm math below.
    wf_copy = pltpu.make_async_copy(wf_hbm_ref, wf_vmem, dma_sem)
    wf_copy.start()

    # adaptive_avg_pool2d((1,1)) + flatten: per-sample mean over the HW rows of
    # the channels-last feature tile. Exact f32 sublane reductions (B static).
    inv_hw = 1.0 / HW
    pooled = [jnp.sum(feat_ref[i * HW:(i + 1) * HW, :], axis=0, keepdims=True) * inv_hw
              for i in range(B)]                                   # B x (1, C)

    # BatchNorm1d, training mode: batch statistics, biased variance.
    inv_b = 1.0 / B
    mean = pooled[0] * inv_b
    for i in range(1, B):
        mean = mean + pooled[i] * inv_b                            # (1, C)
    centered = [p - mean for p in pooled]                          # B x (1, C)
    var = centered[0] * centered[0] * inv_b
    for i in range(1, B):
        var = var + centered[i] * centered[i] * inv_b              # (1, C)
    scale = gamma_ref[...] * jax.lax.rsqrt(var + BN_EPS)           # (1, C)
    for i in range(B):
        xbn_ref[i:i + 1, :] = centered[i] * scale + beta_ref[...]  # (1, C) rows

    xbn = xbn_ref[...]                                             # (B, C) f32

    # fc_class + fc_domain fused into one lane-dense bf16 MXU matmul with f32
    # accumulation; single unmasked-lane (B, 256) store.
    wf_copy.wait()
    fused_ref[...] = (jnp.dot(xbn.astype(jnp.bfloat16), wf_vmem[...],
                              preferred_element_type=jnp.float32)
                      + bf_ref[...])                               # (B, 256)


@jax.jit
def marketnet_head(feat_nhwc, gamma, beta, w_fused_bf16, b_fused):
    """feat_nhwc: (B, H, W, C) float32 channels-last feature map."""
    b, h, w, c = feat_nhwc.shape
    hw = h * w
    feat2d = feat_nhwc.reshape(b * hw, c)       # pure reshape, lane dim = C

    vmem = pl.BlockSpec(memory_space=pltpu.MemorySpace.VMEM)
    hbm = pl.BlockSpec(memory_space=pl.ANY)     # weight stays in HBM; manual DMA

    out_shapes = (
        jax.ShapeDtypeStruct((b, c), jnp.float32),           # x (post pool_bn)
        jax.ShapeDtypeStruct((b, FUSED_PAD), jnp.float32),   # [class | domain | pad]
    )
    cost = pl.CostEstimate(
        flops=b * hw * c + 10 * b * c + 2 * b * c * FUSED_PAD,
        transcendentals=c,
        bytes_accessed=(4 * b * hw * c + 2 * c * FUSED_PAD + 4 * 2 * c
                        + 4 * FUSED_PAD + 4 * b * c + 4 * b * FUSED_PAD),
    )

    xbn, fused = pl.pallas_call(
        marketnet_head_kernel,
        out_shape=out_shapes,
        in_specs=[vmem, vmem, vmem, vmem, hbm],
        out_specs=(vmem, vmem),
        scratch_shapes=[
            pltpu.VMEM((c, FUSED_PAD), jnp.bfloat16),   # weight landing buffer
            pltpu.SemaphoreType.DMA,                    # its DMA semaphore
        ],
        cost_estimate=cost,
    )(feat2d, gamma, beta, b_fused, w_fused_bf16)

    cls_out = fused[:, :NUM_CLASSES]
    dom_out = fused[:, NUM_CLASSES:FUSED_OUT]
    return xbn, cls_out, dom_out


def init_params(key):
    k_wc, k_wd, k_bd = jax.random.split(key, 3)
    # pool_bn: weight=1, bias=0 (nn.init.constant_)
    gamma = jnp.ones((1, C), jnp.float32)
    beta = jnp.zeros((1, C), jnp.float32)
    # fc_class: weight ~ N(0, std=0.001), bias = 0 (stored transposed: (C, out))
    wc = (0.001 * jax.random.normal(k_wc, (C, NUM_CLASSES))).astype(jnp.float32)
    bc = jnp.zeros((1, NUM_CLASSES), jnp.float32)
    # fc_domain: PyTorch default Linear init, uniform(-1/sqrt(C), 1/sqrt(C))
    bound = 1.0 / jnp.sqrt(float(C))
    wd = jax.random.uniform(k_wd, (C, NUM_DOMAINS), jnp.float32, -bound, bound)
    bd = jax.random.uniform(k_bd, (1, NUM_DOMAINS), jnp.float32, -bound, bound)
    return gamma, beta, wc, bc, wd, bd


def fuse_fc(wc, bc, wd, bd):
    """Concatenate the two heads into one (C, 256) bf16 weight / (1, 256) f32 bias."""
    w_fused = jnp.zeros((C, FUSED_PAD), jnp.float32)
    w_fused = w_fused.at[:, :NUM_CLASSES].set(wc)
    w_fused = w_fused.at[:, NUM_CLASSES:FUSED_OUT].set(wd)
    b_fused = jnp.zeros((1, FUSED_PAD), jnp.float32)
    b_fused = b_fused.at[:, :NUM_CLASSES].set(bc)
    b_fused = b_fused.at[:, NUM_CLASSES:FUSED_OUT].set(bd)
    return w_fused.astype(jnp.bfloat16), b_fused


def reference(feat_nhwc, gamma, beta, wc, bc, wd, bd):
    """Pure-JAX reference with the same bf16 fc quantization as the kernel."""
    pooled = jnp.mean(feat_nhwc, axis=(1, 2))                    # (B, C)
    mean = jnp.mean(pooled, axis=0, keepdims=True)
    var = jnp.mean((pooled - mean) ** 2, axis=0, keepdims=True)
    xbn = (pooled - mean) * jax.lax.rsqrt(var + BN_EPS) * gamma + beta
    xbn_bf = xbn.astype(jnp.bfloat16)
    cls = jnp.dot(xbn_bf, wc.astype(jnp.bfloat16),
                  preferred_element_type=jnp.float32) + bc
    dom = jnp.dot(xbn_bf, wd.astype(jnp.bfloat16),
                  preferred_element_type=jnp.float32) + bd
    return xbn, cls, dom


if __name__ == "__main__":
    key = jax.random.PRNGKey(0)
    k_x, k_p = jax.random.split(key)
    # Feature map as produced by the ResNet50 feature extractor (channels-last).
    x = jax.random.normal(k_x, (B, H, W, C), jnp.float32)
    gamma, beta, wc, bc, wd, bd = init_params(k_p)
    w_fused_bf16, b_fused = fuse_fc(wc, bc, wd, bd)

    xbn, cls_out, dom_out = jax.block_until_ready(
        marketnet_head(x, gamma, beta, w_fused_bf16, b_fused))

    # Sanity check vs. a pure-JAX reference (same bf16 fc quantization).
    # Tolerance 1e-3: BatchNorm over a batch of 2 amplifies f32 rounding on
    # near-identical channels, and the fc heads use bf16 weights/activations.
    r_xbn, r_cls, r_dom = reference(x, gamma, beta, wc, bc, wd, bd)
    assert xbn.shape == (B, C)
    assert cls_out.shape == (B, NUM_CLASSES)
    assert dom_out.shape == (B, NUM_DOMAINS)
    assert jnp.allclose(xbn, r_xbn, atol=1e-3, rtol=1e-3)
    assert jnp.allclose(cls_out, r_cls, atol=1e-3, rtol=1e-3)
    assert jnp.allclose(dom_out, r_dom, atol=1e-3, rtol=1e-3)

    print("KERNEL_OK")
</pallas_src>

<mosaic_0001>
module attributes {stable_mosaic.version = 11 : i64} {
  func.func @marketnet_head_kernel(%arg0: memref<32x2048xf32, #tpu.memory_space<vmem>>, %arg1: memref<1x2048xf32, #tpu.memory_space<vmem>>, %arg2: memref<1x2048xf32, #tpu.memory_space<vmem>>, %arg3: memref<1x256xf32, #tpu.memory_space<vmem>>, %arg4: memref<2048x256xbf16, #tpu.memory_space<any>>, %arg5: memref<2x2048xf32, #tpu.memory_space<vmem>>, %arg6: memref<2x256xf32, #tpu.memory_space<vmem>>, %arg7: memref<2048x256xbf16, #tpu.memory_space<vmem>>, %arg8: memref<!tpu.dma_semaphore, #tpu.memory_space<semaphore_mem>>) attributes {dimension_semantics = [], scalar_prefetch = 0 : i64, scratch_operands = 2 : i64, tpu.core_type = #tpu.core_type<tc>} {
    tpu.enqueue_dma source(%arg4 : memref<2048x256xbf16, #tpu.memory_space<any>>) target(%arg7 : memref<2048x256xbf16, #tpu.memory_space<vmem>>) target_semaphore(%arg8 : memref<!tpu.dma_semaphore, #tpu.memory_space<semaphore_mem>>)
    %c0 = arith.constant 0 : index
    %c0_0 = arith.constant 0 : index
    %0 = vector.load %arg0[%c0, %c0_0] : memref<32x2048xf32, #tpu.memory_space<vmem>>, vector<16x2048xf32>
    %cst = arith.constant dense<0.000000e+00> : vector<2048xf32>
    %1 = vector.multi_reduction <add>, %0, %cst [0] : vector<16x2048xf32> to vector<2048xf32>
    %2 = vector.shape_cast %1 : vector<2048xf32> to vector<1x2048xf32>
    %cst_1 = arith.constant 6.250000e-02 : f32
    %3 = vector.broadcast %cst_1 : f32 to vector<1x2048xf32>
    %4 = arith.mulf %2, %3 : vector<1x2048xf32>
    %c16 = arith.constant 16 : index
    %c0_2 = arith.constant 0 : index
    %5 = vector.load %arg0[%c16, %c0_2] : memref<32x2048xf32, #tpu.memory_space<vmem>>, vector<16x2048xf32>
    %cst_3 = arith.constant dense<0.000000e+00> : vector<2048xf32>
    %6 = vector.multi_reduction <add>, %5, %cst_3 [0] : vector<16x2048xf32> to vector<2048xf32>
    %7 = vector.shape_cast %6 : vector<2048xf32> to vector<1x2048xf32>
    %cst_4 = arith.constant 6.250000e-02 : f32
    %8 = vector.broadcast %cst_4 : f32 to vector<1x2048xf32>
    %9 = arith.mulf %7, %8 : vector<1x2048xf32>
    %cst_5 = arith.constant 5.000000e-01 : f32
    %10 = vector.broadcast %cst_5 : f32 to vector<1x2048xf32>
    %11 = arith.mulf %4, %10 : vector<1x2048xf32>
    %cst_6 = arith.constant 5.000000e-01 : f32
    %12 = vector.broadcast %cst_6 : f32 to vector<1x2048xf32>
    %13 = arith.mulf %9, %12 : vector<1x2048xf32>
    %14 = arith.addf %11, %13 : vector<1x2048xf32>
    %15 = arith.subf %4, %14 : vector<1x2048xf32>
    %16 = arith.subf %9, %14 : vector<1x2048xf32>
    %17 = arith.mulf %15, %15 : vector<1x2048xf32>
    %cst_7 = arith.constant 5.000000e-01 : f32
    %18 = vector.broadcast %cst_7 : f32 to vector<1x2048xf32>
    %19 = arith.mulf %17, %18 : vector<1x2048xf32>
    %20 = arith.mulf %16, %16 : vector<1x2048xf32>
    %cst_8 = arith.constant 5.000000e-01 : f32
    %21 = vector.broadcast %cst_8 : f32 to vector<1x2048xf32>
    %22 = arith.mulf %20, %21 : vector<1x2048xf32>
    %23 = arith.addf %19, %22 : vector<1x2048xf32>
    %c0_9 = arith.constant 0 : index
    %c0_10 = arith.constant 0 : index
    %24 = vector.load %arg1[%c0_9, %c0_10] : memref<1x2048xf32, #tpu.memory_space<vmem>>, vector<1x2048xf32>
    %cst_11 = arith.constant 9.99999974E-6 : f32
    %25 = vector.broadcast %cst_11 : f32 to vector<1x2048xf32>
    %26 = arith.addf %23, %25 : vector<1x2048xf32>
    %27 = math.rsqrt %26 : vector<1x2048xf32>
    %28 = arith.mulf %24, %27 : vector<1x2048xf32>
    %29 = arith.mulf %15, %28 : vector<1x2048xf32>
    %c0_12 = arith.constant 0 : index
    %c0_13 = arith.constant 0 : index
    %30 = vector.load %arg2[%c0_12, %c0_13] : memref<1x2048xf32, #tpu.memory_space<vmem>>, vector<1x2048xf32>
    %31 = arith.addf %29, %30 : vector<1x2048xf32>
    %c0_14 = arith.constant 0 : index
    %c0_15 = arith.constant 0 : index
    %32 = vector.load %arg5[%c0_14, %c0_15] : memref<2x2048xf32, #tpu.memory_space<vmem>>, vector<1x2048xf32>
    tpu.vector_store %arg5[%c0_14, %c0_15], %31 {strides = array<i32>} : memref<2x2048xf32, #tpu.memory_space<vmem>>, vector<1x2048xf32>,
    %33 = arith.mulf %16, %28 : vector<1x2048xf32>
    %c0_16 = arith.constant 0 : index
    %c0_17 = arith.constant 0 : index
    %34 = vector.load %arg2[%c0_16, %c0_17] : memref<1x2048xf32, #tpu.memory_space<vmem>>, vector<1x2048xf32>
    %35 = arith.addf %33, %34 : vector<1x2048xf32>
    %c1 = arith.constant 1 : index
    %c0_18 = arith.constant 0 : index
    %36 = vector.load %arg5[%c1, %c0_18] : memref<2x2048xf32, #tpu.memory_space<vmem>>, vector<1x2048xf32>
    tpu.vector_store %arg5[%c1, %c0_18], %35 {strides = array<i32>} : memref<2x2048xf32, #tpu.memory_space<vmem>>, vector<1x2048xf32>,
    %c0_19 = arith.constant 0 : index
    %c0_20 = arith.constant 0 : index
    %37 = vector.load %arg5[%c0_19, %c0_20] : memref<2x2048xf32, #tpu.memory_space<vmem>>, vector<2x2048xf32>
    tpu.wait_dma2 semaphore(%arg8 : memref<!tpu.dma_semaphore, #tpu.memory_space<semaphore_mem>>) src(%arg4 : memref<2048x256xbf16, #tpu.memory_space<any>>) dst(%arg7 : memref<2048x256xbf16, #tpu.memory_space<vmem>>)
    %38 = arith.truncf %37 : vector<2x2048xf32> to vector<2x2048xbf16>
    %c0_21 = arith.constant 0 : index
    %c0_22 = arith.constant 0 : index
    %39 = vector.load %arg7[%c0_21, %c0_22] : memref<2048x256xbf16, #tpu.memory_space<vmem>>, vector<2048x256xbf16>
    %cst_23 = arith.constant dense<0.000000e+00> : vector<2x256xf32>
    %40 = tpu.matmul %38, %39, %cst_23 {dimension_numbers = #tpu.dot_dimension_numbers<[1], [0], [0], [1], [0, 0, 1, 1], [], []>} : vector<2x2048xbf16>, vector<2048x256xbf16>, vector<2x256xf32> -> vector<2x256xf32>
    %c0_24 = arith.constant 0 : index
    %c0_25 = arith.constant 0 : index
    %41 = vector.load %arg3[%c0_24, %c0_25] : memref<1x256xf32, #tpu.memory_space<vmem>>, vector<1x256xf32>
    %42 = vector.broadcast %41 : vector<1x256xf32> to vector<2x256xf32>
    %43 = arith.addf %40, %42 : vector<2x256xf32>
    %c0_26 = arith.constant 0 : index
    %c0_27 = arith.constant 0 : index
    %44 = vector.load %arg6[%c0_26, %c0_27] : memref<2x256xf32, #tpu.memory_space<vmem>>, vector<2x256xf32>
    tpu.vector_store %arg6[%c0_26, %c0_27], %43 {strides = array<i32>} : memref<2x256xf32, #tpu.memory_space<vmem>>, vector<2x256xf32>,
    return
  }
}

</mosaic_0001>

<bundles_post_ra>
// kernel: marketnet_head.1
= control target key start
LH: loop header
LB: loop body
LE: loop exit
PB: predicated region body
PF: predicated region fallthrough
CT: control target
= control target key end

     0   :  { %s5675_s0 = inlined_call_operand.vmem [shape: f32[32,2048], index: 0, kind: input, shape index: {}]   ;;  %s5676_s1 = inlined_call_operand.vmem [shape: f32[1,2048], index: 1, kind: input, shape index: {}]   ;;  %s5677_s2 = inlined_call_operand.vmem [shape: f32[1,2048], index: 2, kind: input, shape index: {}]   ;;  %s5678_s3 = inlined_call_operand.vmem [shape: f32[1,256], index: 3, kind: input, shape index: {}]   ;;  %s5679_s4 = inlined_call_operand.hbm [shape: bf16[2048,256], index: 4, kind: input, shape index: {}]   ;;  %s5680_s5 = inlined_call_operand.hbm [shape: f32[2,2048], index: 5, kind: output, shape index: {0}]   ;;  %s5681_s6 = inlined_call_operand.vmem [shape: f32[2,256], index: 6, kind: output, shape index: {1}]  }
   0x1   :  { %v34_v0 = vld [vmem:[%s5675_s0] sm:$0xff]  ;;  %v35_v1 = vld [vmem:[%s5675_s0 + $0x8] sm:$0xff]  ;;  %v36_v2 = vld [vmem:[%s5675_s0 + $0x10] sm:$0xff] }
   0x2   :  { %v37_v3 = vld [vmem:[%s5675_s0 + $0x18] sm:$0xff]  ;;  %v38_v4 = vld [vmem:[%s5675_s0 + $0x20] sm:$0xff]  ;;  %v39_v5 = vld [vmem:[%s5675_s0 + $0x28] sm:$0xff] }
   0x3   :  { %v40_v6 = vld [vmem:[%s5675_s0 + $0x30] sm:$0xff]  ;;  %v41_v7 = vld [vmem:[%s5675_s0 + $0x38] sm:$0xff]  ;;  %v50_v8 = vld [vmem:[%s5675_s0 + $0x80] sm:$0xff] }
   0x4   :  { %v51_v9 = vld [vmem:[%s5675_s0 + $0x88] sm:$0xff]  ;;  %v52_v10 = vld [vmem:[%s5675_s0 + $0x90] sm:$0xff]  ;;  %v53_v11 = vld [vmem:[%s5675_s0 + $0x98] sm:$0xff]  ;;  %v66_v13 = vadd.f32 %v50_v8, %v34_v0 }
   0x5   :  { %v54_v12 = vld [vmem:[%s5675_s0 + $0xa0] sm:$0xff]  ;;  %v73_v14 = vadd.f32 %v51_v9, %v35_v1  ;;  %v55_v15 = vld [vmem:[%s5675_s0 + $0xa8] sm:$0xff]  ;;  %v56_v16 = vld [vmem:[%s5675_s0 + $0xb0] sm:$0xff]  ;;  %v80_v18 = vadd.f32 %v52_v10, %v36_v2  ;;  %v87_v19 = vadd.f32 %v53_v11, %v37_v3 }
   0x6   :  { %v57_v17 = vld [vmem:[%s5675_s0 + $0xb8] sm:$0xff]  ;;  %v94_v20 = vadd.f32 %v54_v12, %v38_v4  ;;  %v67_v21 = vrot.slane %v66_v13, 4  ;;  %v101_v23 = vadd.f32 %v55_v15, %v39_v5  ;;  %v108_v24 = vadd.f32 %v56_v16, %v40_v6  ;;  %v42_v43 = vld [vmem:[%s5675_s0 + $0x40] sm:$0xff]  ;;  %v43_v44 = vld [vmem:[%s5675_s0 + $0x48] sm:$0xff] }
   0x7   :  { %v74_v22 = vrot.slane %v73_v14, 4  ;;  %v81_v25 = vrot.slane %v80_v18, 4  ;;  %v88_v26 = vrot.slane %v87_v19, 4  ;;  %v115_v28 = vadd.f32 %v57_v17, %v41_v7  ;;  %v44_v49 = vld [vmem:[%s5675_s0 + $0x50] sm:$0xff]  ;;  %v45_v50 = vld [vmem:[%s5675_s0 + $0x58] sm:$0xff]  ;;  %v46_v51 = vld [vmem:[%s5675_s0 + $0x60] sm:$0xff] }
   0x8   :  { %v95_v27 = vrot.slane %v94_v20, 4  ;;  %v68_v29 = vadd.f32 %v67_v21, %v66_v13  ;;  %v102_v31 = vrot.slane %v101_v23, 4  ;;  %v109_v32 = vrot.slane %v108_v24, 4  ;;  %v47_v54 = vld [vmem:[%s5675_s0 + $0x68] sm:$0xff]  ;;  %v58_v55 = vld [vmem:[%s5675_s0 + $0xc0] sm:$0xff]  ;;  %v60_v58 = vld [vmem:[%s5675_s0 + $0xd0] sm:$0xff] }
   0x9   :  { %v75_v30 = vadd.f32 %v74_v22, %v73_v14  ;;  %v82_v33 = vadd.f32 %v81_v25, %v80_v18  ;;  %v89_v34 = vadd.f32 %v88_v26, %v87_v19  ;;  %v116_v36 = vrot.slane %v115_v28, 4  ;;  %v59_v56 = vld [vmem:[%s5675_s0 + $0xc8] sm:$0xff]  ;;  %v61_v59 = vld [vmem:[%s5675_s0 + $0xd8] sm:$0xff]  ;;  %v62_v60 = vld [vmem:[%s5675_s0 + $0xe0] sm:$0xff] }
   0xa   :  { %v96_v35 = vadd.f32 %v95_v27, %v94_v20  ;;  %v69_v37 = vrot.slane %v68_v29, 2  ;;  %v103_v39 = vadd.f32 %v102_v31, %v101_v23  ;;  %v110_v40 = vadd.f32 %v109_v32, %v108_v24  ;;  %v48_v62 = vld [vmem:[%s5675_s0 + $0x70] sm:$0xff]  ;;  %v63_v63 = vld [vmem:[%s5675_s0 + $0xe8] sm:$0xff]  ;;  %v49_v5 = vld [vmem:[%s5675_s0 + $0x78] sm:$0xff] }
   0xb   :  { %v76_v38 = vrot.slane %v75_v30, 2  ;;  %v117_v41 = vadd.f32 %v116_v36, %v115_v28  ;;  %v83_v42 = vrot.slane %v82_v33, 2  ;;  %v90_v47 = vrot.slane %v89_v34, 2  ;;  %v64_v0 = vld [vmem:[%s5675_s0 + $0xf0] sm:$0xff]  ;;  %v65_v6 = vld [vmem:[%s5675_s0 + $0xf8] sm:$0xff] }
   0xc   :  { %v4529_v45 = vadd.f32 %v69_v37, %v68_v29  ;;  %v97_v48 = vrot.slane %v96_v35, 2  ;;  %v104_v52 = vrot.slane %v103_v39, 2  ;;  %v111_v53 = vrot.slane %v110_v40, 2 }
   0xd   :  { %v4531_v46 = vadd.f32 %v76_v38, %v75_v30  ;;  %v118_v57 = vrot.slane %v117_v41, 2  ;;  %v4560_v61 = vadd.f32 %v83_v42, %v82_v33  ;;  %v4573_v3 = vadd.f32 %v90_v47, %v89_v34 }
   0xe   :  { %v71_v1 = vrot.slane %v4529_v45, 1  ;;  %v4575_v4 = vadd.f32 %v97_v48, %v96_v35  ;;  %v4583_v7 = vadd.f32 %v104_v52, %v103_v39  ;;  %v4585_v8 = vadd.f32 %v111_v53, %v110_v40 }
   0xf   :  { %v78_v2 = vrot.slane %v4531_v46, 1  ;;  %v122_v9 = vadd.f32 %v58_v55, %v42_v43  ;;  %v129_v10 = vadd.f32 %v59_v56, %v43_v44  ;;  %v4587_v11 = vadd.f32 %v118_v57, %v117_v41 }
  0x10   :  { %v136_v12 = vadd.f32 %v60_v58, %v44_v49  ;;  %v143_v13 = vadd.f32 %v61_v59, %v45_v50  ;;  %v150_v14 = vadd.f32 %v62_v60, %v46_v51 }
  0x11   :  { %12 = vsyncpa [#allocation5], 0  ;;  %v123_v15 = vrot.slane %v122_v9, 4  ;;  %v130_v16 = vrot.slane %v129_v10, 4  ;;  %v157_v17 = vadd.f32 %v63_v63, %v47_v54  ;;  %v164_v18 = vadd.f32 %v64_v0, %v48_v62  ;;  %s28_s30 = sshll.u32 %s5679_s4, 4  ;;  %s4438_s7 = smov [#allocation2]   ;;  %s29_s30 = int_to_ptr.hbm [resolvable:$true] %s28_s30 }
  0x12   :  { %v137_v19 = vrot.slane %v136_v12, 4  ;;  %v144_v20 = vrot.slane %v143_v13, 4  ;;  %v151_v21 = vrot.slane %v150_v14, 4  ;;  %v171_v22 = vadd.f32 %v65_v6, %v49_v5  ;;  %v194_v6 = vld [vmem:[%s5675_s0 + $0x100] sm:$0xff]  ;;  %s30_s8 = sshll.u32 %s4438_s7, 4  ;;  %s31_s8 = int_to_ptr.vmem [resolvable:$true] %s30_s8 }
  0x13   :  { %v124_v23 = vadd.f32 %v123_v15, %v122_v9  ;;  %v131_v24 = vadd.f32 %v130_v16, %v129_v10  ;;  %v158_v25 = vrot.slane %v157_v17, 4  ;;  %v165_v26 = vrot.slane %v164_v18, 4  ;;  %v196_v15 = vld [vmem:[%s5675_s0 + $0x110] sm:$0xff]  ;;  %v197_v16 = vld [vmem:[%s5675_s0 + $0x118] sm:$0xff]  ;;  %33 = dma.hbm_to_vmem [thread:$0]  %s29_s30, 32768, %s31_s8, [#allocation3] }
  0x14   :  { %v138_v27 = vadd.f32 %v137_v19, %v136_v12  ;;  %v145_v28 = vadd.f32 %v144_v20, %v143_v13  ;;  %v152_v29 = vadd.f32 %v151_v21, %v150_v14  ;;  %v172_v30 = vrot.slane %v171_v22, 4  ;;  %v195_v14 = vld [vmem:[%s5675_s0 + $0x108] sm:$0xff]  ;;  %v201_v19 = vld [vmem:[%s5675_s0 + $0x138] sm:$0xff] }
  0x15   :  { %v125_v31 = vrot.slane %v124_v23, 2  ;;  %v132_v32 = vrot.slane %v131_v24, 2  ;;  %v159_v33 = vadd.f32 %v158_v25, %v157_v17  ;;  %v166_v34 = vadd.f32 %v165_v26, %v164_v18  ;;  %v199_v17 = vld [vmem:[%s5675_s0 + $0x128] sm:$0xff]  ;;  %v200_v18 = vld [vmem:[%s5675_s0 + $0x130] sm:$0xff] }
  0x16   :  { %v139_v35 = vrot.slane %v138_v27, 2  ;;  %v146_v36 = vrot.slane %v145_v28, 2  ;;  %v153_v37 = vrot.slane %v152_v29, 2  ;;  %v173_v38 = vadd.f32 %v172_v30, %v171_v22  ;;  %v212_v22 = vld [vmem:[%s5675_s0 + $0x190] sm:$0xff]  ;;  %v217_v30 = vld [vmem:[%s5675_s0 + $0x1b8] sm:$0xff] }
  0x17   :  { %v126_v39 = vadd.f32 %v125_v31, %v124_v23  ;;  %v133_v40 = vadd.f32 %v132_v32, %v131_v24  ;;  %v160_v41 = vrot.slane %v159_v33, 2  ;;  %v167_v42 = vrot.slane %v166_v34, 2  ;;  %v213_v23 = vld [vmem:[%s5675_s0 + $0x198] sm:$0xff]  ;;  %v214_v24 = vld [vmem:[%s5675_s0 + $0x1a0] sm:$0xff] }
  0x18   :  { %v140_v43 = vadd.f32 %v139_v35, %v138_v27  ;;  %v147_v44 = vadd.f32 %v146_v36, %v145_v28  ;;  %v154_v47 = vadd.f32 %v153_v37, %v152_v29  ;;  %v174_v48 = vrot.slane %v173_v38, 2  ;;  %v216_v29 = vld [vmem:[%s5675_s0 + $0x1b0] sm:$0xff] }
  0x19   :  { %v85_v49 = vrot.slane %v4560_v61, 1  ;;  %v92_v50 = vrot.slane %v4573_v3, 1  ;;  %v161_v51 = vadd.f32 %v160_v41, %v159_v33  ;;  %v168_v52 = vadd.f32 %v167_v42, %v166_v34 }
  0x1a   :  { %v99_v53 = vrot.slane %v4575_v4, 1  ;;  %v106_v54 = vrot.slane %v4583_v7, 1  ;;  %v113_v55 = vrot.slane %v4585_v8, 1  ;;  %v175_v56 = vadd.f32 %v174_v48, %v173_v38 }
  0x1b   :  { %v120_v57 = vrot.slane %v4587_v11, 1  ;;  %v127_v58 = vrot.slane %v126_v39, 1  ;;  %v134_v59 = vrot.slane %v133_v40, 1  ;;  %v141_v60 = vrot.slane %v140_v43, 1 }
  0x1c   :  { %v148_v62 = vrot.slane %v147_v44, 1  ;;  %v155_v63 = vrot.slane %v154_v47, 1  ;;  %v162_v0 = vrot.slane %v161_v51, 1  ;;  %v169_v5 = vrot.slane %v168_v52, 1 }
  0x1d   :  { %v72_v9 = vadd.f32 %v71_v1, %v4529_v45  ;;  %v79_v10 = vadd.f32 %v78_v2, %v4531_v46  ;;  %v86_v12 = vadd.f32 %v85_v49, %v4560_v61  ;;  %v176_v13 = vrot.slane %v175_v56, 1  ;;  %v198_v45 = vld [vmem:[%s5675_s0 + $0x120] sm:$0xff] }
  0x1e   :  { %v93_v46 = vadd.f32 %v92_v50, %v4573_v3  ;;  %v100_v61 = vadd.f32 %v99_v53, %v4575_v4  ;;  %v107_v1 = vadd.f32 %v106_v54, %v4583_v7  ;;  %v114_v2 = vadd.f32 %v113_v55, %v4585_v8  ;;  %v210_v3 = vld [vmem:[%s5675_s0 + $0x180] sm:$0xff]  ;;  %v211_v4 = vld [vmem:[%s5675_s0 + $0x188] sm:$0xff] }
  0x1f   :  { %v121_v7 = vadd.f32 %v120_v57, %v4587_v11  ;;  %v128_v8 = vadd.f32 %v127_v58, %v126_v39  ;;  %v135_v20 = vadd.f32 %v134_v59, %v133_v40  ;;  %v142_v21 = vadd.f32 %v141_v60, %v140_v43  ;;  %v215_v11 = vld [vmem:[%s5675_s0 + $0x1a8] sm:$0xff] }
  0x20   :  { %v149_v25 = vadd.f32 %v148_v62, %v147_v44  ;;  %v156_v26 = vadd.f32 %v155_v63, %v154_v47  ;;  %v163_v27 = vadd.f32 %v162_v0, %v161_v51  ;;  %v170_v28 = vadd.f32 %v169_v5, %v168_v52 }
  0x21   :  { %v177_v31 = vadd.f32 %v176_v13, %v175_v56  ;;  %v4655_v32 = vmul.f32 0.0625, %v72_v9  ;;  %v4657_v33 = vmul.f32 0.0625, %v79_v10  ;;  %v226_v34 = vadd.f32 %v210_v3, %v194_v6 }
  0x22   :  { %v233_v35 = vadd.f32 %v211_v4, %v195_v14  ;;  %v240_v36 = vadd.f32 %v212_v22, %v196_v15  ;;  %v247_v37 = vadd.f32 %v213_v23, %v197_v16  ;;  %v254_v38 = vadd.f32 %v214_v24, %v198_v45  ;;  %v202_v14 = vld [vmem:[%s5675_s0 + $0x140] sm:$0xff]  ;;  %v207_v23 = vld [vmem:[%s5675_s0 + $0x168] sm:$0xff]  ;;  %v208_v24 = vld [vmem:[%s5675_s0 + $0x170] sm:$0xff] }
  0x23   :  { %v227_v39 = vrot.slane %v226_v34, 4  ;;  %v261_v40 = vadd.f32 %v215_v11, %v199_v17  ;;  %v268_v41 = vadd.f32 %v216_v29, %v200_v18  ;;  %v275_v42 = vadd.f32 %v217_v30, %v201_v19  ;;  %v206_v17 = vld [vmem:[%s5675_s0 + $0x160] sm:$0xff]  ;;  %v209_v11 = vld [vmem:[%s5675_s0 + $0x178] sm:$0xff]  ;;  %v220_v30 = vld [vmem:[%s5675_s0 + $0x1d0] sm:$0xff] }
  0x24   :  { %v234_v43 = vrot.slane %v233_v35, 4  ;;  %v241_v44 = vrot.slane %v240_v36, 4  ;;  %v248_v47 = vrot.slane %v247_v37, 4  ;;  %v255_v48 = vrot.slane %v254_v38, 4 }
  0x25   :  { %v228_v49 = vadd.f32 %v227_v39, %v226_v34  ;;  %v262_v50 = vrot.slane %v261_v40, 4  ;;  %v269_v51 = vrot.slane %v268_v41, 4  ;;  %v276_v52 = vrot.slane %v275_v42, 4  ;;  %v221_v34 = vld [vmem:[%s5675_s0 + $0x1d8] sm:$0xff] }
  0x26   :  { %v235_v53 = vadd.f32 %v234_v43, %v233_v35  ;;  %v242_v54 = vadd.f32 %v241_v44, %v240_v36  ;;  %v249_v55 = vadd.f32 %v248_v47, %v247_v37  ;;  %v256_v56 = vadd.f32 %v255_v48, %v254_v38  ;;  %v222_v35 = vld [vmem:[%s5675_s0 + $0x1e0] sm:$0xff] }
  0x27   :  { %v229_v57 = vrot.slane %v228_v49, 2  ;;  %v263_v58 = vadd.f32 %v262_v50, %v261_v40  ;;  %v270_v59 = vadd.f32 %v269_v51, %v268_v41  ;;  %v277_v60 = vadd.f32 %v276_v52, %v275_v42 }
  0x28   :  { %v4659_v62 = vmul.f32 0.0625, %v86_v12  ;;  %v4661_v63 = vmul.f32 0.0625, %v93_v46  ;;  %v4663_v0 = vmul.f32 0.0625, %v100_v61  ;;  %v236_v5 = vrot.slane %v235_v53, 2  ;;  %v203_v61 = vld [vmem:[%s5675_s0 + $0x148] sm:$0xff] }
  0x29   :  { %v4665_v6 = vmul.f32 0.0625, %v107_v1  ;;  %v4667_v9 = vmul.f32 0.0625, %v114_v2  ;;  %v4669_v10 = vmul.f32 0.0625, %v121_v7  ;;  %v243_v13 = vrot.slane %v242_v54, 2  ;;  %v204_v1 = vld [vmem:[%s5675_s0 + $0x150] sm:$0xff]  ;;  %v205_v2 = vld [vmem:[%s5675_s0 + $0x158] sm:$0xff] }
  0x2a   :  { %v4674_v15 = vadd.f32 %v229_v57, %v228_v49  ;;  %v250_v12 = vrot.slane %v249_v55, 2  ;;  %v257_v16 = vrot.slane %v256_v56, 2  ;;  %v264_v45 = vrot.slane %v263_v58, 2 }
  0x2b   :  { %v4676_v46 = vmul.f32 0.0625, %v128_v8  ;;  %v4690_v18 = vadd.f32 %v236_v5, %v235_v53  ;;  %v271_v19 = vrot.slane %v270_v59, 2  ;;  %v278_v3 = vrot.slane %v277_v60, 2 }
  0x2c   :  { %v4692_v4 = vmul.f32 0.0625, %v135_v20  ;;  %v4694_v7 = vmul.f32 0.0625, %v142_v21  ;;  %v4696_v8 = vmul.f32 0.0625, %v149_v25  ;;  %v4698_v22 = vmul.f32 0.0625, %v156_v26  ;;  %v218_v20 = vld [vmem:[%s5675_s0 + $0x1c0] sm:$0xff]  ;;  %v219_v21 = vld [vmem:[%s5675_s0 + $0x1c8] sm:$0xff] }
  0x2d   :  { %v4715_v25 = vmul.f32 0.0625, %v163_v27  ;;  %v4717_v26 = vmul.f32 0.0625, %v170_v28  ;;  %v4719_v29 = vmul.f32 0.0625, %v177_v31  ;;  %v4730_v36 = vadd.f32 %v243_v13, %v242_v54  ;;  %v223_v27 = vld [vmem:[%s5675_s0 + $0x1e8] sm:$0xff]  ;;  %v224_v28 = vld [vmem:[%s5675_s0 + $0x1f0] sm:$0xff]  ;;  %v225_v31 = vld [vmem:[%s5675_s0 + $0x1f8] sm:$0xff] }
  0x2e   :  { %v231_v37 = vrot.slane %v4674_v15, 1  ;;  %v4742_v38 = vadd.f32 %v250_v12, %v249_v55  ;;  %v4744_v39 = vadd.f32 %v257_v16, %v256_v56  ;;  %v4746_v40 = vadd.f32 %v264_v45, %v263_v58 }
  0x2f   :  { %5722 = vst [vmem:[#allocation12_spill] sm:$0xff] %v4717_v26  ;;  %v238_v41 = vrot.slane %v4690_v18, 1  ;;  %v272_v42 = vadd.f32 %v271_v19, %v270_v59  ;;  %v279_v43 = vadd.f32 %v278_v3, %v277_v60  ;;  %v282_v44 = vadd.f32 %v218_v20, %v202_v14 }
  0x30   :  { %5723 = vst [vmem:[#allocation13_spill] sm:$0xff] %v4719_v29  ;;  %v289_v47 = vadd.f32 %v219_v21, %v203_v61  ;;  %v296_v48 = vadd.f32 %v220_v30, %v204_v1  ;;  %v303_v49 = vadd.f32 %v221_v34, %v205_v2  ;;  %v310_v50 = vadd.f32 %v222_v35, %v206_v17 }
  0x31   :  { %v283_v51 = vrot.slane %v282_v44, 4  ;;  %v317_v52 = vadd.f32 %v223_v27, %v207_v23  ;;  %v324_v53 = vadd.f32 %v224_v28, %v208_v24  ;;  %v331_v54 = vadd.f32 %v225_v31, %v209_v11 }
  0x32   :  { %v290_v57 = vrot.slane %v289_v47, 4  ;;  %v297_v55 = vrot.slane %v296_v48, 4  ;;  %v304_v5 = vrot.slane %v303_v49, 4  ;;  %v311_v56 = vrot.slane %v310_v50, 4 }
  0x33   :  { %v284_v13 = vadd.f32 %v283_v51, %v282_v44  ;;  %v318_v58 = vrot.slane %v317_v52, 4  ;;  %v325_v12 = vrot.slane %v324_v53, 4  ;;  %v332_v16 = vrot.slane %v331_v54, 4 }
  0x34   :  { %v291_v45 = vadd.f32 %v290_v57, %v289_v47  ;;  %v298_v59 = vadd.f32 %v297_v55, %v296_v48  ;;  %v305_v60 = vadd.f32 %v304_v5, %v303_v49  ;;  %v312_v14 = vadd.f32 %v311_v56, %v310_v50 }
  0x35   :  { %v285_v61 = vrot.slane %v284_v13, 2  ;;  %v319_v1 = vadd.f32 %v318_v58, %v317_v52  ;;  %v326_v2 = vadd.f32 %v325_v12, %v324_v53  ;;  %v333_v17 = vadd.f32 %v332_v16, %v331_v54 }
  0x36   :  { %v292_v19 = vrot.slane %v291_v45, 2  ;;  %v299_v3 = vrot.slane %v298_v59, 2  ;;  %v306_v23 = vrot.slane %v305_v60, 2  ;;  %v313_v24 = vrot.slane %v312_v14, 2 }
  0x37   :  { %v286_v11 = vadd.f32 %v285_v61, %v284_v13  ;;  %v320_v20 = vrot.slane %v319_v1, 2  ;;  %v327_v21 = vrot.slane %v326_v2, 2  ;;  %v334_v30 = vrot.slane %v333_v17, 2 }
  0x38   :  { %v293_v34 = vadd.f32 %v292_v19, %v291_v45  ;;  %v300_v35 = vadd.f32 %v299_v3, %v298_v59  ;;  %v307_v27 = vadd.f32 %v306_v23, %v305_v60  ;;  %v314_v28 = vadd.f32 %v313_v24, %v312_v14 }
  0x39   :  { %v245_v31 = vrot.slane %v4730_v36, 1  ;;  %v321_v44 = vadd.f32 %v320_v20, %v319_v1  ;;  %v328_v47 = vadd.f32 %v327_v21, %v326_v2  ;;  %v335_v48 = vadd.f32 %v334_v30, %v333_v17 }
  0x3a   :  { %v252_v49 = vrot.slane %v4742_v38, 1  ;;  %v259_v50 = vrot.slane %v4744_v39, 1  ;;  %v266_v51 = vrot.slane %v4746_v40, 1  ;;  %v273_v52 = vrot.slane %v272_v42, 1 }
  0x3b   :  { %v280_v53 = vrot.slane %v279_v43, 1  ;;  %v287_v54 = vrot.slane %v286_v11, 1  ;;  %v294_v57 = vrot.slane %v293_v34, 1  ;;  %v301_v55 = vrot.slane %v300_v35, 1 }
  0x3c   :  { %v308_v5 = vrot.slane %v307_v27, 1  ;;  %v315_v56 = vrot.slane %v314_v28, 1  ;;  %v322_v13 = vrot.slane %v321_v44, 1  ;;  %v329_v58 = vrot.slane %v328_v47, 1 }
  0x3d   :  { %v232_v12 = vadd.f32 %v231_v37, %v4674_v15  ;;  %v239_v16 = vadd.f32 %v238_v41, %v4690_v18  ;;  %v246_v45 = vadd.f32 %v245_v31, %v4730_v36  ;;  %v336_v59 = vrot.slane %v335_v48, 1 }
  0x3e   :  { %v253_v60 = vadd.f32 %v252_v49, %v4742_v38  ;;  %v260_v14 = vadd.f32 %v259_v50, %v4744_v39  ;;  %v267_v61 = vadd.f32 %v266_v51, %v4746_v40  ;;  %v274_v1 = vadd.f32 %v273_v52, %v272_v42 }
  0x3f   :  { %v281_v2 = vadd.f32 %v280_v53, %v279_v43  ;;  %v288_v17 = vadd.f32 %v287_v54, %v286_v11  ;;  %v295_v19 = vadd.f32 %v294_v57, %v293_v34  ;;  %v302_v3 = vadd.f32 %v301_v55, %v300_v35 }
  0x40   :  { %v309_v23 = vadd.f32 %v308_v5, %v307_v27  ;;  %v316_v24 = vadd.f32 %v315_v56, %v314_v28  ;;  %v323_v20 = vadd.f32 %v322_v13, %v321_v44  ;;  %v330_v15 = vadd.f32 %v329_v58, %v328_v47 }
  0x41   :  { %v337_v37 = vadd.f32 %v336_v59, %v335_v48  ;;  %v4759_v18 = vmul.f32 0.0625, %v232_v12  ;;  %v4761_v36 = vmul.f32 0.0625, %v239_v16  ;;  %v4763_v41 = vmul.f32 0.0625, %v246_v45 }
  0x42   :  { %v4765_v38 = vmul.f32 0.0625, %v253_v60  ;;  %v4767_v39 = vmul.f32 0.0625, %v260_v14  ;;  %v4769_v40 = vmul.f32 0.0625, %v267_v61  ;;  %v4771_v42 = vmul.f32 0.0625, %v274_v1 }
  0x43   :  { %5724 = vst [vmem:[#allocation14_spill] sm:$0xff] %v4759_v18  ;;  %v4773_v43 = vmul.f32 0.0625, %v281_v2  ;;  %v4775_v11 = vmul.f32 0.0625, %v288_v17  ;;  %v4777_v21 = vmul.f32 0.0625, %v295_v19  ;;  %v4779_v30 = vmul.f32 0.0625, %v302_v3 }
  0x44   :  { %5725 = vst [vmem:[#allocation15_spill] sm:$0xff] %v4761_v36  ;;  %v4781_v34 = vmul.f32 0.0625, %v309_v23  ;;  %v4783_v35 = vmul.f32 0.0625, %v316_v24  ;;  %v4785_v27 = vmul.f32 0.0625, %v323_v20  ;;  %v4787_v28 = vmul.f32 0.0625, %v330_v15 }
  0x45   :  { %5726 = vst [vmem:[#allocation16_spill] sm:$0xff] %v4763_v41  ;;  %v4789_v31 = vmul.f32 0.0625, %v337_v37  ;;  %v354_v44 = vmul.f32 0.5, %v4655_v32  ;;  %v355_v47 = vmul.f32 0.5, %v4657_v33  ;;  %v356_v48 = vmul.f32 0.5, %v4659_v62 }
  0x46   :  { %5727 = vst [vmem:[#allocation17_spill] sm:$0xff] %v4765_v38  ;;  %v357_v49 = vmul.f32 0.5, %v4661_v63  ;;  %v358_v50 = vmul.f32 0.5, %v4663_v0  ;;  %v359_v51 = vmul.f32 0.5, %v4665_v6  ;;  %v360_v52 = vmul.f32 0.5, %v4667_v9 }
  0x47   :  { %5728 = vst [vmem:[#allocation18_spill] sm:$0xff] %v4767_v39  ;;  %v361_v53 = vmul.f32 0.5, %v4669_v10  ;;  %v362_v54 = vmul.f32 0.5, %v4676_v46  ;;  %v363_v57 = vmul.f32 0.5, %v4692_v4  ;;  %v364_v55 = vmul.f32 0.5, %v4694_v7 }
  0x48   :  { %5729 = vst [vmem:[#allocation19_spill] sm:$0xff] %v4769_v40  ;;  %v365_v5 = vmul.f32 0.5, %v4696_v8  ;;  %v366_v56 = vmul.f32 0.5, %v4698_v22  ;;  %v367_v13 = vmul.f32 0.5, %v4715_v25  ;;  %v368_v58 = vmul.f32 0.5, %v4717_v26 }
  0x49   :  { %5730 = vst [vmem:[#allocation20_spill] sm:$0xff] %v4771_v42  ;;  %v369_v12 = vmul.f32 0.5, %v4719_v29  ;;  %v370_v16 = vmul.f32 0.5, %v4759_v18  ;;  %v371_v45 = vmul.f32 0.5, %v4761_v36  ;;  %v372_v59 = vmul.f32 0.5, %v4763_v41 }
  0x4a   :  { %5731 = vst [vmem:[#allocation21_spill] sm:$0xff] %v4773_v43  ;;  %v373_v60 = vmul.f32 0.5, %v4765_v38  ;;  %v374_v14 = vmul.f32 0.5, %v4767_v39  ;;  %v375_v61 = vmul.f32 0.5, %v4769_v40  ;;  %v376_v1 = vmul.f32 0.5, %v4771_v42 }
  0x4b   :  { %5732 = vst [vmem:[#allocation22_spill] sm:$0xff] %v4775_v11  ;;  %v377_v2 = vmul.f32 0.5, %v4773_v43  ;;  %v378_v17 = vmul.f32 0.5, %v4775_v11  ;;  %v379_v19 = vmul.f32 0.5, %v4777_v21  ;;  %v380_v3 = vmul.f32 0.5, %v4779_v30 }
  0x4c   :  { %5733 = vst [vmem:[#allocation23_spill] sm:$0xff] %v4777_v21  ;;  %v381_v23 = vmul.f32 0.5, %v4781_v34  ;;  %v382_v24 = vmul.f32 0.5, %v4783_v35  ;;  %v383_v20 = vmul.f32 0.5, %v4785_v27  ;;  %v384_v15 = vmul.f32 0.5, %v4787_v28 }
  0x4d   :  { %5734 = vst [vmem:[#allocation24_spill] sm:$0xff] %v4779_v30  ;;  %v385_v37 = vmul.f32 0.5, %v4789_v31  ;;  %v386_v42 = vadd.f32 %v370_v16, %v354_v44  ;;  %v387_v43 = vadd.f32 %v371_v45, %v355_v47  ;;  %v388_v40 = vadd.f32 %v372_v59, %v356_v48 }
  0x4e   :  { %5735 = vst [vmem:[#allocation25_spill] sm:$0xff] %v4781_v34  ;;  %v389_v11 = vadd.f32 %v373_v60, %v357_v49  ;;  %v390_v39 = vadd.f32 %v374_v14, %v358_v50  ;;  %v391_v21 = vadd.f32 %v375_v61, %v359_v51  ;;  %v392_v38 = vadd.f32 %v376_v1, %v360_v52 }
  0x4f   :  { %5736 = vst [vmem:[#allocation26_spill] sm:$0xff] %v4783_v35  ;;  %v393_v30 = vadd.f32 %v377_v2, %v361_v53  ;;  %v394_v41 = vadd.f32 %v378_v17, %v362_v54  ;;  %v395_v36 = vadd.f32 %v379_v19, %v363_v57  ;;  %v396_v34 = vadd.f32 %v380_v3, %v364_v55 }
  0x50   :  { %5737 = vst [vmem:[#allocation27_spill] sm:$0xff] %v4785_v27  ;;  %v397_v18 = vadd.f32 %v381_v23, %v365_v5  ;;  %v398_v35 = vadd.f32 %v382_v24, %v366_v56  ;;  %v399_v29 = vadd.f32 %v383_v20, %v367_v13  ;;  %v400_v27 = vadd.f32 %v384_v15, %v368_v58  ;;  %v5751_v13 = vld [vmem:[#allocation19_spill] sm:$0xff] }
  0x51   :  { %5738 = vst [vmem:[#allocation28_spill] sm:$0xff] %v4787_v28  ;;  %v401_v26 = vadd.f32 %v385_v37, %v369_v12  ;;  %v4827_v28 = vsub.f32 %v4655_v32, %v386_v42  ;;  %v4830_v44 = vsub.f32 %v4657_v33, %v387_v43  ;;  %v4833_v47 = vsub.f32 %v4659_v62, %v388_v40  ;;  %v5753_v12 = vld [vmem:[#allocation20_spill] sm:$0xff] }
  0x52   :  { %v4836_v48 = vsub.f32 %v4661_v63, %v389_v11  ;;  %v4839_v49 = vsub.f32 %v4663_v0, %v390_v39  ;;  %v4842_v50 = vsub.f32 %v4665_v6, %v391_v21  ;;  %v4845_v51 = vsub.f32 %v4667_v9, %v392_v38 }
  0x53   :  { %v4848_v32 = vsub.f32 %v4669_v10, %v393_v30  ;;  %v4851_v33 = vsub.f32 %v4676_v46, %v394_v41  ;;  %v4854_v62 = vsub.f32 %v4692_v4, %v395_v36  ;;  %v4857_v63 = vsub.f32 %v4694_v7, %v396_v34  ;;  %v5739_v10 = vld [vmem:[#allocation12_spill] sm:$0xff]  ;;  %v5740_v46 = vld [vmem:[#allocation13_spill] sm:$0xff]  ;;  %v5741_v4 = vld [vmem:[#allocation14_spill] sm:$0xff] }
  0x54   :  { %v4860_v0 = vsub.f32 %v4696_v8, %v397_v18  ;;  %v4863_v6 = vsub.f32 %v4698_v22, %v398_v35  ;;  %v4866_v9 = vsub.f32 %v4715_v25, %v399_v29  ;;  %v4869_v52 = vsub.f32 %v5739_v10, %v400_v27  ;;  %v5743_v7 = vld [vmem:[#allocation15_spill] sm:$0xff]  ;;  %v5745_v8 = vld [vmem:[#allocation16_spill] sm:$0xff]  ;;  %v5747_v22 = vld [vmem:[#allocation17_spill] sm:$0xff] }
  0x55   :  { %v4872_v53 = vsub.f32 %v5740_v46, %v401_v26  ;;  %v4875_v54 = vsub.f32 %v5741_v4, %v386_v42  ;;  %v4878_v57 = vsub.f32 %v5743_v7, %v387_v43  ;;  %v4881_v55 = vsub.f32 %v5745_v8, %v388_v40  ;;  %v5749_v25 = vld [vmem:[#allocation18_spill] sm:$0xff]  ;;  %v5755_v42 = vld [vmem:[#allocation21_spill] sm:$0xff]  ;;  %v5759_v40 = vld [vmem:[#allocation23_spill] sm:$0xff] }
  0x56   :  { %v4884_v5 = vsub.f32 %v5747_v22, %v389_v11  ;;  %v4887_v56 = vsub.f32 %v5749_v25, %v390_v39  ;;  %v4890_v58 = vsub.f32 %v5751_v13, %v391_v21  ;;  %v4893_v16 = vsub.f32 %v5753_v12, %v392_v38  ;;  %v5757_v43 = vld [vmem:[#allocation22_spill] sm:$0xff]  ;;  %v5761_v11 = vld [vmem:[#allocation24_spill] sm:$0xff]  ;;  %v5763_v39 = vld [vmem:[#allocation25_spill] sm:$0xff] }
  0x57   :  { %5742 = vst [vmem:[#allocation12_spill] sm:$0xff] %v4875_v54  ;;  %v4896_v45 = vsub.f32 %v5755_v42, %v393_v30  ;;  %v4899_v59 = vsub.f32 %v5757_v43, %v394_v41  ;;  %v4902_v60 = vsub.f32 %v5759_v40, %v395_v36  ;;  %v4905_v14 = vsub.f32 %v5761_v11, %v396_v34  ;;  %v5765_v21 = vld [vmem:[#allocation26_spill] sm:$0xff]  ;;  %v5767_v38 = vld [vmem:[#allocation27_spill] sm:$0xff] }
  0x58   :  { %5744 = vst [vmem:[#allocation13_spill] sm:$0xff] %v4878_v57  ;;  %v4908_v61 = vsub.f32 %v5763_v39, %v397_v18  ;;  %v4911_v1 = vsub.f32 %v5765_v21, %v398_v35  ;;  %v4914_v2 = vsub.f32 %v5767_v38, %v399_v29  ;;  %v5769_v30 = vld [vmem:[#allocation28_spill] sm:$0xff]  ;;  %v4920_v41 = vsub.f32 %v4789_v31, %v401_v26 }
  0x59   :  { %5746 = vst [vmem:[#allocation14_spill] sm:$0xff] %v4881_v55  ;;  %v4917_v17 = vsub.f32 %v5769_v30, %v400_v27  ;;  %v434_v36 = vmul.f32 %v4827_v28, %v4827_v28  ;;  %v435_v34 = vmul.f32 %v4830_v44, %v4830_v44  ;;  %v436_v18 = vmul.f32 %v4833_v47, %v4833_v47 }
  0x5a   :  { %5748 = vst [vmem:[#allocation15_spill] sm:$0xff] %v4884_v5  ;;  %v437_v35 = vmul.f32 %v4836_v48, %v4836_v48  ;;  %v438_v29 = vmul.f32 %v4839_v49, %v4839_v49  ;;  %v439_v27 = vmul.f32 %v4842_v50, %v4842_v50  ;;  %v440_v26 = vmul.f32 %v4845_v51, %v4845_v51 }
  0x5b   :  { %5750 = vst [vmem:[#allocation16_spill] sm:$0xff] %v4887_v56  ;;  %v441_v31 = vmul.f32 %v4848_v32, %v4848_v32  ;;  %v442_v19 = vmul.f32 %v4851_v33, %v4851_v33  ;;  %v443_v3 = vmul.f32 %v4854_v62, %v4854_v62  ;;  %v444_v23 = vmul.f32 %v4857_v63, %v4857_v63 }
  0x5c   :  { %5752 = vst [vmem:[#allocation17_spill] sm:$0xff] %v4890_v58  ;;  %v445_v24 = vmul.f32 %v4860_v0, %v4860_v0  ;;  %v446_v20 = vmul.f32 %v4863_v6, %v4863_v6  ;;  %v447_v15 = vmul.f32 %v4866_v9, %v4866_v9  ;;  %v448_v37 = vmul.f32 %v4869_v52, %v4869_v52 }
  0x5d   :  { %5754 = vst [vmem:[#allocation18_spill] sm:$0xff] %v4893_v16  ;;  %v449_v10 = vmul.f32 %v4872_v53, %v4872_v53  ;;  %v450_v46 = vmul.f32 0.5, %v434_v36  ;;  %v451_v4 = vmul.f32 0.5, %v435_v34  ;;  %v466_v7 = vmul.f32 %v4875_v54, %v4875_v54 }
  0x5e   :  { %5756 = vst [vmem:[#allocation19_spill] sm:$0xff] %v4896_v45  ;;  %v452_v8 = vmul.f32 0.5, %v436_v18  ;;  %v453_v22 = vmul.f32 0.5, %v437_v35  ;;  %v454_v25 = vmul.f32 0.5, %v438_v29  ;;  %v467_v13 = vmul.f32 %v4878_v57, %v4878_v57 }
  0x5f   :  { %5758 = vst [vmem:[#allocation20_spill] sm:$0xff] %v4899_v59  ;;  %v455_v12 = vmul.f32 0.5, %v439_v27  ;;  %v456_v42 = vmul.f32 0.5, %v440_v26  ;;  %v457_v43 = vmul.f32 0.5, %v441_v31  ;;  %v468_v40 = vmul.f32 %v4881_v55, %v4881_v55 }
  0x60   :  { %5760 = vst [vmem:[#allocation21_spill] sm:$0xff] %v4902_v60  ;;  %v458_v11 = vmul.f32 0.5, %v442_v19  ;;  %v459_v39 = vmul.f32 0.5, %v443_v3  ;;  %v460_v21 = vmul.f32 0.5, %v444_v23  ;;  %v469_v38 = vmul.f32 %v4884_v5, %v4884_v5 }
  0x61   :  { %5762 = vst [vmem:[#allocation22_spill] sm:$0xff] %v4905_v14  ;;  %v461_v30 = vmul.f32 0.5, %v445_v24  ;;  %v462_v36 = vmul.f32 0.5, %v446_v20  ;;  %v470_v34 = vmul.f32 %v4887_v56, %v4887_v56  ;;  %v482_v18 = vmul.f32 0.5, %v466_v7 }
  0x62   :  { %5764 = vst [vmem:[#allocation23_spill] sm:$0xff] %v4908_v61  ;;  %v463_v35 = vmul.f32 0.5, %v447_v15  ;;  %v464_v29 = vmul.f32 0.5, %v448_v37  ;;  %v471_v27 = vmul.f32 %v4890_v58, %v4890_v58  ;;  %v483_v26 = vmul.f32 0.5, %v467_v13 }
  0x63   :  { %5766 = vst [vmem:[#allocation24_spill] sm:$0xff] %v4911_v1  ;;  %v465_v31 = vmul.f32 0.5, %v449_v10  ;;  %v472_v19 = vmul.f32 %v4893_v16, %v4893_v16  ;;  %v473_v3 = vmul.f32 %v4896_v45, %v4896_v45  ;;  %v484_v23 = vmul.f32 0.5, %v468_v40 }
  0x64   :  { %5768 = vst [vmem:[#allocation25_spill] sm:$0xff] %v4914_v2  ;;  %v474_v24 = vmul.f32 %v4899_v59, %v4899_v59  ;;  %v475_v20 = vmul.f32 %v4902_v60, %v4902_v60  ;;  %v476_v15 = vmul.f32 %v4905_v14, %v4905_v14  ;;  %v485_v37 = vmul.f32 0.5, %v469_v38 }
  0x65   :  { %5770 = vst [vmem:[#allocation26_spill] sm:$0xff] %v4917_v17  ;;  %v477_v10 = vmul.f32 %v4908_v61, %v4908_v61  ;;  %v478_v7 = vmul.f32 %v4911_v1, %v4911_v1  ;;  %v486_v13 = vmul.f32 0.5, %v470_v34  ;;  %v498_v16 = vadd.f32 %v482_v18, %v450_v46 }
  0x66   :  { %5771 = vst [vmem:[#allocation27_spill] sm:$0xff] %v4920_v41  ;;  %v479_v40 = vmul.f32 %v4914_v2, %v4914_v2  ;;  %v480_v59 = vmul.f32 %v4917_v17, %v4917_v17  ;;  %v487_v45 = vmul.f32 0.5, %v471_v27  ;;  %v499_v60 = vadd.f32 %v483_v26, %v451_v4 }
  0x67   :  { %v481_v14 = vmul.f32 %v4920_v41, %v4920_v41  ;;  %v488_v38 = vmul.f32 0.5, %v472_v19  ;;  %v489_v58 = vmul.f32 0.5, %v473_v3  ;;  %v500_v56 = vadd.f32 %v484_v23, %v452_v8 }
  0x68   :  { %v490_v61 = vmul.f32 0.5, %v474_v24  ;;  %v491_v5 = vmul.f32 0.5, %v475_v20  ;;  %v492_v55 = vmul.f32 0.5, %v476_v15  ;;  %v501_v1 = vadd.f32 %v485_v37, %v453_v22 }
  0x69   :  { %v493_v34 = vmul.f32 0.5, %v477_v10  ;;  %v494_v46 = vmul.f32 0.5, %v478_v7  ;;  %v502_v18 = vadd.f32 %v486_v13, %v454_v25  ;;  %v4986_v57 = vadd.f32 1e-05, %v498_v16 }
  0x6a   :  { %v495_v2 = vmul.f32 0.5, %v479_v40  ;;  %v496_v54 = vmul.f32 0.5, %v480_v59  ;;  %v503_v17 = vadd.f32 %v487_v45, %v455_v12  ;;  %v4988_v27 = vadd.f32 1e-05, %v499_v60 }
  0x6b   :  { %v497_v4 = vmul.f32 0.5, %v481_v14  ;;  %v504_v26 = vadd.f32 %v488_v38, %v456_v42  ;;  %v4990_v41 = vadd.f32 1e-05, %v500_v56  ;;  %4354 = vrsqrt.f32 %v4986_v57 }
  0x6c   :  { %v505_v8 = vadd.f32 %v489_v58, %v457_v43  ;;  %v506_v19 = vadd.f32 %v490_v61, %v458_v11  ;;  %v4993_v3 = vadd.f32 1e-05, %v501_v1  ;;  %v507_v22 = vadd.f32 %v491_v5, %v459_v39 }
  0x6d   :  { %v508_v23 = vadd.f32 %v492_v55, %v460_v21  ;;  %v4995_v25 = vadd.f32 1e-05, %v502_v18  ;;  %4356 = vrsqrt.f32 %v4988_v27  ;;  %v509_v16 = vadd.f32 %v493_v34, %v461_v30 }
  0x6e   :  { %v510_v45 = vadd.f32 %v494_v46, %v462_v36  ;;  %v511_v59 = vadd.f32 %v495_v2, %v463_v35  ;;  %v4998_v60 = vadd.f32 1e-05, %v503_v17  ;;  %v512_v14 = vadd.f32 %v496_v54, %v464_v29 }
  0x6f   :  { %v513_v56 = vadd.f32 %v497_v4, %v465_v31  ;;  %v5000_v12 = vadd.f32 1e-05, %v504_v26  ;;  %4358 = vrsqrt.f32 %v4990_v41  ;;  %v5003_v58 = vadd.f32 1e-05, %v505_v8 }
  0x70   :  { %v5005_v61 = vadd.f32 1e-05, %v506_v19  ;;  %4360 = vrsqrt.f32 %v4993_v3  ;;  %v5010_v5 = vadd.f32 1e-05, %v507_v22  ;;  %v5012_v1 = vadd.f32 1e-05, %v508_v23 }
  0x71   :  { %v5008_v55 = vpop.eup %4354  ;;  %vm538_vm0 = vweird.f32 %v4986_v57  ;;  %4362 = vrsqrt.f32 %v4995_v25  ;;  %v5016_v54 = vadd.f32 1e-05, %v509_v16  ;;  %v5018_v2 = vadd.f32 1e-05, %v510_v45 }
  0x72   :  { %v533_v17 = vmul.f32 %v5008_v55, %v4986_v57  ;;  %4364 = vrsqrt.f32 %v4998_v60  ;;  %v5025_v43 = vadd.f32 1e-05, %v511_v59  ;;  %v5027_v11 = vadd.f32 1e-05, %v512_v14 }
  0x73   :  { %v5023_v42 = vpop.eup %4356  ;;  %v5029_v39 = vadd.f32 1e-05, %v513_v56  ;;  %4366 = vrsqrt.f32 %v5000_v12  ;;  %vm548_vm1 = vweird.f32 %v4988_v27  ;;  %vm539_vm2 = vweird.f32 %v5008_v55 }
  0x74   :  { %v534_v21 = vmul.f32 %v5008_v55, %v533_v17  ;;  %v543_v30 = vmul.f32 %v5023_v42, %v4988_v27  ;;  %4368 = vrsqrt.f32 %v5003_v58  ;;  %vm558_vm3 = vweird.f32 %v4990_v41  ;;  %vm5080_vm13 = vmor %vm538_vm0, %vm539_vm2 }
  0x75   :  { %v5037_v36 = vpop.eup %4358  ;;  %vm568_vm4 = vweird.f32 %v4993_v3  ;;  %vm578_vm5 = vweird.f32 %v4995_v25  ;;  %vm549_vm6 = vweird.f32 %v5023_v42  ;;  %vm588_vm7 = vweird.f32 %v4998_v60 }
  0x76   :  { %v5043_v35 = vpop.eup %4360  ;;  %v535_v29 = vmul.f32 0.5, %v534_v21  ;;  %v544_v31 = vmul.f32 %v5023_v42, %v543_v30  ;;  %v553_v24 = vmul.f32 %v5037_v36, %v4990_v41  ;;  %vm559_vm8 = vweird.f32 %v5037_v36  ;;  %vm5089_vm14 = vmor %vm548_vm1, %vm549_vm6 }
  0x77   :  { %v5050_v20 = vpop.eup %4362  ;;  %v563_v15 = vmul.f32 %v5043_v35, %v4993_v3  ;;  %vm569_vm9 = vweird.f32 %v5043_v35  ;;  %vm598_vm10 = vweird.f32 %v5000_v12  ;;  %4370 = vrsqrt.f32 %v5005_v61  ;;  %vm5106_vm1 = vmor %vm558_vm3, %vm559_vm8 }
  0x78   :  { %v5058_v37 = vpop.eup %4364  ;;  %v536_v10 = vsub.f32 1.5, %v535_v29  ;;  %v545_v7 = vmul.f32 0.5, %v544_v31  ;;  %v554_v13 = vmul.f32 %v5037_v36, %v553_v24  ;;  %v573_v40 = vmul.f32 %v5050_v20, %v4995_v25  ;;  %vm5125_vm3 = vmor %vm568_vm4, %vm569_vm9 }
  0x79   :  { %v5063_v38 = vpop.eup %4366  ;;  %v564_v34 = vmul.f32 %v5043_v35, %v563_v15  ;;  %vm579_vm11 = vweird.f32 %v5050_v20  ;;  %v583_v46 = vmul.f32 %v5058_v37, %v4998_v60  ;;  %vm608_vm12 = vweird.f32 %v5003_v58 }
  0x7a   :  { %4372 = vrsqrt.f32 %v5010_v5  ;;  %v5071_v18 = vpop.eup %4368  ;;  %v5074_v4 = vmul.f32 %v5008_v55, %v536_v10  ;;  %v546_v8 = vsub.f32 1.5, %v545_v7  ;;  %v555_v19 = vmul.f32 0.5, %v554_v13  ;;  %vm5137_vm8 = vmor %vm578_vm5, %vm579_vm11 }
  0x7b   :  { %v574_v22 = vmul.f32 %v5050_v20, %v573_v40  ;;  %v565_v16 = vmul.f32 0.5, %v564_v34  ;;  %v584_v45 = vmul.f32 %v5058_v37, %v583_v46  ;;  %vm589_vm15 = vweird.f32 %v5058_v37 }
  0x7c   :  { %v593_v57 = vmul.f32 %v5063_v38, %v5000_v12  ;;  %v547_v59 = vmul.f32 %v5023_v42, %v546_v8  ;;  %v556_v14 = vsub.f32 1.5, %v555_v19  ;;  %vm599_vm0 = vweird.f32 %v5063_v38  ;;  %vm5154_vm5 = vmor %vm588_vm7, %vm589_vm15 }
  0x7d   :  { %v575_v56 = vmul.f32 0.5, %v574_v22  ;;  %vm618_vm2 = vweird.f32 %v5005_v61  ;;  %v5100_v27 = vpop.eup %4370  ;;  %v566_v21 = vsub.f32 1.5, %v565_v16  ;;  %v585_v30 = vmul.f32 0.5, %v584_v45  ;;  %vm5169_vm7 = vmor %vm598_vm10, %vm599_vm0 }
  0x7e   :  { %v594_v29 = vmul.f32 %v5063_v38, %v593_v57  ;;  %v603_v31 = vmul.f32 %v5071_v18, %v5003_v58  ;;  %v541_v24 = vsel %vm5080_vm13, %v5008_v55, %v5074_v4  ;;  %v551_v41 = vsel %vm5089_vm14, %v5023_v42, %v547_v59 }
  0x7f   :  { %v557_v15 = vmul.f32 %v5037_v36, %v556_v14  ;;  %v576_v7 = vsub.f32 1.5, %v575_v56  ;;  %vm628_vm6 = vweird.f32 %v5010_v5  ;;  %v567_v40 = vmul.f32 %v5043_v35, %v566_v21 }
  0x80   :  { %v5130_v13 = vpop.eup %4372  ;;  %v586_v3 = vsub.f32 1.5, %v585_v30  ;;  %v595_v34 = vmul.f32 0.5, %v594_v29  ;;  %v604_v46 = vmul.f32 %v5071_v18, %v603_v31  ;;  %vm609_vm4 = vweird.f32 %v5071_v18 }
  0x81   :  { %v561_v8 = vsel %vm5106_vm1, %v5037_v36, %v557_v15  ;;  %v577_v19 = vmul.f32 %v5050_v20, %v576_v7  ;;  %v613_v22 = vmul.f32 %v5100_v27, %v5005_v61  ;;  %vm619_vm9 = vweird.f32 %v5100_v27  ;;  %vm5186_vm10 = vmor %vm608_vm12, %vm609_vm4 }
  0x82   :  { %v587_v25 = vmul.f32 %v5058_v37, %v586_v3  ;;  %v596_v16 = vsub.f32 1.5, %v595_v34  ;;  %v605_v45 = vmul.f32 0.5, %v604_v46  ;;  %v571_v36 = vsel %vm5125_vm3, %v5043_v35, %v567_v40  ;;  %vm5206_vm14 = vmor %vm618_vm2, %vm619_vm9 }
  0x83   :  { %v581_v57 = vsel %vm5137_vm8, %v5050_v20, %v577_v19  ;;  %v614_v59 = vmul.f32 %v5100_v27, %v613_v22  ;;  %v623_v14 = vmul.f32 %v5130_v13, %v5010_v5  ;;  %vm629_vm11 = vweird.f32 %v5130_v13 }
  0x84   :  { %v597_v56 = vmul.f32 %v5063_v38, %v596_v16  ;;  %v606_v35 = vsub.f32 1.5, %v605_v45  ;;  %4374 = vrsqrt.f32 %v5012_v1  ;;  %v591_v12 = vsel %vm5154_vm5, %v5058_v37, %v587_v25  ;;  %vm5225_vm2 = vmor %vm628_vm6, %vm629_vm11 }
  0x85   :  { %v615_v17 = vmul.f32 0.5, %v614_v59  ;;  %v624_v21 = vmul.f32 %v5130_v13, %v623_v14  ;;  %4376 = vrsqrt.f32 %v5016_v54  ;;  %v708_v37 = vrot.slane %v551_v41, 7 }
  0x86   :  { %v601_v30 = vsel %vm5169_vm7, %v5063_v38, %v597_v56  ;;  %v607_v29 = vmul.f32 %v5071_v18, %v606_v35  ;;  %4378 = vrsqrt.f32 %v5018_v2  ;;  %vm638_vm12 = vweird.f32 %v5012_v1 }
  0x87   :  { %v616_v31 = vsub.f32 1.5, %v615_v17  ;;  %v625_v58 = vmul.f32 0.5, %v624_v21  ;;  %4380 = vrsqrt.f32 %v5025_v43  ;;  %v709_v15 = vrot.slane %v561_v8, 6 }
  0x88   :  { %v611_v10 = vsel %vm5186_vm10, %v5071_v18, %v607_v29  ;;  %vm648_vm15 = vweird.f32 %v5016_v54  ;;  %4382 = vrsqrt.f32 %v5027_v11  ;;  %v710_v41 = vrot.slane %v571_v36, 5 }
  0x89   :  { %v5212_v7 = vrot.slane %v581_v57, 4  ;;  %v5215_v40 = vmul.f32 %v5100_v27, %v616_v31  ;;  %v626_v42 = vsub.f32 1.5, %v625_v58  ;;  %vm658_vm0 = vweird.f32 %v5018_v2 }
  0x8a   :  { %4384 = vrsqrt.f32 %v5029_v39  ;;  %v712_v61 = vrot.slane %v591_v12, 3  ;;  %v5219_v18 = vpop.eup %4374  ;;  %vm668_vm1 = vweird.f32 %v5025_v43  ;;  %v5230_v34 = vrot.slane %v601_v30, 2 }
  0x8b   :  { %v5232_v46 = vrot.slane %v611_v10, 1  ;;  %vm5716_vm3 = vcmask 1040384   ;;  %vm5715_vm8 = vcmask 1042434   ;;  %v5234_v8 = vpop.eup %4376  ;;  %v621_v19 = vsel %vm5206_vm14, %v5100_v27, %v5215_v40  ;;  %v515_v27 = vld [vmem:[%s5676_s1 + $0x8] sm:$0xff] }
  0x8c   :  { %v627_v5 = vmul.f32 %v5130_v13, %v626_v42  ;;  %v633_v22 = vmul.f32 %v5219_v18, %v5012_v1  ;;  %vm639_vm6 = vweird.f32 %v5219_v18  ;;  %vm678_vm4 = vweird.f32 %v5027_v11  ;;  %v4379_v25 = vpop.eup %4378 }
  0x8d   :  { %v643_v23 = vmul.f32 %v5234_v8, %v5016_v54  ;;  %vm649_vm5 = vweird.f32 %v5234_v8  ;;  %vm688_vm9 = vweird.f32 %v5029_v39  ;;  %v723_v16 = vsel %vm5716_vm3, %v541_v24, %v708_v37  ;;  %v4381_v36 = vpop.eup %4380 }
  0x8e   :  { %v725_v45 = vsel %vm5715_vm8, %v709_v15, %v710_v41  ;;  %v631_v57 = vsel %vm5225_vm2, %v5130_v13, %v627_v5  ;;  %v634_v60 = vmul.f32 %v5219_v18, %v633_v22  ;;  %v653_v59 = vmul.f32 %v4379_v25, %v5018_v2  ;;  %v4383_v14 = vpop.eup %4382  ;;  %vm5269_vm8 = vmor %vm638_vm12, %vm639_vm6 }
  0x8f   :  { %vm659_vm7 = vweird.f32 %v4379_v25  ;;  %v644_v26 = vmul.f32 %v5234_v8, %v643_v23  ;;  %v663_v56 = vmul.f32 %v4381_v36, %v5025_v43  ;;  %vm669_vm13 = vweird.f32 %v4381_v36  ;;  %vm5279_vm3 = vmor %vm648_vm15, %vm649_vm5 }
  0x90   :  { %v715_v55 = vrot.slane %v631_v57, 7  ;;  %v4385_v4 = vpop.eup %4384  ;;  %v635_v24 = vmul.f32 0.5, %v634_v60  ;;  %v654_v35 = vmul.f32 %v4379_v25, %v653_v59  ;;  %v673_v12 = vmul.f32 %v4383_v14, %v5027_v11  ;;  %vm5287_vm6 = vmor %vm658_vm0, %vm659_vm7 }
  0x91   :  { %vm679_vm11 = vweird.f32 %v4383_v14  ;;  %v645_v20 = vmul.f32 0.5, %v644_v26  ;;  %v664_v13 = vmul.f32 %v4381_v36, %v663_v56  ;;  %v683_v17 = vmul.f32 %v4385_v4, %v5029_v39  ;;  %vm5299_vm15 = vmor %vm668_vm1, %vm669_vm13 }
  0x92   :  { %vm689_vm10 = vweird.f32 %v4385_v4  ;;  %v636_v21 = vsub.f32 1.5, %v635_v24  ;;  %v655_v30 = vmul.f32 0.5, %v654_v35  ;;  %v674_v29 = vmul.f32 %v4383_v14, %v673_v12  ;;  %vm5309_vm5 = vmor %vm678_vm4, %vm679_vm11  ;;  %v514_v35 = vld [vmem:[%s5676_s1] sm:$0xff]  ;;  %v5418_v24 = vld [vmem:[%s5677_s2 + $0x8] sm:$0xff] }
  0x93   :  { %vm726_vm2 = vcmask 1041408   ;;  %v646_v31 = vsub.f32 1.5, %v645_v20  ;;  %v665_v58 = vmul.f32 0.5, %v664_v13  ;;  %v684_v15 = vmul.f32 %v4385_v4, %v683_v17  ;;  %vm5318_vm1 = vmor %vm688_vm9, %vm689_vm10 }
  0x94   :  { %v727_v10 = vsel %vm726_vm2, %v723_v16, %v725_v45  ;;  %v637_v41 = vmul.f32 %v5219_v18, %v636_v21  ;;  %v656_v1 = vsub.f32 1.5, %v655_v30  ;;  %v675_v3 = vmul.f32 0.5, %v674_v29 }
  0x95   :  { %vm728_vm12 = vcmask 1044484   ;;  %v647_v5 = vmul.f32 %v5234_v8, %v646_v31  ;;  %v666_v23 = vsub.f32 1.5, %v665_v58  ;;  %v685_v16 = vmul.f32 0.5, %v684_v15 }
  0x96   :  { %v729_v54 = vsel %vm728_vm12, %v5212_v7, %v712_v61  ;;  %v641_v45 = vsel %vm5269_vm8, %v5219_v18, %v637_v41  ;;  %v657_v57 = vmul.f32 %v4379_v25, %v656_v1  ;;  %v676_v2 = vsub.f32 1.5, %v675_v3 }
  0x97   :  { %vm730_vm0 = vcmask 1046534   ;;  %v651_v59 = vsel %vm5279_vm3, %v5234_v8, %v647_v5  ;;  %v667_v26 = vmul.f32 %v4381_v36, %v666_v23  ;;  %v686_v61 = vsub.f32 1.5, %v685_v16 }
  0x98   :  { %v716_v43 = vrot.slane %v641_v45, 6  ;;  %v661_v18 = vsel %vm5287_vm6, %v4379_v25, %v657_v57  ;;  %v677_v56 = vmul.f32 %v4383_v14, %v676_v2  ;;  %v717_v8 = vrot.slane %v651_v59, 5 }
  0x99   :  { %v731_v11 = vsel %vm730_vm0, %v5230_v34, %v5232_v46  ;;  %v671_v25 = vsel %vm5299_vm15, %v4381_v36, %v667_v26  ;;  %v687_v12 = vmul.f32 %v4385_v4, %v686_v61  ;;  %v718_v20 = vrot.slane %v661_v18, 4  ;;  %v5336_v34 = vld [vmem:[%s5677_s2] sm:$0xff] }
  0x9a   :  { %vm732_vm3 = vcmask 1045508   ;;  %v681_v39 = vsel %vm5309_vm5, %v4383_v14, %v677_v56  ;;  %v719_v13 = vrot.slane %v671_v25, 3  ;;  %vm734_vm8 = vcmask 1043456  }
  0x9b   :  { %v733_v17 = vsel %vm732_vm3, %v729_v54, %v731_v11  ;;  %v691_v46 = vsel %vm5318_vm1, %v4385_v4, %v687_v12  ;;  %v720_v21 = vrot.slane %v681_v39, 2  ;;  %vm5804_vm4 = vcmask 1040384  }
  0x9c   :  { %v735_v36 = vsel %vm734_vm8, %v727_v10, %v733_v17  ;;  %v736_v14 = vsel %vm5804_vm4, %v621_v19, %v715_v55  ;;  %v721_v30 = vrot.slane %v691_v46, 1  ;;  %vm5805_vm9 = vcmask 1042434   ;;  %vm5806_vm14 = vmmov %vm5804_vm4 }
  0x9d   :  { %v737_v29 = vsel %vm5805_vm9, %v716_v43, %v717_v8  ;;  %v739_v37 = vsel %vm728_vm12, %v718_v20, %v719_v13  ;;  %v5349_v31 = vmul.f32 %v735_v36, %v514_v35  ;;  %v801_v4 = vperm.slane %v5336_v34, 0  ;;  %vm5807_vm7 = vmmov %vm5805_vm9 }
  0x9e   :  { %v738_v58 = vsel %vm726_vm2, %v736_v14, %v737_v29  ;;  %v802_v15 = vperm.slane %v5336_v34, 1  ;;  %v803_v38 = vperm.slane %v5336_v34, 2  ;;  %v740_v40 = vsel %vm730_vm0, %v720_v21, %v721_v30  ;;  %vm5808_vm13 = vmmov %vm5804_vm4 }
  0x9f   :  { %v749_v19 = vperm.slane %v5349_v31, 0  ;;  %v750_v55 = vperm.slane %v5349_v31, 1  ;;  %v751_v10 = vperm.slane %v5349_v31, 2  ;;  %v741_v41 = vsel %vm732_vm3, %v739_v37, %v740_v40  ;;  %vm5809_vm11 = vmmov %vm5807_vm7 }
  0xa0   :  { %v752_v42 = vperm.slane %v5349_v31, 3  ;;  %v753_v1 = vperm.slane %v5349_v31, 4  ;;  %v754_v3 = vperm.slane %v5349_v31, 5  ;;  %v742_v5 = vsel %vm734_vm8, %v738_v58, %v741_v41  ;;  %vm5831_vm10 = vmmov %vm5804_vm4 }
  0xa1   :  { %v755_v22 = vperm.slane %v5349_v31, 6  ;;  %v756_v23 = vperm.slane %v5349_v31, 7  ;;  %v781_v16 = vmul.f32 %v749_v19, %v4827_v28  ;;  %v5372_v54 = vmul.f32 %v742_v5, %v515_v27  ;;  %vm5832_vm6 = vmmov %vm5807_vm7 }
  0xa2   :  { %v782_v45 = vmul.f32 %v750_v55, %v4830_v44  ;;  %v783_v57 = vmul.f32 %v751_v10, %v4833_v47  ;;  %v784_v60 = vmul.f32 %v752_v42, %v4836_v48  ;;  %v785_v2 = vmul.f32 %v753_v1, %v4839_v49  ;;  %vm5833_vm15 = vmmov %vm5804_vm4 }
  0xa3   :  { %v786_v28 = vmul.f32 %v754_v3, %v4842_v50  ;;  %v787_v44 = vmul.f32 %v755_v22, %v4845_v51  ;;  %v788_v47 = vmul.f32 %v756_v23, %v4848_v32  ;;  %v757_v59 = vperm.slane %v5372_v54, 0  ;;  %vm5834_vm5 = vmmov %vm5832_vm6 }
  0xa4   :  { %v758_v48 = vperm.slane %v5372_v54, 1  ;;  %v759_v26 = vperm.slane %v5372_v54, 2  ;;  %v760_v49 = vperm.slane %v5372_v54, 3  ;;  %v761_v7 = vperm.slane %v5372_v54, 4 }
  0xa5   :  { %v762_v50 = vperm.slane %v5372_v54, 5  ;;  %v763_v61 = vperm.slane %v5372_v54, 6  ;;  %v764_v51 = vperm.slane %v5372_v54, 7  ;;  %v789_v32 = vmul.f32 %v757_v59, %v4851_v33 }
  0xa6   :  { %v790_v43 = vmul.f32 %v758_v48, %v4854_v62  ;;  %v791_v18 = vmul.f32 %v759_v26, %v4857_v63  ;;  %v792_v56 = vmul.f32 %v760_v49, %v4860_v0  ;;  %v793_v33 = vmul.f32 %v761_v7, %v4863_v6 }
  0xa7   :  { %v794_v62 = vmul.f32 %v762_v50, %v4866_v9  ;;  %v795_v63 = vmul.f32 %v763_v61, %v4869_v52  ;;  %v796_v0 = vmul.f32 %v764_v51, %v4872_v53  ;;  %v804_v8 = vperm.slane %v5336_v34, 3 }
  0xa8   :  { %v805_v11 = vperm.slane %v5336_v34, 4  ;;  %v806_v35 = vperm.slane %v5336_v34, 5  ;;  %v807_v6 = vperm.slane %v5336_v34, 6  ;;  %v808_v25 = vperm.slane %v5336_v34, 7 }
  0xa9   :  { %v809_v9 = vperm.slane %v5418_v24, 0  ;;  %v5720_v12 = vperm.slane %v5418_v24, 1  ;;  %v5718_v52 = vperm.slane %v5418_v24, 2  ;;  %v5717_v20 = vperm.slane %v5418_v24, 3 }
  0xaa   :  { %v5719_v53 = vperm.slane %v5418_v24, 4  ;;  %v5721_v39 = vperm.slane %v5418_v24, 5  ;;  %v815_v13 = vperm.slane %v5418_v24, 6  ;;  %v816_v17 = vperm.slane %v5418_v24, 7 }
  0xab   :  { %v833_v46 = vadd.f32 %v801_v4, %v781_v16  ;;  %v834_v21 = vadd.f32 %v802_v15, %v782_v45  ;;  %v835_v36 = vadd.f32 %v803_v38, %v783_v57  ;;  %v836_v14 = vadd.f32 %v804_v8, %v784_v60 }
  0xac   :  { %v837_v30 = vadd.f32 %v805_v11, %v785_v2  ;;  %v838_v29 = vadd.f32 %v806_v35, %v786_v28  ;;  %v839_v37 = vadd.f32 %v807_v6, %v787_v44  ;;  %v840_v58 = vadd.f32 %v808_v25, %v788_v47 }
  0xad   :  { %v841_v27 = vadd.f32 %v809_v9, %v789_v32  ;;  %v842_v40 = vadd.f32 %v5720_v12, %v790_v43  ;;  %v843_v41 = vadd.f32 %v5718_v52, %v791_v18  ;;  %v844_v5 = vadd.f32 %v5717_v20, %v792_v56 }
  0xae   :  { %v845_v16 = vadd.f32 %v5719_v53, %v793_v33  ;;  %v846_v45 = vadd.f32 %v5721_v39, %v794_v62  ;;  %v847_v57 = vadd.f32 %v815_v13, %v795_v63  ;;  %v848_v60 = vadd.f32 %v816_v17, %v796_v0 }
  0xaf   :  { %v865_v2 = vrot.slane %v834_v21, 7  ;;  %v866_v28 = vrot.slane %v835_v36, 6  ;;  %v867_v44 = vrot.slane %v836_v14, 5  ;;  %v868_v47 = vrot.slane %v837_v30, 4 }
  0xb0   :  { %v869_v32 = vrot.slane %v838_v29, 3  ;;  %v870_v43 = vrot.slane %v839_v37, 2  ;;  %v871_v18 = vrot.slane %v840_v58, 1  ;;  %v872_v56 = vrot.slane %v842_v40, 7 }
  0xb1   :  { %v873_v20 = vrot.slane %v843_v41, 6  ;;  %v874_v52 = vrot.slane %v844_v5, 5  ;;  %v875_v33 = vrot.slane %v845_v16, 4  ;;  %v876_v53 = vrot.slane %v846_v45, 3  ;;  %v5810_v41 = vld [vmem:[#allocation12_spill] sm:$0xff] }
  0xb2   :  { %v877_v12 = vrot.slane %v847_v57, 2  ;;  %v878_v62 = vrot.slane %v848_v60, 1  ;;  %v879_v39 = vsel %vm5806_vm14, %v833_v46, %v865_v2  ;;  %v880_v63 = vsel %vm5807_vm7, %v866_v28, %v867_v44  ;;  %v5814_v57 = vld [vmem:[#allocation16_spill] sm:$0xff]  ;;  %v5815_v60 = vld [vmem:[#allocation17_spill] sm:$0xff]  ;;  %v5816_v28 = vld [vmem:[#allocation18_spill] sm:$0xff] }
  0xb3   :  { %v882_v0 = vsel %vm728_vm12, %v868_v47, %v869_v32  ;;  %v883_v21 = vsel %vm730_vm0, %v870_v43, %v871_v18  ;;  %v886_v36 = vsel %vm5808_vm13, %v841_v27, %v872_v56  ;;  %v881_v14 = vsel %vm726_vm2, %v879_v39, %v880_v63  ;;  %v5811_v39 = vld [vmem:[#allocation13_spill] sm:$0xff]  ;;  %v5820_v43 = vld [vmem:[#allocation22_spill] sm:$0xff]  ;;  %v5821_v18 = vld [vmem:[#allocation23_spill] sm:$0xff] }
  0xb4   :  { %v884_v30 = vsel %vm732_vm3, %v882_v0, %v883_v21  ;;  %v887_v29 = vsel %vm5809_vm11, %v873_v20, %v874_v52  ;;  %v889_v37 = vsel %vm728_vm12, %v875_v33, %v876_v53  ;;  %v890_v40 = vsel %vm730_vm0, %v877_v12, %v878_v62  ;;  %v5812_v52 = vld [vmem:[#allocation14_spill] sm:$0xff]  ;;  %v5813_v53 = vld [vmem:[#allocation15_spill] sm:$0xff]  ;;  %v5819_v32 = vld [vmem:[#allocation21_spill] sm:$0xff] }
  0xb5   :  { %v885_v58 = vsel %vm734_vm8, %v881_v14, %v884_v30  ;;  %v888_v46 = vsel %vm726_vm2, %v886_v36, %v887_v29  ;;  %v898_v5 = vmul.f32 %v749_v19, %v5810_v41  ;;  %v891_v27 = vsel %vm732_vm3, %v889_v37, %v890_v40  ;;  %v5822_v56 = vld [vmem:[#allocation24_spill] sm:$0xff]  ;;  %v5824_v33 = vld [vmem:[#allocation26_spill] sm:$0xff]  ;;  %v5825_v62 = vld [vmem:[#allocation27_spill] sm:$0xff] }
  0xb6   :  { %895 = vst [vmem:[#allocation4] ss:$2 sm:$0xff] %v885_v58  ;;  %v899_v16 = vmul.f32 %v750_v55, %v5811_v39  ;;  %v900_v20 = vmul.f32 %v751_v10, %v5812_v52  ;;  %v901_v45 = vmul.f32 %v752_v42, %v5813_v53  ;;  %v892_v12 = vsel %vm734_vm8, %v888_v46, %v891_v27  ;;  %v5817_v10 = vld [vmem:[#allocation19_spill] sm:$0xff]  ;;  %v5818_v42 = vld [vmem:[#allocation20_spill] sm:$0xff] }
  0xb7   :  { %v902_v19 = vmul.f32 %v753_v1, %v5814_v57  ;;  %v903_v2 = vmul.f32 %v754_v3, %v5815_v60  ;;  %v904_v55 = vmul.f32 %v755_v22, %v5816_v28  ;;  %897 = vst [vmem:[#allocation4 + $0x10] ss:$2 sm:$0xff] %v892_v12  ;;  %v905_v44 = vmul.f32 %v756_v23, %v5817_v10  ;;  %v5823_v23 = vld [vmem:[#allocation25_spill] sm:$0xff] }
  0xb8   :  { %v906_v47 = vmul.f32 %v757_v59, %v5818_v42  ;;  %v907_v1 = vmul.f32 %v758_v48, %v5819_v32  ;;  %v908_v3 = vmul.f32 %v759_v26, %v5820_v43  ;;  %v909_v22 = vmul.f32 %v760_v49, %v5821_v18 }
  0xb9   :  { %v910_v31 = vmul.f32 %v761_v7, %v5822_v56  ;;  %v911_v59 = vmul.f32 %v762_v50, %v5823_v23  ;;  %v912_v48 = vmul.f32 %v763_v61, %v5824_v33  ;;  %v913_v26 = vmul.f32 %v764_v51, %v5825_v62 }
  0xba   :  { %v950_v63 = vadd.f32 %v898_v5, %v801_v4  ;;  %v951_v49 = vadd.f32 %v899_v16, %v802_v15  ;;  %v952_v7 = vadd.f32 %v900_v20, %v803_v38  ;;  %v953_v50 = vadd.f32 %v901_v45, %v804_v8 }
  0xbb   :  { %v954_v0 = vadd.f32 %v902_v19, %v805_v11  ;;  %v955_v61 = vadd.f32 %v903_v2, %v806_v35  ;;  %v956_v54 = vadd.f32 %v904_v55, %v807_v6  ;;  %v957_v4 = vadd.f32 %v905_v44, %v808_v25 }
  0xbc   :  { %v958_v15 = vadd.f32 %v906_v47, %v809_v9  ;;  %v5826_v38 = vperm.slane %v5418_v24, 1  ;;  %v5827_v8 = vperm.slane %v5418_v24, 2  ;;  %v5828_v11 = vperm.slane %v5418_v24, 3 }
  0xbd   :  { %v5829_v35 = vperm.slane %v5418_v24, 4  ;;  %v5830_v6 = vperm.slane %v5418_v24, 5  ;;  %v964_v34 = vadd.f32 %v912_v48, %v815_v13  ;;  %v965_v25 = vadd.f32 %v913_v26, %v816_v17 }
  0xbe   :  { %v959_v51 = vadd.f32 %v907_v1, %v5826_v38  ;;  %v960_v21 = vadd.f32 %v908_v3, %v5827_v8  ;;  %v961_v36 = vadd.f32 %v909_v22, %v5828_v11  ;;  %v982_v9 = vrot.slane %v951_v49, 7 }
  0xbf   :  { %v962_v14 = vadd.f32 %v910_v31, %v5829_v35  ;;  %v963_v30 = vadd.f32 %v911_v59, %v5830_v6  ;;  %v983_v29 = vrot.slane %v952_v7, 6  ;;  %v984_v37 = vrot.slane %v953_v50, 5 }
  0xc0   :  { %v985_v58 = vrot.slane %v954_v0, 4  ;;  %v986_v46 = vrot.slane %v955_v61, 3  ;;  %v987_v40 = vrot.slane %v956_v54, 2  ;;  %v988_v41 = vrot.slane %v957_v4, 1 }
  0xc1   :  { %v989_v5 = vrot.slane %v959_v51, 7  ;;  %v990_v27 = vrot.slane %v960_v21, 6  ;;  %v991_v39 = vrot.slane %v961_v36, 5  ;;  %v992_v16 = vrot.slane %v962_v14, 4 }
  0xc2   :  { %v993_v52 = vrot.slane %v963_v30, 3  ;;  %v994_v20 = vrot.slane %v964_v34, 2  ;;  %v995_v53 = vrot.slane %v965_v25, 1  ;;  %v996_v45 = vsel %vm5831_vm10, %v950_v63, %v982_v9 }
  0xc3   :  { %v997_v13 = vsel %vm5832_vm6, %v983_v29, %v984_v37  ;;  %v999_v24 = vsel %vm728_vm12, %v985_v58, %v986_v46  ;;  %v1000_v17 = vsel %vm730_vm0, %v987_v40, %v988_v41  ;;  %v1003_v12 = vsel %vm5833_vm15, %v958_v15, %v989_v5 }
  0xc4   :  { %v998_v57 = vsel %vm726_vm2, %v996_v45, %v997_v13  ;;  %v1001_v19 = vsel %vm732_vm3, %v999_v24, %v1000_v17  ;;  %v1004_v60 = vsel %vm5834_vm5, %v990_v27, %v991_v39  ;;  %v1006_v2 = vsel %vm728_vm12, %v992_v16, %v993_v52 }
  0xc5   :  { %v1002_v28 = vsel %vm734_vm8, %v998_v57, %v1001_v19  ;;  %v1005_v55 = vsel %vm726_vm2, %v1003_v12, %v1004_v60  ;;  %v1007_v10 = vsel %vm730_vm0, %v994_v20, %v995_v53 }
  0xc6   :  { %v1008_v44 = vsel %vm732_vm3, %v1006_v2, %v1007_v10  ;;  %1013 = vst [vmem:[#allocation4 + $0x1] ss:$2 sm:$0xff] %v1002_v28 }
  0xc7   :  { %v1009_v42 = vsel %vm734_vm8, %v1005_v55, %v1008_v44 }
  0xc8   :  { %1015 = vst [vmem:[#allocation4 + $0x11] ss:$2 sm:$0xff] %v1009_v42 }
  0xcd   :  { %v1016_v47 = vld [vmem:[#allocation4] sm:$0xff]  ;;  %v1017_v32 = vld [vmem:[#allocation4 + $0x8] sm:$0xff] }
  0xcf   :  { %v5585_v1 = vld [vmem:[#allocation4 + $0x10] sm:$0xff]  ;;  %v5587_v43 = vld [vmem:[#allocation4 + $0x18] sm:$0xff] }
  0xd0   :  { %4434 = dma.done.wait [#allocation3], 32768 }
  0xd1   :  { %4435 = vsyncadd [#allocation3], 4294934528  ;;  %1028 = vst [vmem:[#allocation1] ss:$4 sm:$0xff] %v1016_v47  ;;  %v3129_v3 = vld [vmem:[#allocation2 + $0x70] sm:$0xf] }
  0xd2   :  { %1030 = vst [vmem:[#allocation1 + $0x20] ss:$4 sm:$0xff] %v1017_v32  ;;  %v4111_v18 = vld [vmem:[#allocation2 + $0x74] sm:$0xf0]  ;;  %v3193_v22 = vld [vmem:[#allocation2 + $0xf0] sm:$0xf] }
  0xd3   :  { %v3130_v56 = vor.u32 %v4111_v18, %v3129_v3  ;;  %v4127_v31 = vld [vmem:[#allocation2 + $0xf4] sm:$0xf0]  ;;  %v3257_v23 = vld [vmem:[#allocation2 + $0x170] sm:$0xf]  ;;  %v3121_v63 = vld [vmem:[#allocation2 + $0x60] sm:$0xf] }
  0xd4   :  { %v4143_v59 = vld [vmem:[#allocation2 + $0x174] sm:$0xf0]  ;;  %v3194_v33 = vor.u32 %v4127_v31, %v3193_v22  ;;  %v3321_v62 = vld [vmem:[#allocation2 + $0x1f0] sm:$0xf]  ;;  %v4109_v7 = vld [vmem:[#allocation2 + $0x64] sm:$0xf0] }
  0xd5   :  { %v3258_v48 = vor.u32 %v4143_v59, %v3257_v23  ;;  %v4159_v26 = vld [vmem:[#allocation2 + $0x1f4] sm:$0xf0]  ;;  %2623 = vmatpush.bf16.msra.mxu0 %v3130_v56  ;;  %v3185_v50 = vld [vmem:[#allocation2 + $0xe0] sm:$0xf]  ;;  %v4125_v0 = vld [vmem:[#allocation2 + $0xe4] sm:$0xf0]  ;;  %v3122_v61 = vor.u32 %v4109_v7, %v3121_v63 }
  0xd6   :  { %v3322_v49 = vor.u32 %v4159_v26, %v3321_v62  ;;  %2636 = vmatpush.bf16.msra.mxu1 %v3194_v33  ;;  %v3186_v54 = vor.u32 %v4125_v0, %v3185_v50  ;;  %v3249_v4 = vld [vmem:[#allocation2 + $0x160] sm:$0xf]  ;;  %v4141_v15 = vld [vmem:[#allocation2 + $0x164] sm:$0xf0]  ;;  %v3113_v21 = vld [vmem:[#allocation2 + $0x50] sm:$0xf] }
  0xd7   :  { %2649 = vmatpush.bf16.msra.mxu2 %v3258_v48  ;;  %v3313_v38 = vld [vmem:[#allocation2 + $0x1e0] sm:$0xf]  ;;  %v3250_v51 = vor.u32 %v4141_v15, %v3249_v4  ;;  %v4157_v8 = vld [vmem:[#allocation2 + $0x1e4] sm:$0xf0]  ;;  %v4107_v11 = vld [vmem:[#allocation2 + $0x54] sm:$0xf0] }
  0xd8   :  { %2662 = vmatpush.bf16.msra.mxu3 %v3322_v49  ;;  %v3314_v36 = vor.u32 %v4157_v8, %v3313_v38  ;;  %v3177_v35 = vld [vmem:[#allocation2 + $0xd0] sm:$0xf]  ;;  %v4123_v14 = vld [vmem:[#allocation2 + $0xd4] sm:$0xf0]  ;;  %v3114_v30 = vor.u32 %v4107_v11, %v3113_v21  ;;  %v3105_v58 = vld [vmem:[#allocation2 + $0x40] sm:$0xf] }
  0xd9   :  { %v3241_v6 = vld [vmem:[#allocation2 + $0x150] sm:$0xf]  ;;  %2624 = vmatpush.bf16.msra.mxu0 %v3122_v61  ;;  %v4139_v34 = vld [vmem:[#allocation2 + $0x154] sm:$0xf0]  ;;  %v3178_v29 = vor.u32 %v4123_v14, %v3177_v35  ;;  %v4105_v46 = vld [vmem:[#allocation2 + $0x44] sm:$0xf0] }
  0xda   :  { %v3305_v25 = vld [vmem:[#allocation2 + $0x1d0] sm:$0xf]  ;;  %v4155_v9 = vld [vmem:[#allocation2 + $0x1d4] sm:$0xf0]  ;;  %2637 = vmatpush.bf16.msra.mxu1 %v3186_v54  ;;  %v3242_v37 = vor.u32 %v4139_v34, %v3241_v6  ;;  %v3169_v40 = vld [vmem:[#allocation2 + $0xc0] sm:$0xf]  ;;  %v3106_v20 = vor.u32 %v4105_v46, %v3105_v58 }
  0xdb   :  { %2650 = vmatpush.bf16.msra.mxu2 %v3250_v51  ;;  %v3306_v41 = vor.u32 %v4155_v9, %v3305_v25  ;;  %v4121_v5 = vld [vmem:[#allocation2 + $0xc4] sm:$0xf0]  ;;  %v3233_v27 = vld [vmem:[#allocation2 + $0x140] sm:$0xf]  ;;  %v3097_v13 = vld [vmem:[#allocation2 + $0x30] sm:$0xf] }
  0xdc   :  { %2663 = vmatpush.bf16.msra.mxu3 %v3314_v36  ;;  %v4137_v39 = vld [vmem:[#allocation2 + $0x144] sm:$0xf0]  ;;  %v3297_v16 = vld [vmem:[#allocation2 + $0x1c0] sm:$0xf]  ;;  %v3170_v53 = vor.u32 %v4121_v5, %v3169_v40  ;;  %v4103_v24 = vld [vmem:[#allocation2 + $0x34] sm:$0xf0] }
  0xdd   :  { %v4153_v52 = vld [vmem:[#allocation2 + $0x1c4] sm:$0xf0]  ;;  %2625 = vmatpush.bf16.msra.mxu0 %v3114_v30  ;;  %v3234_v45 = vor.u32 %v4137_v39, %v3233_v27  ;;  %v3161_v17 = vld [vmem:[#allocation2 + $0xb0] sm:$0xf]  ;;  %v4119_v57 = vld [vmem:[#allocation2 + $0xb4] sm:$0xf0]  ;;  %v3098_v55 = vor.u32 %v4103_v24, %v3097_v13 }
  0xde   :  { %2638 = vmatpush.bf16.msra.mxu1 %v3178_v29  ;;  %v3298_v12 = vor.u32 %v4153_v52, %v3297_v16  ;;  %v3225_v19 = vld [vmem:[#allocation2 + $0x130] sm:$0xf]  ;;  %v4135_v60 = vld [vmem:[#allocation2 + $0x134] sm:$0xf0]  ;;  %v3162_v10 = vor.u32 %v4119_v57, %v3161_v17  ;;  %v3089_v42 = vld [vmem:[#allocation2 + $0x20] sm:$0xf] }
  0xdf   :  { %2651 = vmatpush.bf16.msra.mxu2 %v3242_v37  ;;  %v3289_v2 = vld [vmem:[#allocation2 + $0x1b0] sm:$0xf]  ;;  %v4151_v28 = vld [vmem:[#allocation2 + $0x1b4] sm:$0xf0]  ;;  %v3226_v44 = vor.u32 %v4135_v60, %v3225_v19  ;;  %v4101_v47 = vld [vmem:[#allocation2 + $0x24] sm:$0xf0] }
  0xe0   :  { %2664 = vmatpush.bf16.msra.mxu3 %v3306_v41  ;;  %v3153_v32 = vld [vmem:[#allocation2 + $0xa0] sm:$0xf]  ;;  %v3290_v3 = vor.u32 %v4151_v28, %v3289_v2  ;;  %v4117_v18 = vld [vmem:[#allocation2 + $0xa4] sm:$0xf0]  ;;  %v3090_v59 = vor.u32 %v4101_v47, %v3089_v42  ;;  %v3081_v62 = vld [vmem:[#allocation2 + $0x10] sm:$0xf] }
  0xe1   :  { %2626 = vmatpush.bf16.msra.mxu0 %v3106_v20  ;;  %v3217_v22 = vld [vmem:[#allocation2 + $0x120] sm:$0xf]  ;;  %v4133_v56 = vld [vmem:[#allocation2 + $0x124] sm:$0xf0]  ;;  %v3154_v33 = vor.u32 %v4117_v18, %v3153_v32  ;;  %v4099_v26 = vld [vmem:[#allocation2 + $0x14] sm:$0xf0] }
  0xe2   :  { %2639 = vmatpush.bf16.msra.mxu1 %v3170_v53  ;;  %v3281_v31 = vld [vmem:[#allocation2 + $0x1a0] sm:$0xf]  ;;  %v4149_v23 = vld [vmem:[#allocation2 + $0x1a4] sm:$0xf0]  ;;  %v3218_v48 = vor.u32 %v4133_v56, %v3217_v22  ;;  %v3145_v63 = vld [vmem:[#allocation2 + $0x90] sm:$0xf]  ;;  %v3082_v4 = vor.u32 %v4099_v26, %v3081_v62 }
  0xe3   :  { %2652 = vmatpush.bf16.msra.mxu2 %v3234_v45  ;;  %v3282_v49 = vor.u32 %v4149_v23, %v3281_v31  ;;  %v4115_v7 = vld [vmem:[#allocation2 + $0x94] sm:$0xf0]  ;;  %v3209_v50 = vld [vmem:[#allocation2 + $0x110] sm:$0xf]  ;;  %v3073_v15 = vld [vmem:[#allocation2] sm:$0xf] }
  0xe4   :  { %2665 = vmatpush.bf16.msra.mxu3 %v3298_v12  ;;  %v4131_v0 = vld [vmem:[#allocation2 + $0x114] sm:$0xf0]  ;;  %v3273_v61 = vld [vmem:[#allocation2 + $0x190] sm:$0xf]  ;;  %v4097_v38 = vld [vmem:[#allocation2 + $0x4] sm:$0xf0]  ;;  %v3146_v51 = vor.u32 %v4115_v7, %v3145_v63 }
  0xe5   :  { %2627 = vmatpush.bf16.msra.mxu0 %v3098_v55  ;;  %v4147_v54 = vld [vmem:[#allocation2 + $0x194] sm:$0xf0]  ;;  %v3210_v8 = vor.u32 %v4131_v0, %v3209_v50  ;;  %v3137_v21 = vld [vmem:[#allocation2 + $0x80] sm:$0xf]  ;;  %v4113_v11 = vld [vmem:[#allocation2 + $0x84] sm:$0xf0]  ;;  %v3074_v29 = vor.u32 %v4097_v38, %v3073_v15 }
  0xe6   :  { %2640 = vmatpush.bf16.msra.mxu1 %v3162_v10  ;;  %v3201_v36 = vld [vmem:[#allocation2 + $0x100] sm:$0xf]  ;;  %v3274_v35 = vor.u32 %v4147_v54, %v3273_v61  ;;  %v4129_v14 = vld [vmem:[#allocation2 + $0x104] sm:$0xf0]  ;;  %v3385_v34 = vld [vmem:[#allocation2 + $0x270] sm:$0xf]  ;;  %v3138_v40 = vor.u32 %v4113_v11, %v3137_v21 }
  0xe7   :  { %2653 = vmatpush.bf16.msra.mxu2 %v3226_v44  ;;  %v3265_v6 = vld [vmem:[#allocation2 + $0x180] sm:$0xf]  ;;  %v4145_v30 = vld [vmem:[#allocation2 + $0x184] sm:$0xf0]  ;;  %v4175_v25 = vld [vmem:[#allocation2 + $0x274] sm:$0xf0]  ;;  %v3202_v41 = vor.u32 %v4129_v14, %v3201_v36 }
  0xe8   :  { %2666 = vmatpush.bf16.msra.mxu3 %v3290_v3  ;;  %v3449_v9 = vld [vmem:[#allocation2 + $0x2f0] sm:$0xf]  ;;  %v4191_v37 = vld [vmem:[#allocation2 + $0x2f4] sm:$0xf0]  ;;  %v3266_v39 = vor.u32 %v4145_v30, %v3265_v6  ;;  %v3386_v16 = vor.u32 %v4175_v25, %v3385_v34  ;;  %v3377_v53 = vld [vmem:[#allocation2 + $0x260] sm:$0xf] }
  0xe9   :  { %2628 = vmatpush.bf16.msra.mxu0 %v3090_v59  ;;  %v3513_v58 = vld [vmem:[#allocation2 + $0x370] sm:$0xf]  ;;  %v4207_v46 = vld [vmem:[#allocation2 + $0x374] sm:$0xf0]  ;;  %v3450_v52 = vor.u32 %v4191_v37, %v3449_v9  ;;  %v4173_v45 = vld [vmem:[#allocation2 + $0x264] sm:$0xf0] }
  0xea   :  { %2641 = vmatpush.bf16.msra.mxu1 %v3154_v33  ;;  %v3577_v5 = vld [vmem:[#allocation2 + $0x3f0] sm:$0xf]  ;;  %v4223_v27 = vld [vmem:[#allocation2 + $0x3f4] sm:$0xf0]  ;;  %v3514_v20 = vor.u32 %v4207_v46, %v3513_v58  ;;  %v3441_v13 = vld [vmem:[#allocation2 + $0x2e0] sm:$0xf]  ;;  %v3378_v2 = vor.u32 %v4173_v45, %v3377_v53 }
  0xeb   :  { %2654 = vmatpush.bf16.msra.mxu2 %v3218_v48  ;;  %v3578_v24 = vor.u32 %v4223_v27, %v3577_v5  ;;  %v4189_v17 = vld [vmem:[#allocation2 + $0x2e4] sm:$0xf0]  ;;  %v3505_v12 = vld [vmem:[#allocation2 + $0x360] sm:$0xf]  ;;  %v3369_v28 = vld [vmem:[#allocation2 + $0x250] sm:$0xf] }
  0xec   :  { %2667 = vmatpush.bf16.msra.mxu3 %v3282_v49  ;;  %v4205_v57 = vld [vmem:[#allocation2 + $0x364] sm:$0xf0]  ;;  %v3569_v19 = vld [vmem:[#allocation2 + $0x3e0] sm:$0xf]  ;;  %v4171_v55 = vld [vmem:[#allocation2 + $0x254] sm:$0xf0]  ;;  %v3442_v44 = vor.u32 %v4189_v17, %v3441_v13 }
  0xed   :  { %2629 = vmatpush.bf16.msra.mxu0 %v3082_v4  ;;  %v4221_v60 = vld [vmem:[#allocation2 + $0x3e4] sm:$0xf0]  ;;  %v3433_v10 = vld [vmem:[#allocation2 + $0x2d0] sm:$0xf]  ;;  %v3506_v42 = vor.u32 %v4205_v57, %v3505_v12  ;;  %v4187_v47 = vld [vmem:[#allocation2 + $0x2d4] sm:$0xf0]  ;;  %v3370_v48 = vor.u32 %v4171_v55, %v3369_v28 }
  0xee   :  { %2642 = vmatpush.bf16.msra.mxu1 %v3146_v51  ;;  %v3497_v32 = vld [vmem:[#allocation2 + $0x350] sm:$0xf]  ;;  %v4203_v3 = vld [vmem:[#allocation2 + $0x354] sm:$0xf0]  ;;  %v3570_v18 = vor.u32 %v4221_v60, %v3569_v19  ;;  %v3361_v23 = vld [vmem:[#allocation2 + $0x240] sm:$0xf]  ;;  %v3434_v49 = vor.u32 %v4187_v47, %v3433_v10 }
  0xef   :  { %2655 = vmatpush.bf16.msra.mxu2 %v3210_v8  ;;  %v3561_v22 = vld [vmem:[#allocation2 + $0x3d0] sm:$0xf]  ;;  %v1033_v56 = vld.sshfl [vmem:[#allocation1 + $0x10] sm:$0xff pattern:$0x73625140]  ;;  %v3498_v7 = vor.u32 %v4203_v3, %v3497_v32  ;;  %s3052_s19 = sshll.u32 %s5680_s5, 4  ;;  %s3053_s19 = int_to_ptr.hbm [resolvable:$true] %s3052_s19 }
  0xf0   :  { %2668 = vmatpush.bf16.msra.mxu3 %v3274_v35  ;;  %v4219_v31 = vld [vmem:[#allocation2 + $0x3d4] sm:$0xf0]  ;;  %v4169_v59 = vld [vmem:[#allocation2 + $0x244] sm:$0xf0]  ;;  %v5589_v33 = vpack.c.bf16 %v1033_v56, %v1033_v56  ;;  %v3425_v62 = vld [vmem:[#allocation2 + $0x2c0] sm:$0xf] }
  0xf1   :  { %2630 = vmatpush.bf16.msra.mxu0 %v3074_v29  ;;  %v4185_v26 = vld [vmem:[#allocation2 + $0x2c4] sm:$0xf0]  ;;  %v3489_v63 = vld [vmem:[#allocation2 + $0x340] sm:$0xf]  ;;  %v3562_v61 = vor.u32 %v4219_v31, %v3561_v22  ;;  %v3362_v11 = vor.u32 %v4169_v59, %v3361_v23  ;;  %v3353_v14 = vld [vmem:[#allocation2 + $0x230] sm:$0xf] }
  0xf2   :  { %2643 = vmatpush.bf16.msra.mxu1 %v3138_v40  ;;  %v1031_v50 = vld.sshfl [vmem:[#allocation1] sm:$0xff pattern:$0x73625140]  ;;  %v1034_v0 = vld.sshfl [vmem:[#allocation1 + $0x18] sm:$0xff pattern:$0x73625140]  ;;  %v3426_v36 = vor.u32 %v4185_v26, %v3425_v62 }
  0xf3   :  { %2656 = vmatpush.bf16.msra.mxu2 %v3202_v41  ;;  %v4201_v54 = vld [vmem:[#allocation2 + $0x344] sm:$0xf0]  ;;  %v5592_v4 = vpack.c.bf16 %v1031_v50, %v1031_v50  ;;  %v5594_v15 = vpack.c.bf16 %v1034_v0, %v1034_v0  ;;  %v1032_v38 = vld.sshfl [vmem:[#allocation1 + $0x8] sm:$0xff pattern:$0x73625140] }
  0xf4   :  { %2669 = vmatpush.bf16.msra.mxu3 %v3266_v39  ;;  %v3553_v51 = vld [vmem:[#allocation2 + $0x3c0] sm:$0xf]  ;;  %v4217_v8 = vld [vmem:[#allocation2 + $0x3c4] sm:$0xf0]  ;;  %1039 = vst [vmem:[#allocation1] ss:$4 sm:$0xff] %v5585_v1  ;;  %v5597_v21 = vpack.c.bf16 %v1032_v38, %v1032_v38  ;;  %v3490_v35 = vor.u32 %v4201_v54, %v3489_v63 }
  0xf5   :  { %2675 = vmatpush.bf16.msrb.mxu0 %v3386_v16  ;;  %v4167_v6 = vld [vmem:[#allocation2 + $0x234] sm:$0xf0]  ;;  %v3417_v30 = vld [vmem:[#allocation2 + $0x2b0] sm:$0xf]  ;;  %v3554_v34 = vor.u32 %v4217_v8, %v3553_v51  ;;  %v3345_v41 = vld [vmem:[#allocation2 + $0x220] sm:$0xf] }
  0xf6   :  { %2688 = vmatpush.bf16.msrb.mxu1 %v3450_v52  ;;  %2657 = vmatmul.bf16.vlgmr.msra.gmra.mxu2 %v5589_v33  ;;  %v4183_v25 = vld [vmem:[#allocation2 + $0x2b4] sm:$0xf0]  ;;  %v3481_v9 = vld [vmem:[#allocation2 + $0x330] sm:$0xf]  ;;  %v3354_v58 = vor.u32 %v4167_v6, %v3353_v14  ;;  %v4165_v5 = vld [vmem:[#allocation2 + $0x224] sm:$0xf0] }
  0xf7   :  { %2701 = vmatpush.bf16.msrb.mxu2 %v3514_v20  ;;  %2670 = vmatmul.bf16.vlgmr.msra.gmra.mxu3 %v5594_v15  ;;  %v4199_v29 = vld [vmem:[#allocation2 + $0x334] sm:$0xf0]  ;;  %v3545_v1 = vld [vmem:[#allocation2 + $0x3b0] sm:$0xf]  ;;  %v3418_v46 = vor.u32 %v4183_v25, %v3417_v30  ;;  %v3409_v27 = vld [vmem:[#allocation2 + $0x2a0] sm:$0xf]  ;;  %v3346_v13 = vor.u32 %v4165_v5, %v3345_v41 }
  0xf8   :  { %2714 = vmatpush.bf16.msrb.mxu3 %v3578_v24  ;;  %2631 = vmatmul.bf16.vlgmr.msra.gmra.mxu0 %v5592_v4  ;;  %v4215_v37 = vld [vmem:[#allocation2 + $0x3b4] sm:$0xf0]  ;;  %v3482_v40 = vor.u32 %v4199_v29, %v3481_v9  ;;  %v4181_v16 = vld [vmem:[#allocation2 + $0x2a4] sm:$0xf0]  ;;  %v3473_v52 = vld [vmem:[#allocation2 + $0x320] sm:$0xf] }
  0xf9   :  { %2676 = vmatpush.bf16.msrb.mxu0 %v3378_v2  ;;  %2644 = vmatmul.bf16.vlgmr.msra.gmra.mxu1 %v5597_v21  ;;  %v3546_v39 = vor.u32 %v4215_v37, %v3545_v1  ;;  %v4197_v20 = vld [vmem:[#allocation2 + $0x324] sm:$0xf0]  ;;  %v3537_v53 = vld [vmem:[#allocation2 + $0x3a0] sm:$0xf]  ;;  %v3337_v24 = vld [vmem:[#allocation2 + $0x210] sm:$0xf]  ;;  %v3410_v17 = vor.u32 %v4181_v16, %v3409_v27 }
  0xfa   :  { %2689 = vmatpush.bf16.msrb.mxu1 %v3442_v44  ;;  %v4213_v45 = vld [vmem:[#allocation2 + $0x3a4] sm:$0xf0]  ;;  %v3474_v12 = vor.u32 %v4197_v20, %v3473_v52  ;;  %v4163_v57 = vld [vmem:[#allocation2 + $0x214] sm:$0xf0]  ;;  %v3401_v19 = vld [vmem:[#allocation2 + $0x290] sm:$0xf] }
  0xfb   :  { %2702 = vmatpush.bf16.msrb.mxu2 %v3506_v42  ;;  %v4179_v60 = vld [vmem:[#allocation2 + $0x294] sm:$0xf0]  ;;  %v3538_v2 = vor.u32 %v4213_v45, %v3537_v53  ;;  %v3465_v28 = vld [vmem:[#allocation2 + $0x310] sm:$0xf]  ;;  %v3329_v42 = vld [vmem:[#allocation2 + $0x200] sm:$0xf]  ;;  %v3338_v32 = vor.u32 %v4163_v57, %v3337_v24 }
  0xfc   :  { %2715 = vmatpush.bf16.msrb.mxu3 %v3570_v18  ;;  %v4195_v55 = vld [vmem:[#allocation2 + $0x314] sm:$0xf0]  ;;  %v3529_v10 = vld [vmem:[#allocation2 + $0x390] sm:$0xf]  ;;  %v4161_v47 = vld [vmem:[#allocation2 + $0x204] sm:$0xf0]  ;;  %v3402_v31 = vor.u32 %v4179_v60, %v3401_v19 }
  0xfd   :  { %2677 = vmatpush.bf16.msrb.mxu0 %v3370_v48  ;;  %v4211_v44 = vld [vmem:[#allocation2 + $0x394] sm:$0xf0]  ;;  %v3393_v3 = vld [vmem:[#allocation2 + $0x280] sm:$0xf]  ;;  %v4177_v18 = vld [vmem:[#allocation2 + $0x284] sm:$0xf0]  ;;  %v3466_v23 = vor.u32 %v4195_v55, %v3465_v28  ;;  %v3330_v54 = vor.u32 %v4161_v47, %v3329_v42 }
  0xfe   :  { %2690 = vmatpush.bf16.msrb.mxu1 %v3434_v49  ;;  %v3457_v22 = vld [vmem:[#allocation2 + $0x300] sm:$0xf]  ;;  %v4193_v56 = vld [vmem:[#allocation2 + $0x304] sm:$0xf0]  ;;  %v3641_v62 = vld [vmem:[#allocation2 + $0x470] sm:$0xf]  ;;  %v3530_v49 = vor.u32 %v4211_v44, %v3529_v10 }
  0xff   :  { %2703 = vmatpush.bf16.msrb.mxu2 %v3498_v7  ;;  %v3521_v59 = vld [vmem:[#allocation2 + $0x380] sm:$0xf]  ;;  %v4209_v48 = vld [vmem:[#allocation2 + $0x384] sm:$0xf0]  ;;  %v4239_v0 = vld [vmem:[#allocation2 + $0x474] sm:$0xf0] }
 0x100   :  { %2716 = vmatpush.bf16.msrb.mxu3 %v3562_v61  ;;  %v1037_v26 = vld.sshfl [vmem:[#allocation1 + $0x30] sm:$0xff pattern:$0x73625140]  ;;  %v1035_v63 = vld.sshfl [vmem:[#allocation1 + $0x20] sm:$0xff pattern:$0x73625140]  ;;  %v3522_v6 = vor.u32 %v4209_v48, %v3521_v59  ;;  %v3642_v30 = vor.u32 %v4239_v0, %v3641_v62 }
 0x101   :  { %2678 = vmatpush.bf16.msrb.mxu0 %v3362_v11  ;;  %v1038_v7 = vld.sshfl [vmem:[#allocation1 + $0x38] sm:$0xff pattern:$0x73625140]  ;;  %v1036_v50 = vld.sshfl [vmem:[#allocation1 + $0x28] sm:$0xff pattern:$0x73625140]  ;;  %v3394_v11 = vor.u32 %v4177_v18, %v3393_v3  ;;  %v5605_v27 = vpack.c.bf16 %v1035_v63, %v1035_v63 }
 0x102   :  { %2691 = vmatpush.bf16.msrb.mxu1 %v3426_v36  ;;  %v3705_v61 = vld [vmem:[#allocation2 + $0x4f0] sm:$0xf]  ;;  %1040 = vst [vmem:[#allocation1 + $0x20] ss:$4 sm:$0xff] %v5587_v43  ;;  %v4255_v38 = vld [vmem:[#allocation2 + $0x4f4] sm:$0xf0]  ;;  %v3458_v36 = vor.u32 %v4193_v56, %v3457_v22  ;;  %v5609_v52 = vpack.c.bf16 %v1036_v50, %v1036_v50 }
 0x103   :  { %2704 = vmatpush.bf16.msrb.mxu2 %v3490_v35  ;;  %v3769_v51 = vld [vmem:[#allocation2 + $0x570] sm:$0xf]  ;;  %v4271_v8 = vld [vmem:[#allocation2 + $0x574] sm:$0xf0]  ;;  %v3633_v9 = vld [vmem:[#allocation2 + $0x460] sm:$0xf] }
 0x104   :  { %2717 = vmatpush.bf16.msrb.mxu3 %v3554_v34  ;;  %v3833_v35 = vld [vmem:[#allocation2 + $0x5f0] sm:$0xf]  ;;  %v4287_v14 = vld [vmem:[#allocation2 + $0x5f4] sm:$0xf0]  ;;  %v3706_v34 = vor.u32 %v4255_v38, %v3705_v61  ;;  %v3770_v25 = vor.u32 %v4271_v8, %v3769_v51  ;;  %v4237_v29 = vld [vmem:[#allocation2 + $0x464] sm:$0xf0] }
 0x105   :  { %2679 = vmatpush.bf16.msrb.mxu0 %v3354_v58  ;;  %v3697_v1 = vld [vmem:[#allocation2 + $0x4e0] sm:$0xf]  ;;  %v3834_v43 = vor.u32 %v4287_v14, %v3833_v35  ;;  %v4253_v37 = vld [vmem:[#allocation2 + $0x4e4] sm:$0xf0]  ;;  %v3634_v16 = vor.u32 %v4237_v29, %v3633_v9  ;;  %v3625_v45 = vld [vmem:[#allocation2 + $0x450] sm:$0xf] }
 0x106   :  { %2692 = vmatpush.bf16.msrb.mxu1 %v3418_v46  ;;  %v3761_v58 = vld [vmem:[#allocation2 + $0x560] sm:$0xf]  ;;  %v4269_v46 = vld [vmem:[#allocation2 + $0x564] sm:$0xf0]  ;;  %v3698_v20 = vor.u32 %v4253_v37, %v3697_v1  ;;  %v3689_v24 = vld [vmem:[#allocation2 + $0x4d0] sm:$0xf] }
 0x107   :  { %2705 = vmatpush.bf16.msrb.mxu2 %v3482_v40  ;;  %v5603_v40 = vpack.c.bf16 %v1037_v26, %v1037_v26  ;;  %v3825_v41 = vld [vmem:[#allocation2 + $0x5e0] sm:$0xf]  ;;  %v4285_v5 = vld [vmem:[#allocation2 + $0x5e4] sm:$0xf0]  ;;  %v3762_v53 = vor.u32 %v4269_v46, %v3761_v58  ;;  %v3753_v57 = vld [vmem:[#allocation2 + $0x550] sm:$0xf] }
 0x108   :  { %2718 = vmatpush.bf16.msrb.mxu3 %v3546_v39  ;;  %v5607_v39 = vpack.c.bf16 %v1038_v7, %v1038_v7  ;;  %v4267_v19 = vld [vmem:[#allocation2 + $0x554] sm:$0xf0]  ;;  %v3817_v60 = vld [vmem:[#allocation2 + $0x5d0] sm:$0xf]  ;;  %v3617_v44 = vld [vmem:[#allocation2 + $0x440] sm:$0xf] }
 0x109   :  { %2680 = vmatpush.bf16.msrb.mxu0 %v3346_v13  ;;  %v4235_v13 = vld [vmem:[#allocation2 + $0x454] sm:$0xf0]  ;;  %v3754_v10 = vor.u32 %v4267_v19, %v3753_v57  ;;  %v4233_v42 = vld [vmem:[#allocation2 + $0x444] sm:$0xf0]  ;;  %v3681_v47 = vld [vmem:[#allocation2 + $0x4c0] sm:$0xf] }
 0x10a   :  { %2693 = vmatpush.bf16.msrb.mxu1 %v3410_v17  ;;  %v3826_v17 = vor.u32 %v4285_v5, %v3825_v41  ;;  %v3626_v28 = vor.u32 %v4235_v13, %v3625_v45  ;;  %v4249_v3 = vld [vmem:[#allocation2 + $0x4c4] sm:$0xf0]  ;;  %v3745_v18 = vld [vmem:[#allocation2 + $0x540] sm:$0xf]  ;;  %v3609_v62 = vld [vmem:[#allocation2 + $0x430] sm:$0xf] }
 0x10b   :  { %2706 = vmatpush.bf16.msrb.mxu2 %v3474_v12  ;;  %v4251_v12 = vld [vmem:[#allocation2 + $0x4d4] sm:$0xf0]  ;;  %v4265_v22 = vld [vmem:[#allocation2 + $0x544] sm:$0xf0]  ;;  %v3809_v56 = vld [vmem:[#allocation2 + $0x5c0] sm:$0xf]  ;;  %v3682_v59 = vor.u32 %v4249_v3, %v3681_v47 }
 0x10c   :  { %2719 = vmatpush.bf16.msrb.mxu3 %v3538_v2  ;;  %v4283_v2 = vld [vmem:[#allocation2 + $0x5d4] sm:$0xf0]  ;;  %v3690_v55 = vor.u32 %v4251_v12, %v3689_v24  ;;  %v3746_v48 = vor.u32 %v4265_v22, %v3745_v18  ;;  %v3673_v63 = vld [vmem:[#allocation2 + $0x4b0] sm:$0xf]  ;;  %v3665_v35 = vld [vmem:[#allocation2 + $0x4a0] sm:$0xf] }
 0x10d   :  { %2681 = vmatpush.bf16.msrb.mxu0 %v3338_v32  ;;  %v3818_v32 = vor.u32 %v4283_v2, %v3817_v60  ;;  %v4231_v26 = vld [vmem:[#allocation2 + $0x434] sm:$0xf0]  ;;  %v3737_v50 = vld [vmem:[#allocation2 + $0x530] sm:$0xf]  ;;  %v4277_v9 = vld [vmem:[#allocation2 + $0x5a4] sm:$0xf0] }
 0x10e   :  { %2694 = vmatpush.bf16.msrb.mxu1 %v3402_v31  ;;  %v4281_v31 = vld [vmem:[#allocation2 + $0x5c4] sm:$0xf0]  ;;  %v4247_v7 = vld [vmem:[#allocation2 + $0x4b4] sm:$0xf0]  ;;  %v3801_v61 = vld [vmem:[#allocation2 + $0x5b0] sm:$0xf]  ;;  %v3610_v38 = vor.u32 %v4231_v26, %v3609_v62 }
 0x10f   :  { %2707 = vmatpush.bf16.msrb.mxu2 %v3466_v23  ;;  %v3618_v23 = vor.u32 %v4233_v42, %v3617_v44  ;;  %v4263_v0 = vld [vmem:[#allocation2 + $0x534] sm:$0xf0]  ;;  %v3674_v51 = vor.u32 %v4247_v7, %v3673_v63  ;;  %v3593_v37 = vld [vmem:[#allocation2 + $0x410] sm:$0xf]  ;;  %v3585_v13 = vld [vmem:[#allocation2 + $0x400] sm:$0xf] }
 0x110   :  { %2720 = vmatpush.bf16.msrb.mxu3 %v3530_v49  ;;  %v3810_v49 = vor.u32 %v4281_v31, %v3809_v56  ;;  %v3738_v8 = vor.u32 %v4263_v0, %v3737_v50  ;;  %v4227_v58 = vld [vmem:[#allocation2 + $0x414] sm:$0xf0]  ;;  %v3657_v46 = vld [vmem:[#allocation2 + $0x490] sm:$0xf]  ;;  %v3649_v12 = vld [vmem:[#allocation2 + $0x480] sm:$0xf] }
 0x111   :  { %2682 = vmatpush.bf16.msrb.mxu0 %v3330_v54  ;;  %v4279_v54 = vld [vmem:[#allocation2 + $0x5b4] sm:$0xf0]  ;;  %v3594_v24 = vor.u32 %v4227_v58, %v3593_v37  ;;  %v4241_v57 = vld [vmem:[#allocation2 + $0x484] sm:$0xf0]  ;;  %v3713_v2 = vld [vmem:[#allocation2 + $0x500] sm:$0xf] }
 0x112   :  { %2695 = vmatpush.bf16.msrb.mxu1 %v3394_v11  ;;  %v3601_v11 = vld [vmem:[#allocation2 + $0x420] sm:$0xf]  ;;  %v3802_v14 = vor.u32 %v4279_v54, %v3801_v61  ;;  %v4243_v5 = vld [vmem:[#allocation2 + $0x494] sm:$0xf0]  ;;  %v4273_v44 = vld [vmem:[#allocation2 + $0x584] sm:$0xf0] }
 0x113   :  { %2708 = vmatpush.bf16.msrb.mxu2 %v3458_v36  ;;  %v4229_v36 = vld [vmem:[#allocation2 + $0x424] sm:$0xf0]  ;;  %v4275_v45 = vld [vmem:[#allocation2 + $0x594] sm:$0xf0]  ;;  %v3658_v19 = vor.u32 %v4243_v5, %v3657_v46  ;;  %v3897_v42 = vld [vmem:[#allocation2 + $0x670] sm:$0xf] }
 0x114   :  { %2721 = vmatpush.bf16.msrb.mxu3 %v3522_v6  ;;  %2683 = vmatmul.bf16.vlgmr.msrb.gmra.mxu0 %v5605_v27  ;;  %v4245_v6 = vld [vmem:[#allocation2 + $0x4a4] sm:$0xf0]  ;;  %v3602_v29 = vor.u32 %v4229_v36, %v3601_v11  ;;  %v4303_v47 = vld [vmem:[#allocation2 + $0x674] sm:$0xf0]  ;;  %v4025_v18 = vld [vmem:[#allocation2 + $0x770] sm:$0xf] }
 0x115   :  { %2727 = vmatpush.bf16.msra.mxu0 %v3642_v30  ;;  %2696 = vmatmul.bf16.vlgmr.msrb.gmra.mxu1 %v5609_v52  ;;  %v3729_v30 = vld [vmem:[#allocation2 + $0x520] sm:$0xf]  ;;  %v3666_v1 = vor.u32 %v4245_v6, %v3665_v35  ;;  %v4319_v3 = vld [vmem:[#allocation2 + $0x6f4] sm:$0xf0]  ;;  %v4089_v31 = vld [vmem:[#allocation2 + $0x7f0] sm:$0xf] }
 0x116   :  { %2740 = vmatpush.bf16.msra.mxu1 %v3706_v34  ;;  %2709 = vmatmul.bf16.vlgmr.msrb.gmra.mxu2 %v5603_v40  ;;  %v4261_v34 = vld [vmem:[#allocation2 + $0x524] sm:$0xf0]  ;;  %v4335_v56 = vld [vmem:[#allocation2 + $0x774] sm:$0xf0]  ;;  %v3889_v54 = vld [vmem:[#allocation2 + $0x660] sm:$0xf] }
 0x117   :  { %2753 = vmatpush.bf16.msra.mxu2 %v3770_v25  ;;  %2722 = vmatmul.bf16.vlgmr.msrb.gmra.mxu3 %v5607_v39  ;;  %v3793_v25 = vld [vmem:[#allocation2 + $0x5a0] sm:$0xf]  ;;  %v1041_v62 = vld.sshfl [vmem:[#allocation1] sm:$0xff pattern:$0x73625140]  ;;  %v4026_v61 = vor.u32 %v4335_v56, %v4025_v18 }
 0x118   :  { %2766 = vmatpush.bf16.msra.mxu3 %v3834_v43  ;;  %v3730_v43 = vor.u32 %v4261_v34, %v3729_v30  ;;  %v3794_v41 = vor.u32 %v4277_v9, %v3793_v25  ;;  %v1043_v26 = vld.sshfl [vmem:[#allocation1 + $0x10] sm:$0xff pattern:$0x73625140]  ;;  %v1042_v7 = vld.sshfl [vmem:[#allocation1 + $0x8] sm:$0xff pattern:$0x73625140]  ;;  %v5615_v11 = vpack.c.bf16 %v1041_v62, %v1041_v62 }
 0x119   :  { %2728 = vmatpush.bf16.msra.mxu0 %v3634_v16  ;;  %v3721_v16 = vld [vmem:[#allocation2 + $0x510] sm:$0xf]  ;;  %v4317_v36 = vld [vmem:[#allocation2 + $0x6e4] sm:$0xf0]  ;;  %v4017_v35 = vld [vmem:[#allocation2 + $0x760] sm:$0xf]  ;;  %v5617_v6 = vpack.c.bf16 %v1043_v26, %v1043_v26  ;;  %v5619_v30 = vpack.c.bf16 %v1042_v7, %v1042_v7 }
 0x11a   :  { %2741 = vmatpush.bf16.msra.mxu1 %v3698_v20  ;;  %v4259_v20 = vld [vmem:[#allocation2 + $0x514] sm:$0xf0]  ;;  %v1044_v50 = vld.sshfl [vmem:[#allocation1 + $0x18] sm:$0xff pattern:$0x73625140] }
 0x11b   :  { %2754 = vmatpush.bf16.msra.mxu2 %v3762_v53  ;;  %v3785_v53 = vld [vmem:[#allocation2 + $0x590] sm:$0xf]  ;;  %v3722_v60 = vor.u32 %v4259_v20, %v3721_v16  ;;  %v4081_v34 = vld [vmem:[#allocation2 + $0x7e0] sm:$0xf]  ;;  %v4349_v25 = vld [vmem:[#allocation2 + $0x7e4] sm:$0xf0]  ;;  %v5621_v9 = vpack.c.bf16 %v1044_v50, %v1044_v50 }
 0x11c   :  { %2767 = vmatpush.bf16.msra.mxu3 %v3826_v17  ;;  %v4225_v17 = vld [vmem:[#allocation2 + $0x404] sm:$0xf0]  ;;  %v3881_v37 = vld [vmem:[#allocation2 + $0x650] sm:$0xf]  ;;  %v4299_v58 = vld [vmem:[#allocation2 + $0x654] sm:$0xf0] }
 0x11d   :  { %2729 = vmatpush.bf16.msra.mxu0 %v3626_v28  ;;  %v4257_v28 = vld [vmem:[#allocation2 + $0x504] sm:$0xf0]  ;;  %v3586_v22 = vor.u32 %v4225_v17, %v3585_v13  ;;  %v3945_v46 = vld [vmem:[#allocation2 + $0x6d0] sm:$0xf]  ;;  %v4315_v5 = vld [vmem:[#allocation2 + $0x6d4] sm:$0xf0]  ;;  %v3882_v13 = vor.u32 %v4299_v58, %v3881_v37 }
 0x11e   :  { %2742 = vmatpush.bf16.msra.mxu1 %v3690_v55  ;;  %v3777_v55 = vld [vmem:[#allocation2 + $0x580] sm:$0xf]  ;;  %v4009_v16 = vld [vmem:[#allocation2 + $0x750] sm:$0xf]  ;;  %v4331_v20 = vld [vmem:[#allocation2 + $0x754] sm:$0xf0] }
 0x11f   :  { %2755 = vmatpush.bf16.msra.mxu2 %v3754_v10  ;;  %v3786_v10 = vor.u32 %v4275_v45, %v3785_v53  ;;  %v3778_v63 = vor.u32 %v4273_v44, %v3777_v55  ;;  %v4073_v53 = vld [vmem:[#allocation2 + $0x7d0] sm:$0xf]  ;;  %v4347_v45 = vld [vmem:[#allocation2 + $0x7d4] sm:$0xf0]  ;;  %v4010_v17 = vor.u32 %v4331_v20, %v4009_v16  ;;  %v4329_v55 = vld [vmem:[#allocation2 + $0x744] sm:$0xf0] }
 0x120   :  { %2768 = vmatpush.bf16.msra.mxu3 %v3818_v32  ;;  %v3961_v32 = vld [vmem:[#allocation2 + $0x6f0] sm:$0xf]  ;;  %v4345_v44 = vld [vmem:[#allocation2 + $0x7c4] sm:$0xf0]  ;;  %v4295_v18 = vld [vmem:[#allocation2 + $0x634] sm:$0xf0] }
 0x121   :  { %2730 = vmatpush.bf16.msra.mxu0 %v3618_v23  ;;  %v4351_v23 = vld [vmem:[#allocation2 + $0x7f4] sm:$0xf0]  ;;  %v3962_v0 = vor.u32 %v4319_v3, %v3961_v32  ;;  %v3865_v3 = vld [vmem:[#allocation2 + $0x630] sm:$0xf]  ;;  %v3857_v7 = vld [vmem:[#allocation2 + $0x620] sm:$0xf] }
 0x122   :  { %2743 = vmatpush.bf16.msra.mxu1 %v3682_v59  ;;  %v3650_v59 = vor.u32 %v4241_v57, %v3649_v12  ;;  %v3873_v12 = vld [vmem:[#allocation2 + $0x640] sm:$0xf]  ;;  %v4297_v57 = vld [vmem:[#allocation2 + $0x644] sm:$0xf0]  ;;  %v4343_v62 = vld [vmem:[#allocation2 + $0x7b4] sm:$0xf0]  ;;  %v3866_v26 = vor.u32 %v4295_v18, %v3865_v3 }
 0x123   :  { %2756 = vmatpush.bf16.msra.mxu2 %v3746_v48  ;;  %v3714_v48 = vor.u32 %v4257_v28, %v3713_v2  ;;  %v4313_v2 = vld [vmem:[#allocation2 + $0x6c4] sm:$0xf0]  ;;  %v4001_v28 = vld [vmem:[#allocation2 + $0x740] sm:$0xf]  ;;  %v4307_v37 = vld [vmem:[#allocation2 + $0x694] sm:$0xf0] }
 0x124   :  { %2769 = vmatpush.bf16.msra.mxu3 %v3810_v49  ;;  %v3898_v49 = vor.u32 %v4303_v47, %v3897_v42  ;;  %v3874_v42 = vor.u32 %v4297_v57, %v3873_v12  ;;  %v4002_v32 = vor.u32 %v4329_v55, %v4001_v28  ;;  %v4293_v50 = vld [vmem:[#allocation2 + $0x624] sm:$0xf0]  ;;  %v3977_v58 = vld [vmem:[#allocation2 + $0x710] sm:$0xf]  ;;  %v3841_v16 = vld [vmem:[#allocation2 + $0x600] sm:$0xf] }
 0x125   :  { %2731 = vmatpush.bf16.msra.mxu0 %v3610_v38  ;;  %v4301_v38 = vld [vmem:[#allocation2 + $0x664] sm:$0xf0]  ;;  %v3969_v12 = vld [vmem:[#allocation2 + $0x700] sm:$0xf]  ;;  %v4110_v28 = vld [vmem:[#allocation2 + $0x74] sm:$0xf] }
 0x126   :  { %2744 = vmatpush.bf16.msra.mxu1 %v3674_v51  ;;  %v3953_v51 = vld [vmem:[#allocation2 + $0x6e0] sm:$0xf]  ;;  %v4321_v57 = vld [vmem:[#allocation2 + $0x704] sm:$0xf0]  ;;  %v3131_v55 = vld [vmem:[#allocation2 + $0x78] sm:$0xf0] }
 0x127   :  { %2757 = vmatpush.bf16.msra.mxu2 %v3738_v8  ;;  %v4090_v8 = vor.u32 %v4351_v23, %v4089_v31  ;;  %v4311_v31 = vld [vmem:[#allocation2 + $0x6b4] sm:$0xf0]  ;;  %v3993_v23 = vld [vmem:[#allocation2 + $0x730] sm:$0xf]  ;;  %v4158_v3 = vld [vmem:[#allocation2 + $0x1f4] sm:$0xf] }
 0x128   :  { %2770 = vmatpush.bf16.msra.mxu3 %v3802_v14  ;;  %v4333_v14 = vld [vmem:[#allocation2 + $0x764] sm:$0xf0]  ;;  %v3323_v18 = vld [vmem:[#allocation2 + $0x1f8] sm:$0xf0] }
 0x129   :  { %2732 = vmatpush.bf16.msra.mxu0 %v3602_v29  ;;  %v3890_v29 = vor.u32 %v4301_v38, %v3889_v54  ;;  %v4309_v54 = vld [vmem:[#allocation2 + $0x6a4] sm:$0xf0]  ;;  %v3985_v38 = vld [vmem:[#allocation2 + $0x720] sm:$0xf] }
 0x12a   :  { %2745 = vmatpush.bf16.msra.mxu1 %v3666_v1  ;;  %v3954_v1 = vor.u32 %v4317_v36, %v3953_v51  ;;  %v4325_v51 = vld [vmem:[#allocation2 + $0x724] sm:$0xf0] }
 0x12b   :  { %2758 = vmatpush.bf16.msra.mxu2 %v3730_v43  ;;  %v4018_v43 = vor.u32 %v4333_v14, %v4017_v35  ;;  %v4341_v36 = vld [vmem:[#allocation2 + $0x7a4] sm:$0xf0]  ;;  %v3858_v35 = vor.u32 %v4293_v50, %v3857_v7  ;;  %v4108_v7 = vld [vmem:[#allocation2 + $0x64] sm:$0xf]  ;;  %v3123_v50 = vld [vmem:[#allocation2 + $0x68] sm:$0xf0] }
 0x12c   :  { %2771 = vmatpush.bf16.msra.mxu3 %v3794_v41  ;;  %v4082_v41 = vor.u32 %v4349_v25, %v4081_v34  ;;  %v3986_v34 = vor.u32 %v4325_v51, %v3985_v38  ;;  %v3849_v25 = vld [vmem:[#allocation2 + $0x610] sm:$0xf]  ;;  %v3187_v38 = vld [vmem:[#allocation2 + $0xe8] sm:$0xf0]  ;;  %v4140_v51 = vld [vmem:[#allocation2 + $0x164] sm:$0xf] }
 0x12d   :  { %2733 = vmatpush.bf16.msra.mxu0 %v3594_v24  ;;  %v3946_v24 = vor.u32 %v4315_v5, %v3945_v46  ;;  %v4323_v46 = vld [vmem:[#allocation2 + $0x714] sm:$0xf0] }
 0x12e   :  { %2746 = vmatpush.bf16.msra.mxu1 %v3658_v19  ;;  %v3937_v19 = vld [vmem:[#allocation2 + $0x6c0] sm:$0xf]  ;;  %v4339_v5 = vld [vmem:[#allocation2 + $0x794] sm:$0xf0] }
 0x12f   :  { %2759 = vmatpush.bf16.msra.mxu2 %v3722_v60  ;;  %v4074_v60 = vor.u32 %v4347_v45, %v4073_v53  ;;  %v3938_v47 = vor.u32 %v4313_v2, %v3937_v19  ;;  %v4289_v53 = vld [vmem:[#allocation2 + $0x604] sm:$0xf0]  ;;  %v3905_v45 = vld [vmem:[#allocation2 + $0x680] sm:$0xf] }
 0x130   :  { %2772 = vmatpush.bf16.msra.mxu3 %v3786_v10  ;;  %v4065_v10 = vld [vmem:[#allocation2 + $0x7c0] sm:$0xf]  ;;  %v4337_v2 = vld [vmem:[#allocation2 + $0x784] sm:$0xf0] }
 0x131   :  { %2734 = vmatpush.bf16.msra.mxu0 %v3586_v22  ;;  %v3929_v22 = vld [vmem:[#allocation2 + $0x6b0] sm:$0xf]  ;;  %v4066_v56 = vor.u32 %v4345_v44, %v4065_v10  ;;  %v4033_v19 = vld [vmem:[#allocation2 + $0x780] sm:$0xf]  ;;  %v4126_v10 = vld [vmem:[#allocation2 + $0xf4] sm:$0xf] }
 0x132   :  { %2747 = vmatpush.bf16.msra.mxu1 %v3650_v59  ;;  %v4327_v59 = vld [vmem:[#allocation2 + $0x734] sm:$0xf0]  ;;  %v3195_v44 = vld [vmem:[#allocation2 + $0xf8] sm:$0xf0] }
 0x133   :  { %2760 = vmatpush.bf16.msra.mxu2 %v3714_v48  ;;  %v4057_v48 = vld [vmem:[#allocation2 + $0x7b0] sm:$0xf] }
 0x134   :  { %2773 = vmatpush.bf16.msra.mxu3 %v3778_v63  ;;  %2735 = vmatmul.bf16.vlgmr.msra.gmra.mxu0 %v5615_v11  ;;  %v3930_v63 = vor.u32 %v4311_v31, %v3929_v22  ;;  %v1045_v31 = vld.sshfl [vmem:[#allocation1 + $0x20] sm:$0xff pattern:$0x73625140] }
 0x135   :  { %2779 = vmatpush.bf16.msrb.mxu0 %v3898_v49  ;;  %2748 = vmatmul.bf16.vlgmr.msra.gmra.mxu1 %v5619_v30  ;;  %v3994_v49 = vor.u32 %v4327_v59, %v3993_v23  ;;  %v1047_v23 = vld.sshfl [vmem:[#allocation1 + $0x30] sm:$0xff pattern:$0x73625140]  ;;  %v4034_v59 = vor.u32 %v4337_v2, %v4033_v19  ;;  %v4120_v19 = vld [vmem:[#allocation2 + $0xc4] sm:$0xf] }
 0x136   :  { %2792 = vmatpush.bf16.msrb.mxu1 %v3962_v0  ;;  %2761 = vmatmul.bf16.vlgmr.msra.gmra.mxu2 %v5617_v6  ;;  %v3921_v0 = vld [vmem:[#allocation2 + $0x6a0] sm:$0xf]  ;;  %v3171_v2 = vld [vmem:[#allocation2 + $0xc8] sm:$0xf0] }
 0x137   :  { %2805 = vmatpush.bf16.msrb.mxu2 %v4026_v61  ;;  %2774 = vmatmul.bf16.vlgmr.msra.gmra.mxu3 %v5621_v9  ;;  %v4058_v61 = vor.u32 %v4343_v62, %v4057_v48  ;;  %v3922_v14 = vor.u32 %v4309_v54, %v3921_v0  ;;  %v3134_v48 = vor.u32 %v4110_v28, %v3131_v55  ;;  %v1046_v62 = vld.sshfl [vmem:[#allocation1 + $0x28] sm:$0xff pattern:$0x73625140]  ;;  %v3235_v55 = vld [vmem:[#allocation2 + $0x148] sm:$0xf0] }
 0x138   :  { %2818 = vmatpush.bf16.msrb.mxu3 %v4090_v8  ;;  %v4049_v8 = vld [vmem:[#allocation2 + $0x7a0] sm:$0xf]  ;;  %v4124_v0 = vld [vmem:[#allocation2 + $0xe4] sm:$0xf]  ;;  %v5627_v54 = vpack.c.bf16 %v1045_v31, %v1045_v31  ;;  %v3163_v31 = vld [vmem:[#allocation2 + $0xb8] sm:$0xf0] }
 0x139   :  { %2780 = vmatpush.bf16.msrb.mxu0 %v3890_v29  ;;  %v4291_v29 = vld [vmem:[#allocation2 + $0x614] sm:$0xf0]  ;;  %v4136_v28 = vld [vmem:[#allocation2 + $0x144] sm:$0xf] }
 0x13a   :  { %2793 = vmatpush.bf16.msrb.mxu1 %v3954_v1  ;;  %v3913_v1 = vld [vmem:[#allocation2 + $0x690] sm:$0xf]  ;;  %v3850_v20 = vor.u32 %v4291_v29, %v3849_v25  ;;  %v3126_v29 = vor.u32 %v4108_v7, %v3123_v50  ;;  %v4100_v7 = vld [vmem:[#allocation2 + $0x24] sm:$0xf]  ;;  %v3091_v50 = vld [vmem:[#allocation2 + $0x28] sm:$0xf0] }
 0x13b   :  { %2806 = vmatpush.bf16.msrb.mxu2 %v4018_v43  ;;  %v4050_v43 = vor.u32 %v4341_v36, %v4049_v8  ;;  %v3251_v8 = vld [vmem:[#allocation2 + $0x168] sm:$0xf0]  ;;  %v5629_v36 = vpack.c.bf16 %v1047_v23, %v1047_v23  ;;  %v4134_v23 = vld [vmem:[#allocation2 + $0x134] sm:$0xf] }
 0x13c   :  { %2819 = vmatpush.bf16.msrb.mxu3 %v4082_v41  ;;  %v4041_v41 = vld [vmem:[#allocation2 + $0x790] sm:$0xf] }
 0x13d   :  { %2781 = vmatpush.bf16.msrb.mxu0 %v3882_v13  ;;  %v4305_v13 = vld [vmem:[#allocation2 + $0x684] sm:$0xf0] }
 0x13e   :  { %2794 = vmatpush.bf16.msrb.mxu1 %v3946_v24  ;;  %v3914_v24 = vor.u32 %v4307_v37, %v3913_v1  ;;  %v3906_v22 = vor.u32 %v4305_v13, %v3905_v45  ;;  %v3190_v1 = vor.u32 %v4124_v0, %v3187_v38  ;;  %v4106_v37 = vld [vmem:[#allocation2 + $0x54] sm:$0xf]  ;;  %v3307_v45 = vld [vmem:[#allocation2 + $0x1d8] sm:$0xf0]  ;;  %v4116_v0 = vld [vmem:[#allocation2 + $0xa4] sm:$0xf] }
 0x13f   :  { %2807 = vmatpush.bf16.msrb.mxu2 %v4010_v17  ;;  %v3978_v17 = vor.u32 %v4323_v46, %v3977_v58  ;;  %v3115_v58 = vld [vmem:[#allocation2 + $0x58] sm:$0xf0]  ;;  %v4122_v46 = vld [vmem:[#allocation2 + $0xd4] sm:$0xf]  ;;  %v3155_v38 = vld [vmem:[#allocation2 + $0xa8] sm:$0xf0] }
 0x140   :  { %2820 = vmatpush.bf16.msrb.mxu3 %v4074_v60  ;;  %v4042_v60 = vor.u32 %v4339_v5, %v4041_v41  ;;  %v3179_v5 = vld [vmem:[#allocation2 + $0xd8] sm:$0xf0]  ;;  %v3118_v13 = vor.u32 %v4106_v37, %v3115_v58  ;;  %v4098_v37 = vld [vmem:[#allocation2 + $0x14] sm:$0xf] }
 0x141   :  { %2782 = vmatpush.bf16.msrb.mxu0 %v3874_v42  ;;  %v4142_v42 = vld [vmem:[#allocation2 + $0x174] sm:$0xf]  ;;  %v3083_v58 = vld [vmem:[#allocation2 + $0x18] sm:$0xf0] }
 0x142   :  { %2795 = vmatpush.bf16.msrb.mxu1 %v3938_v47  ;;  %v3842_v47 = vor.u32 %v4289_v53, %v3841_v16  ;;  %v4138_v16 = vld [vmem:[#allocation2 + $0x154] sm:$0xf] }
 0x143   :  { %2808 = vmatpush.bf16.msrb.mxu2 %v4002_v32  ;;  %v3259_v32 = vld [vmem:[#allocation2 + $0x178] sm:$0xf0]  ;;  %v4154_v53 = vld [vmem:[#allocation2 + $0x1d4] sm:$0xf] }
 0x144   :  { %2821 = vmatpush.bf16.msrb.mxu3 %v4066_v56  ;;  %v3970_v56 = vor.u32 %v4321_v57, %v3969_v12  ;;  %v4104_v12 = vld [vmem:[#allocation2 + $0x44] sm:$0xf]  ;;  %v3107_v57 = vld [vmem:[#allocation2 + $0x48] sm:$0xf0] }
 0x145   :  { %2783 = vmatpush.bf16.msrb.mxu0 %v3866_v26  ;;  %v1048_v26 = vld.sshfl [vmem:[#allocation1 + $0x38] sm:$0xff pattern:$0x73625140] }
 0x146   :  { %2796 = vmatpush.bf16.msrb.mxu1 %v3930_v63  ;;  %v3198_v63 = vor.u32 %v4126_v10, %v3195_v44  ;;  %v5633_v25 = vpack.c.bf16 %v1048_v26, %v1048_v26  ;;  %v4152_v10 = vld [vmem:[#allocation2 + $0x1c4] sm:$0xf]  ;;  %v3299_v44 = vld [vmem:[#allocation2 + $0x1c8] sm:$0xf0] }
 0x147   :  { %2809 = vmatpush.bf16.msrb.mxu2 %v3994_v49  ;;  %v3262_v49 = vor.u32 %v4142_v42, %v3259_v32  ;;  %v3110_v42 = vor.u32 %v4104_v12, %v3107_v57  ;;  %v3238_v32 = vor.u32 %v4136_v28, %v3235_v55  ;;  %v3203_v55 = vld [vmem:[#allocation2 + $0x108] sm:$0xf0] }
 0x148   :  { %2822 = vmatpush.bf16.msrb.mxu3 %v4058_v61  ;;  %v3326_v61 = vor.u32 %v4158_v3, %v3323_v18  ;;  %v4102_v3 = vld [vmem:[#allocation2 + $0x34] sm:$0xf]  ;;  %v3099_v18 = vld [vmem:[#allocation2 + $0x38] sm:$0xf0] }
 0x149   :  { %2784 = vmatpush.bf16.msrb.mxu0 %v3858_v35  ;;  %v5631_v35 = vpack.c.bf16 %v1046_v62, %v1046_v62  ;;  %v3291_v62 = vld [vmem:[#allocation2 + $0x1b8] sm:$0xf0]  ;;  %v3102_v26 = vor.u32 %v4102_v3, %v3099_v18 }
 0x14a   :  { %2797 = vmatpush.bf16.msrb.mxu1 %v3922_v14  ;;  %v4156_v14 = vld [vmem:[#allocation2 + $0x1e4] sm:$0xf]  ;;  %v3451_v18 = vld [vmem:[#allocation2 + $0x2f8] sm:$0xf0] }
 0x14b   :  { %2810 = vmatpush.bf16.msrb.mxu2 %v3986_v34  ;;  %v3315_v34 = vld [vmem:[#allocation2 + $0x1e8] sm:$0xf0] }
 0x14c   :  { %2823 = vmatpush.bf16.msrb.mxu3 %v4050_v43  ;;  %v3254_v43 = vor.u32 %v4140_v51, %v3251_v8  ;;  %v3318_v41 = vor.u32 %v4156_v14, %v3315_v34  ;;  %v4132_v51 = vld [vmem:[#allocation2 + $0x124] sm:$0xf]  ;;  %v3219_v8 = vld [vmem:[#allocation2 + $0x128] sm:$0xf0] }
 0x14d   :  { %2785 = vmatpush.bf16.msrb.mxu0 %v3850_v20  ;;  %v3243_v20 = vld [vmem:[#allocation2 + $0x158] sm:$0xf0]  ;;  %v4148_v14 = vld [vmem:[#allocation2 + $0x1a4] sm:$0xf]  ;;  %v3283_v34 = vld [vmem:[#allocation2 + $0x1a8] sm:$0xf0] }
 0x14e   :  { %2798 = vmatpush.bf16.msrb.mxu1 %v3914_v24  ;;  %v3182_v24 = vor.u32 %v4122_v46, %v3179_v5  ;;  %v4114_v46 = vld [vmem:[#allocation2 + $0x94] sm:$0xf]  ;;  %v3147_v5 = vld [vmem:[#allocation2 + $0x98] sm:$0xf0] }
 0x14f   :  { %2811 = vmatpush.bf16.msrb.mxu2 %v3978_v17  ;;  %v3246_v17 = vor.u32 %v4138_v16, %v3243_v20  ;;  %v4130_v16 = vld [vmem:[#allocation2 + $0x114] sm:$0xf]  ;;  %v3211_v20 = vld [vmem:[#allocation2 + $0x118] sm:$0xf0]  ;;  %v3150_v12 = vor.u32 %v4114_v46, %v3147_v5 }
 0x150   :  { %2824 = vmatpush.bf16.msrb.mxu3 %v4042_v60  ;;  %v3310_v60 = vor.u32 %v4154_v53, %v3307_v45  ;;  %v4146_v53 = vld [vmem:[#allocation2 + $0x194] sm:$0xf]  ;;  %v3275_v45 = vld [vmem:[#allocation2 + $0x198] sm:$0xf0]  ;;  %v3214_v57 = vor.u32 %v4130_v16, %v3211_v20 }
 0x151   :  { %2786 = vmatpush.bf16.msrb.mxu0 %v3842_v47  ;;  %v3174_v47 = vor.u32 %v4120_v19, %v3171_v2  ;;  %v4112_v19 = vld [vmem:[#allocation2 + $0x84] sm:$0xf]  ;;  %v3278_v28 = vor.u32 %v4146_v53, %v3275_v45  ;;  %v4186_v46 = vld [vmem:[#allocation2 + $0x2d4] sm:$0xf]  ;;  %v3435_v5 = vld [vmem:[#allocation2 + $0x2d8] sm:$0xf0] }
 0x152   :  { %2799 = vmatpush.bf16.msrb.mxu1 %v3906_v22  ;;  %v4118_v22 = vld [vmem:[#allocation2 + $0xb4] sm:$0xf]  ;;  %v4128_v2 = vld [vmem:[#allocation2 + $0x104] sm:$0xf]  ;;  %v3499_v20 = vld [vmem:[#allocation2 + $0x358] sm:$0xf0] }
 0x153   :  { %2812 = vmatpush.bf16.msrb.mxu2 %v3970_v56  ;;  %v3302_v56 = vor.u32 %v4152_v10, %v3299_v44  ;;  %v4144_v10 = vld [vmem:[#allocation2 + $0x184] sm:$0xf]  ;;  %v3267_v44 = vld [vmem:[#allocation2 + $0x188] sm:$0xf0]  ;;  %v4202_v16 = vld [vmem:[#allocation2 + $0x354] sm:$0xf] }
 0x154   :  { %2825 = vmatpush.bf16.msrb.mxu3 %v4034_v59  ;;  %2787 = vmatmul.bf16.vlgmr.msrb.gmra.mxu0 %v5627_v54  ;;  %v3227_v59 = vld [vmem:[#allocation2 + $0x138] sm:$0xf0]  ;;  %v4218_v53 = vld [vmem:[#allocation2 + $0x3d4] sm:$0xf] }
 0x155   :  { %2831 = vmatpush.bf16.msra.mxu0 %v3134_v48  ;;  %2800 = vmatmul.bf16.vlgmr.msrb.gmra.mxu1 %v5631_v35  ;;  %v4150_v48 = vld [vmem:[#allocation2 + $0x1b4] sm:$0xf]  ;;  %v3563_v45 = vld [vmem:[#allocation2 + $0x3d8] sm:$0xf0] }
 0x156   :  { %2844 = vmatpush.bf16.msra.mxu1 %v3198_v63  ;;  %2813 = vmatmul.bf16.vlgmr.msrb.gmra.mxu2 %v5629_v36  ;;  %v3166_v63 = vor.u32 %v4118_v22, %v3163_v31  ;;  %v4206_v22 = vld [vmem:[#allocation2 + $0x374] sm:$0xf] }
 0x157   :  { %2857 = vmatpush.bf16.msra.mxu2 %v3262_v49  ;;  %2826 = vmatmul.bf16.vlgmr.msrb.gmra.mxu3 %v5633_v25  ;;  %v3230_v49 = vor.u32 %v4134_v23, %v3227_v59  ;;  %v3206_v23 = vor.u32 %v4128_v2, %v3203_v55  ;;  %v4222_v59 = vld [vmem:[#allocation2 + $0x3f4] sm:$0xf]  ;;  %v4200_v2 = vld [vmem:[#allocation2 + $0x344] sm:$0xf] }
 0x158   :  { %2870 = vmatpush.bf16.msra.mxu3 %v3326_v61  ;;  %v3294_v61 = vor.u32 %v4150_v48, %v3291_v62  ;;  %v3579_v48 = vld [vmem:[#allocation2 + $0x3f8] sm:$0xf0]  ;;  %v3270_v62 = vor.u32 %v4144_v10, %v3267_v44  ;;  %v4216_v55 = vld [vmem:[#allocation2 + $0x3c4] sm:$0xf]  ;;  %v4166_v10 = vld [vmem:[#allocation2 + $0x234] sm:$0xf] }
 0x159   :  { %2832 = vmatpush.bf16.msra.mxu0 %v3126_v29  ;;  %v3094_v29 = vor.u32 %v4100_v7, %v3091_v50  ;;  %v4172_v7 = vld [vmem:[#allocation2 + $0x264] sm:$0xf]  ;;  %v3379_v50 = vld [vmem:[#allocation2 + $0x268] sm:$0xf0] }
 0x15a   :  { %2845 = vmatpush.bf16.msra.mxu1 %v3190_v1  ;;  %v3158_v1 = vor.u32 %v4116_v0, %v3155_v38  ;;  %v4188_v0 = vld [vmem:[#allocation2 + $0x2e4] sm:$0xf]  ;;  %v3443_v38 = vld [vmem:[#allocation2 + $0x2e8] sm:$0xf0] }
 0x15b   :  { %2858 = vmatpush.bf16.msra.mxu2 %v3254_v43  ;;  %v3222_v43 = vor.u32 %v4132_v51, %v3219_v8  ;;  %v4204_v51 = vld [vmem:[#allocation2 + $0x364] sm:$0xf]  ;;  %v3507_v8 = vld [vmem:[#allocation2 + $0x368] sm:$0xf0] }
 0x15c   :  { %2871 = vmatpush.bf16.msra.mxu3 %v3318_v41  ;;  %v3286_v41 = vor.u32 %v4148_v14, %v3283_v34  ;;  %v4220_v14 = vld [vmem:[#allocation2 + $0x3e4] sm:$0xf]  ;;  %v3571_v34 = vld [vmem:[#allocation2 + $0x3e8] sm:$0xf0] }
 0x15d   :  { %2833 = vmatpush.bf16.msra.mxu0 %v3118_v13  ;;  %v3086_v13 = vor.u32 %v4098_v37, %v3083_v58  ;;  %v4170_v37 = vld [vmem:[#allocation2 + $0x254] sm:$0xf]  ;;  %v3371_v58 = vld [vmem:[#allocation2 + $0x258] sm:$0xf0] }
 0x15e   :  { %2846 = vmatpush.bf16.msra.mxu1 %v3182_v24  ;;  %v4096_v24 = vld [vmem:[#allocation2 + $0x4] sm:$0xf] }
 0x15f   :  { %2859 = vmatpush.bf16.msra.mxu2 %v3246_v17  ;;  %v3075_v17 = vld [vmem:[#allocation2 + $0x8] sm:$0xf0] }
 0x160   :  { %2872 = vmatpush.bf16.msra.mxu3 %v3310_v60  ;;  %v3139_v60 = vld [vmem:[#allocation2 + $0x88] sm:$0xf0]  ;;  %v3078_v3 = vor.u32 %v4096_v24, %v3075_v17  ;;  %v3438_v24 = vor.u32 %v4186_v46, %v3435_v5  ;;  %v3502_v17 = vor.u32 %v4202_v16, %v3499_v20  ;;  %v3339_v46 = vld [vmem:[#allocation2 + $0x218] sm:$0xf0] }
 0x161   :  { %2834 = vmatpush.bf16.msra.mxu0 %v3110_v42  ;;  %v4174_v42 = vld [vmem:[#allocation2 + $0x274] sm:$0xf]  ;;  %v3142_v31 = vor.u32 %v4112_v19, %v3139_v60  ;;  %v4184_v19 = vld [vmem:[#allocation2 + $0x2c4] sm:$0xf]  ;;  %v3566_v60 = vor.u32 %v4218_v53, %v3563_v45  ;;  %v3403_v20 = vld [vmem:[#allocation2 + $0x298] sm:$0xf0] }
 0x162   :  { %2847 = vmatpush.bf16.msra.mxu1 %v3174_v47  ;;  %v3387_v47 = vld [vmem:[#allocation2 + $0x278] sm:$0xf0]  ;;  %v4194_v53 = vld [vmem:[#allocation2 + $0x314] sm:$0xf] }
 0x163   :  { %2860 = vmatpush.bf16.msra.mxu2 %v3238_v32  ;;  %v4190_v32 = vld [vmem:[#allocation2 + $0x2f4] sm:$0xf]  ;;  %v3467_v45 = vld [vmem:[#allocation2 + $0x318] sm:$0xf0] }
 0x164   :  { %2873 = vmatpush.bf16.msra.mxu3 %v3302_v56  ;;  %v3515_v56 = vld [vmem:[#allocation2 + $0x378] sm:$0xf0] }
 0x165   :  { %2835 = vmatpush.bf16.msra.mxu0 %v3102_v26  ;;  %v3390_v26 = vor.u32 %v4174_v42, %v3387_v47  ;;  %v3355_v42 = vld [vmem:[#allocation2 + $0x238] sm:$0xf0]  ;;  %v4182_v47 = vld [vmem:[#allocation2 + $0x2b4] sm:$0xf] }
 0x166   :  { %2848 = vmatpush.bf16.msra.mxu1 %v3166_v63  ;;  %v3454_v63 = vor.u32 %v4190_v32, %v3451_v18  ;;  %v5646_v32 = vld [vmem:[%s5678_s3] sm:$0x3]  ;;  %v3419_v18 = vld [vmem:[#allocation2 + $0x2b8] sm:$0xf0]  ;;  %s4439_s3 = smov [#allocation4]  }
 0x167   :  { %2861 = vmatpush.bf16.msra.mxu2 %v3230_v49  ;;  %v3518_v49 = vor.u32 %v4206_v22, %v3515_v56  ;;  %v4198_v22 = vld [vmem:[#allocation2 + $0x334] sm:$0xf]  ;;  %v3483_v56 = vld [vmem:[#allocation2 + $0x338] sm:$0xf0]  ;;  %s3050_s16 = sshll.u32 %s4439_s3, 4  ;;  %s3051_s16 = int_to_ptr.vmem [resolvable:$true] %s3050_s16 }
 0x168   :  { %2874 = vmatpush.bf16.msra.mxu3 %v3294_v61  ;;  %v3582_v61 = vor.u32 %v4222_v59, %v3579_v48  ;;  %v3358_v59 = vor.u32 %v4166_v10, %v3355_v42  ;;  %v1339_v48 = vperm.slane %v5646_v32, 0  ;;  %v3523_v42 = vld [vmem:[#allocation2 + $0x388] sm:$0xf0]  ;;  %3055 = dma.vmem_to_hbm [thread:$0]  %s3051_s16, 512, %s3053_s19, [#allocation5]  }
 0x169   :  { %2836 = vmatpush.bf16.msra.mxu0 %v3094_v29  ;;  %v3382_v29 = vor.u32 %v4172_v7, %v3379_v50  ;;  %v4180_v7 = vld [vmem:[#allocation2 + $0x2a4] sm:$0xf] }
 0x16a   :  { %2849 = vmatpush.bf16.msra.mxu1 %v3158_v1  ;;  %v3446_v1 = vor.u32 %v4188_v0, %v3443_v38  ;;  %v3411_v0 = vld [vmem:[#allocation2 + $0x2a8] sm:$0xf0] }
 0x16b   :  { %2862 = vmatpush.bf16.msra.mxu2 %v3222_v43  ;;  %v3510_v43 = vor.u32 %v4204_v51, %v3507_v8  ;;  %v3475_v38 = vld [vmem:[#allocation2 + $0x328] sm:$0xf0]  ;;  %v4212_v51 = vld [vmem:[#allocation2 + $0x3a4] sm:$0xf] }
 0x16c   :  { %2875 = vmatpush.bf16.msra.mxu3 %v3286_v41  ;;  %v3574_v41 = vor.u32 %v4220_v14, %v3571_v34  ;;  %v3539_v8 = vld [vmem:[#allocation2 + $0x3a8] sm:$0xf0] }
 0x16d   :  { %2837 = vmatpush.bf16.msra.mxu0 %v3086_v13  ;;  %v3374_v13 = vor.u32 %v4170_v37, %v3371_v58  ;;  %v4162_v58 = vld [vmem:[#allocation2 + $0x214] sm:$0xf]  ;;  %v3542_v16 = vor.u32 %v4212_v51, %v3539_v8  ;;  %v4236_v8 = vld [vmem:[#allocation2 + $0x464] sm:$0xf] }
 0x16e   :  { %2850 = vmatpush.bf16.msra.mxu1 %v3150_v12  ;;  %v4168_v12 = vld [vmem:[#allocation2 + $0x244] sm:$0xf] }
 0x16f   :  { %2863 = vmatpush.bf16.msra.mxu2 %v3214_v57  ;;  %v3363_v57 = vld [vmem:[#allocation2 + $0x248] sm:$0xf0] }
 0x170   :  { %2876 = vmatpush.bf16.msra.mxu3 %v3278_v28  ;;  %v3491_v28 = vld [vmem:[#allocation2 + $0x348] sm:$0xf0] }
 0x171   :  { %2838 = vmatpush.bf16.msra.mxu0 %v3078_v3  ;;  %v3494_v44 = vor.u32 %v4200_v2, %v3491_v28  ;;  %v3470_v28 = vor.u32 %v4194_v53, %v3467_v45  ;;  %v4234_v53 = vld [vmem:[#allocation2 + $0x454] sm:$0xf]  ;;  %v3627_v45 = vld [vmem:[#allocation2 + $0x458] sm:$0xf0] }
 0x172   :  { %2851 = vmatpush.bf16.msra.mxu1 %v3142_v31  ;;  %v4214_v31 = vld [vmem:[#allocation2 + $0x3b4] sm:$0xf] }
 0x173   :  { %2864 = vmatpush.bf16.msra.mxu2 %v3206_v23  ;;  %v3547_v23 = vld [vmem:[#allocation2 + $0x3b8] sm:$0xf0] }
 0x174   :  { %2877 = vmatpush.bf16.msra.mxu3 %v3270_v62  ;;  %2839 = vmatmul.bf16.vlgmr.msra.gmra.mxu0 %v5592_v4  ;;  %v3555_v4 = vld [vmem:[#allocation2 + $0x3c8] sm:$0xf0]  ;;  %v3422_v62 = vor.u32 %v4182_v47, %v3419_v18  ;;  %v3550_v50 = vor.u32 %v4214_v31, %v3547_v23  ;;  %v3643_v18 = vld [vmem:[#allocation2 + $0x478] sm:$0xf0] }
 0x175   :  { %2883 = vmatpush.bf16.msrb.mxu0 %v3390_v26  ;;  %2852 = vmatmul.bf16.vlgmr.msra.gmra.mxu1 %v5597_v21  ;;  %v3558_v3 = vor.u32 %v4216_v55, %v3555_v4  ;;  %v3486_v26 = vor.u32 %v4198_v22, %v3483_v56  ;;  %v2632_v14 = vpop.f32.mrf.mxu0  ;;  %v4176_v55 = vld [vmem:[#allocation2 + $0x284] sm:$0xf]  ;;  %v3395_v4 = vld [vmem:[#allocation2 + $0x288] sm:$0xf0]  ;;  %v4254_v22 = vld [vmem:[#allocation2 + $0x4f4] sm:$0xf] }
 0x176   :  { %2896 = vmatpush.bf16.msrb.mxu1 %v3454_v63  ;;  %2865 = vmatmul.bf16.vlgmr.msra.gmra.mxu2 %v5589_v33  ;;  %v3427_v33 = vld [vmem:[#allocation2 + $0x2c8] sm:$0xf0]  ;;  %v4164_v63 = vld [vmem:[#allocation2 + $0x224] sm:$0xf]  ;;  %v3707_v23 = vld [vmem:[#allocation2 + $0x4f8] sm:$0xf0] }
 0x177   :  { %2909 = vmatpush.bf16.msrb.mxu2 %v3518_v49  ;;  %2878 = vmatmul.bf16.vlgmr.msra.gmra.mxu3 %v5594_v15  ;;  %v3366_v15 = vor.u32 %v4168_v12, %v3363_v57  ;;  %v3430_v21 = vor.u32 %v4184_v19, %v3427_v33  ;;  %v3347_v49 = vld [vmem:[#allocation2 + $0x228] sm:$0xf0]  ;;  %v3342_v57 = vor.u32 %v4162_v58, %v3339_v46  ;;  %v4160_v19 = vld [vmem:[#allocation2 + $0x204] sm:$0xf] }
 0x178   :  { %2922 = vmatpush.bf16.msrb.mxu3 %v3582_v61  ;;  %v4196_v61 = vld [vmem:[#allocation2 + $0x324] sm:$0xf]  ;;  %v3350_v34 = vor.u32 %v4164_v63, %v3347_v49  ;;  %v4286_v49 = vld [vmem:[#allocation2 + $0x5f4] sm:$0xf]  ;;  %v3763_v58 = vld [vmem:[#allocation2 + $0x568] sm:$0xf0] }
 0x179   :  { %2884 = vmatpush.bf16.msrb.mxu0 %v3382_v29  ;;  %v2633_v29 = vadd.f32 %v2632_v14, %v1339_v48  ;;  %v3478_v37 = vor.u32 %v4196_v61, %v3475_v38  ;;  %v2658_v5 = vpop.f32.mrf.mxu2  ;;  %v3771_v48 = vld [vmem:[#allocation2 + $0x578] sm:$0xf0]  ;;  %v3710_v38 = vor.u32 %v4254_v22, %v3707_v23  ;;  %v3635_v14 = vld [vmem:[#allocation2 + $0x468] sm:$0xf0]  ;;  %v4284_v46 = vld [vmem:[#allocation2 + $0x5e4] sm:$0xf] }
 0x17a   :  { %2897 = vmatpush.bf16.msrb.mxu1 %v3446_v1  ;;  %v2645_v1 = vpop.f32.mrf.mxu1  ;;  %v2671_v12 = vpop.f32.mrf.mxu3  ;;  %v4230_v22 = vld [vmem:[#allocation2 + $0x434] sm:$0xf] }
 0x17b   :  { %2910 = vmatpush.bf16.msrb.mxu2 %v3510_v43  ;;  %v3414_v43 = vor.u32 %v4180_v7, %v3411_v0  ;;  %v3835_v7 = vld [vmem:[#allocation2 + $0x5f8] sm:$0xf0] }
 0x17c   :  { %2923 = vmatpush.bf16.msrb.mxu3 %v3574_v41  ;;  %v4178_v41 = vld [vmem:[#allocation2 + $0x294] sm:$0xf] }
 0x17d   :  { %2885 = vmatpush.bf16.msrb.mxu0 %v3374_v13  ;;  %v2646_v13 = vadd.f32 %v2645_v1, %v2633_v29  ;;  %v3406_v2 = vor.u32 %v4178_v41, %v3403_v20  ;;  %v2634_v56 = vpop.f32.mrf.mxu0  ;;  %v3838_v1 = vor.u32 %v4286_v49, %v3835_v7  ;;  %v3827_v41 = vld [vmem:[#allocation2 + $0x5e8] sm:$0xf0]  ;;  %v4278_v49 = vld [vmem:[#allocation2 + $0x5b4] sm:$0xf]  ;;  %v3803_v7 = vld [vmem:[#allocation2 + $0x5b8] sm:$0xf0] }
 0x17e   :  { %2898 = vmatpush.bf16.msrb.mxu1 %v3438_v24  ;;  %v4210_v24 = vld [vmem:[#allocation2 + $0x394] sm:$0xf]  ;;  %v3611_v56 = vld [vmem:[#allocation2 + $0x438] sm:$0xf0] }
 0x17f   :  { %2911 = vmatpush.bf16.msrb.mxu2 %v3502_v17  ;;  %v3531_v17 = vld [vmem:[#allocation2 + $0x398] sm:$0xf0]  ;;  %v2659_v33 = vadd.f32 %v2658_v5, %v2646_v13  ;;  %v3638_v5 = vor.u32 %v4236_v8, %v3635_v14  ;;  %v4250_v13 = vld [vmem:[#allocation2 + $0x4d4] sm:$0xf]  ;;  %v3603_v8 = vld [vmem:[#allocation2 + $0x428] sm:$0xf0] }
 0x180   :  { %2924 = vmatpush.bf16.msrb.mxu3 %v3566_v60  ;;  %v3331_v60 = vld [vmem:[#allocation2 + $0x208] sm:$0xf0]  ;;  %v3534_v10 = vor.u32 %v4210_v24, %v3531_v17  ;;  %v3830_v24 = vor.u32 %v4284_v46, %v3827_v41  ;;  %v3691_v17 = vld [vmem:[#allocation2 + $0x4d8] sm:$0xf0]  ;;  %v4244_v14 = vld [vmem:[#allocation2 + $0x4a4] sm:$0xf] }
 0x181   :  { %2886 = vmatpush.bf16.msrb.mxu0 %v3366_v15  ;;  %v4192_v15 = vld [vmem:[#allocation2 + $0x304] sm:$0xf]  ;;  %v5649_v47 = vadd.f32 %v2671_v12, %v2659_v33  ;;  %v3334_v31 = vor.u32 %v4160_v19, %v3331_v60  ;;  %v4266_v12 = vld [vmem:[#allocation2 + $0x554] sm:$0xf]  ;;  %v3819_v60 = vld [vmem:[#allocation2 + $0x5d8] sm:$0xf0]  ;;  %v3630_v33 = vor.u32 %v4234_v53, %v3627_v45 }
 0x182   :  { %2899 = vmatpush.bf16.msrb.mxu1 %v3430_v21  ;;  %v3459_v21 = vld [vmem:[#allocation2 + $0x308] sm:$0xf0]  ;;  %v2673_v29 = vpop.f32.mrf.mxu3  ;;  %v4282_v19 = vld [vmem:[#allocation2 + $0x5d4] sm:$0xf]  ;;  %v4276_v46 = vld [vmem:[#allocation2 + $0x5a4] sm:$0xf] }
 0x183   :  { %2912 = vmatpush.bf16.msrb.mxu2 %v3494_v44  ;;  %v4208_v44 = vld [vmem:[#allocation2 + $0x384] sm:$0xf]  ;;  %v3462_v63 = vor.u32 %v4192_v15, %v3459_v21  ;;  %v3822_v15 = vor.u32 %v4282_v19, %v3819_v60  ;;  %v3667_v29 = vld [vmem:[#allocation2 + $0x4a8] sm:$0xf0]  ;;  %v3659_v19 = vld [vmem:[#allocation2 + $0x498] sm:$0xf0] }
 0x184   :  { %2925 = vmatpush.bf16.msrb.mxu3 %v3558_v3  ;;  %v4238_v3 = vld [vmem:[#allocation2 + $0x474] sm:$0xf]  ;;  %v3526_v0 = vor.u32 %v4208_v44, %v3523_v42  ;;  %v4264_v21 = vld [vmem:[#allocation2 + $0x544] sm:$0xf]  ;;  %v3795_v41 = vld [vmem:[#allocation2 + $0x5a8] sm:$0xf0]  ;;  %v3670_v53 = vor.u32 %v4244_v14, %v3667_v29 }
 0x185   :  { %2887 = vmatpush.bf16.msrb.mxu0 %v3358_v59  ;;  %v4270_v59 = vld [vmem:[#allocation2 + $0x574] sm:$0xf]  ;;  %v3646_v61 = vor.u32 %v4238_v3, %v3643_v18  ;;  %v4280_v44 = vld [vmem:[#allocation2 + $0x5c4] sm:$0xf]  ;;  %v3891_v14 = vld [vmem:[#allocation2 + $0x668] sm:$0xf0] }
 0x186   :  { %2900 = vmatpush.bf16.msrb.mxu1 %v3422_v62  ;;  %v2647_v62 = vpop.f32.mrf.mxu1  ;;  %v3774_v51 = vor.u32 %v4270_v59, %v3771_v48  ;;  %v4258_v60 = vld [vmem:[#allocation2 + $0x514] sm:$0xf]  ;;  %v3955_v29 = vld [vmem:[#allocation2 + $0x6e8] sm:$0xf0] }
 0x187   :  { %2913 = vmatpush.bf16.msrb.mxu2 %v3486_v26  ;;  %v3398_v26 = vor.u32 %v4176_v55, %v3395_v4  ;;  %v4232_v55 = vld [vmem:[#allocation2 + $0x444] sm:$0xf]  ;;  %v3619_v4 = vld [vmem:[#allocation2 + $0x448] sm:$0xf0]  ;;  %v3675_v62 = vld [vmem:[#allocation2 + $0x4b8] sm:$0xf0] }
 0x188   :  { %2926 = vmatpush.bf16.msrb.mxu3 %v3550_v50  ;;  %v2660_v50 = vpop.f32.mrf.mxu2  ;;  %v3622_v42 = vor.u32 %v4232_v55, %v3619_v4  ;;  %v4224_v4 = vld [vmem:[#allocation2 + $0x404] sm:$0xf] }
 0x189   :  { %2888 = vmatpush.bf16.msrb.mxu0 %v3350_v34  ;;  %v4252_v34 = vld [vmem:[#allocation2 + $0x4e4] sm:$0xf] }
 0x18a   :  { %2901 = vmatpush.bf16.msrb.mxu1 %v3414_v43  ;;  %v3699_v43 = vld [vmem:[#allocation2 + $0x4e8] sm:$0xf0] }
 0x18b   :  { %2914 = vmatpush.bf16.msrb.mxu2 %v3478_v37  ;;  %v4268_v37 = vld [vmem:[#allocation2 + $0x564] sm:$0xf] }
 0x18c   :  { %2927 = vmatpush.bf16.msrb.mxu3 %v3542_v16  ;;  %v3702_v16 = vor.u32 %v4252_v34, %v3699_v43  ;;  %v3766_v20 = vor.u32 %v4268_v37, %v3763_v58  ;;  %v3731_v43 = vld [vmem:[#allocation2 + $0x528] sm:$0xf0] }
 0x18d   :  { %2889 = vmatpush.bf16.msrb.mxu0 %v3342_v57  ;;  %v3755_v57 = vld [vmem:[#allocation2 + $0x558] sm:$0xf0] }
 0x18e   :  { %2902 = vmatpush.bf16.msrb.mxu1 %v3406_v2  ;;  %v3694_v2 = vor.u32 %v4250_v13, %v3691_v17  ;;  %v4226_v13 = vld [vmem:[#allocation2 + $0x414] sm:$0xf] }
 0x18f   :  { %2915 = vmatpush.bf16.msrb.mxu2 %v3470_v28  ;;  %v3758_v28 = vor.u32 %v4266_v12, %v3755_v57  ;;  %v4242_v17 = vld [vmem:[#allocation2 + $0x494] sm:$0xf]  ;;  %v3798_v57 = vor.u32 %v4276_v46, %v3795_v41 }
 0x190   :  { %2928 = vmatpush.bf16.msrb.mxu3 %v3534_v10  ;;  %v3683_v10 = vld [vmem:[#allocation2 + $0x4c8] sm:$0xf0] }
 0x191   :  { %2890 = vmatpush.bf16.msrb.mxu0 %v3334_v31  ;;  %v2684_v3 = vpop.f32.mrf.mxu0  ;;  %v4246_v31 = vld [vmem:[#allocation2 + $0x4b4] sm:$0xf] }
 0x192   :  { %2903 = vmatpush.bf16.msrb.mxu1 %v3398_v26  ;;  %v2685_v23 = vadd.f32 %v2684_v3, %v5649_v47  ;;  %v2697_v59 = vpop.f32.mrf.mxu1  ;;  %v4262_v26 = vld [vmem:[#allocation2 + $0x534] sm:$0xf]  ;;  %v3806_v47 = vor.u32 %v4278_v49, %v3803_v7  ;;  %v3715_v3 = vld [vmem:[#allocation2 + $0x508] sm:$0xf0] }
 0x193   :  { %2916 = vmatpush.bf16.msrb.mxu2 %v3462_v63  ;;  %v3739_v63 = vld [vmem:[#allocation2 + $0x538] sm:$0xf0]  ;;  %v4350_v7 = vld [vmem:[#allocation2 + $0x7f4] sm:$0xf] }
 0x194   :  { %2929 = vmatpush.bf16.msrb.mxu3 %v3526_v0  ;;  %2891 = vmatmul.bf16.vlgmr.msrb.gmra.mxu0 %v5605_v27  ;;  %v3747_v27 = vld [vmem:[#allocation2 + $0x548] sm:$0xf0]  ;;  %v2698_v50 = vadd.f32 %v2697_v59, %v2685_v23  ;;  %v3614_v0 = vor.u32 %v4230_v22, %v3611_v56  ;;  %v4302_v56 = vld [vmem:[#allocation2 + $0x674] sm:$0xf] }
 0x195   :  { %2935 = vmatpush.bf16.msra.mxu0 %v3646_v61  ;;  %2904 = vmatmul.bf16.vlgmr.msrb.gmra.mxu1 %v5609_v52  ;;  %v3750_v18 = vor.u32 %v4264_v21, %v3747_v27  ;;  %v3678_v61 = vor.u32 %v4246_v31, %v3675_v62  ;;  %v4240_v21 = vld [vmem:[#allocation2 + $0x484] sm:$0xf]  ;;  %v3651_v27 = vld [vmem:[#allocation2 + $0x488] sm:$0xf0]  ;;  %v3899_v31 = vld [vmem:[#allocation2 + $0x678] sm:$0xf0] }
 0x196   :  { %2948 = vmatpush.bf16.msra.mxu1 %v3710_v38  ;;  %2917 = vmatmul.bf16.vlgmr.msrb.gmra.mxu2 %v5603_v40  ;;  %v4248_v40 = vld [vmem:[#allocation2 + $0x4c4] sm:$0xf]  ;;  %v3742_v38 = vor.u32 %v4262_v26, %v3739_v63  ;;  %v4318_v23 = vld [vmem:[#allocation2 + $0x6f4] sm:$0xf]  ;;  %v4027_v26 = vld [vmem:[#allocation2 + $0x778] sm:$0xf0]  ;;  %v3654_v63 = vor.u32 %v4240_v21, %v3651_v27 }
 0x197   :  { %2961 = vmatpush.bf16.msra.mxu2 %v3774_v51  ;;  %2930 = vmatmul.bf16.vlgmr.msrb.gmra.mxu3 %v5607_v39  ;;  %v3811_v39 = vld [vmem:[#allocation2 + $0x5c8] sm:$0xf0]  ;;  %v3686_v52 = vor.u32 %v4248_v40, %v3683_v10  ;;  %v4228_v51 = vld [vmem:[#allocation2 + $0x424] sm:$0xf]  ;;  %v4334_v62 = vld [vmem:[#allocation2 + $0x774] sm:$0xf] }
 0x198   :  { %2974 = vmatpush.bf16.msra.mxu3 %v3838_v1  ;;  %v3814_v48 = vor.u32 %v4280_v44, %v3811_v39  ;;  %v4260_v1 = vld [vmem:[#allocation2 + $0x524] sm:$0xf]  ;;  %v3587_v40 = vld [vmem:[#allocation2 + $0x408] sm:$0xf0] }
 0x199   :  { %2936 = vmatpush.bf16.msra.mxu0 %v3638_v5  ;;  %v2710_v34 = vpop.f32.mrf.mxu2  ;;  %v3606_v5 = vor.u32 %v4228_v51, %v3603_v8  ;;  %v3734_v45 = vor.u32 %v4260_v1, %v3731_v43  ;;  %v4256_v44 = vld [vmem:[#allocation2 + $0x504] sm:$0xf]  ;;  %v3590_v59 = vor.u32 %v4224_v4, %v3587_v40  ;;  %v4030_v51 = vor.u32 %v4334_v62, %v4027_v26  ;;  %v4019_v43 = vld [vmem:[#allocation2 + $0x768] sm:$0xf0]  ;;  %v4059_v62 = vld [vmem:[#allocation2 + $0x7b8] sm:$0xf0] }
 0x19a   :  { %2949 = vmatpush.bf16.msra.mxu1 %v3702_v16  ;;  %v2711_v37 = vadd.f32 %v2710_v34, %v2698_v50  ;;  %v2723_v58 = vpop.f32.mrf.mxu3  ;;  %v2699_v12 = vpop.f32.mrf.mxu1  ;;  %v3718_v49 = vor.u32 %v4256_v44, %v3715_v3  ;;  %v4091_v50 = vld [vmem:[#allocation2 + $0x7f8] sm:$0xf0]  ;;  %v4300_v8 = vld [vmem:[#allocation2 + $0x664] sm:$0xf]  ;;  %v3939_v40 = vld [vmem:[#allocation2 + $0x6c8] sm:$0xf0] }
 0x19b   :  { %2962 = vmatpush.bf16.msra.mxu2 %v3766_v20  ;;  %v2686_v20 = vpop.f32.mrf.mxu0  ;;  %v4316_v34 = vld [vmem:[#allocation2 + $0x6e4] sm:$0xf]  ;;  %v3894_v46 = vor.u32 %v4300_v8, %v3891_v14  ;;  %v4011_v12 = vld [vmem:[#allocation2 + $0x758] sm:$0xf0]  ;;  %v4067_v21 = vld [vmem:[#allocation2 + $0x7c8] sm:$0xf0] }
 0x19c   :  { %2975 = vmatpush.bf16.msra.mxu3 %v3830_v24  ;;  %v5656_v16 = vadd.f32 %v2723_v58, %v2711_v37  ;;  %v3595_v24 = vld [vmem:[#allocation2 + $0x418] sm:$0xf0]  ;;  %v4332_v1 = vld [vmem:[#allocation2 + $0x764] sm:$0xf]  ;;  %v4083_v58 = vld [vmem:[#allocation2 + $0x7e8] sm:$0xf0]  ;;  %v3958_v41 = vor.u32 %v4316_v34, %v3955_v29 }
 0x19d   :  { %2937 = vmatpush.bf16.msra.mxu0 %v3630_v33  ;;  %v3723_v33 = vld [vmem:[#allocation2 + $0x518] sm:$0xf0]  ;;  %v3598_v55 = vor.u32 %v4226_v13, %v3595_v24  ;;  %v4348_v37 = vld [vmem:[#allocation2 + $0x7e4] sm:$0xf]  ;;  %v4298_v20 = vld [vmem:[#allocation2 + $0x654] sm:$0xf] }
 0x19e   :  { %2950 = vmatpush.bf16.msra.mxu1 %v3694_v2  ;;  %v4274_v2 = vld [vmem:[#allocation2 + $0x594] sm:$0xf]  ;;  %v3726_v10 = vor.u32 %v4258_v60, %v3723_v33  ;;  %v4086_v13 = vor.u32 %v4348_v37, %v4083_v58  ;;  %v3947_v24 = vld [vmem:[#allocation2 + $0x6d8] sm:$0xf0]  ;;  %v3987_v8 = vld [vmem:[#allocation2 + $0x728] sm:$0xf0] }
 0x19f   :  { %2963 = vmatpush.bf16.msra.mxu2 %v3758_v28  ;;  %v3787_v28 = vld [vmem:[#allocation2 + $0x598] sm:$0xf0]  ;;  %v4294_v3 = vld [vmem:[#allocation2 + $0x634] sm:$0xf]  ;;  %v4051_v29 = vld [vmem:[#allocation2 + $0x7a8] sm:$0xf0] }
 0x1a0   :  { %2976 = vmatpush.bf16.msra.mxu3 %v3822_v15  ;;  %v3662_v15 = vor.u32 %v4242_v17, %v3659_v19  ;;  %v4330_v17 = vld [vmem:[#allocation2 + $0x754] sm:$0xf]  ;;  %v4075_v19 = vld [vmem:[#allocation2 + $0x7d8] sm:$0xf0] }
 0x1a1   :  { %2938 = vmatpush.bf16.msra.mxu0 %v3622_v42  ;;  %v2712_v39 = vpop.f32.mrf.mxu2  ;;  %v3790_v42 = vor.u32 %v4274_v2, %v3787_v28  ;;  %v4014_v2 = vor.u32 %v4330_v17, %v4011_v12  ;;  %v4296_v28 = vld [vmem:[#allocation2 + $0x644] sm:$0xf]  ;;  %v3979_v17 = vld [vmem:[#allocation2 + $0x718] sm:$0xf0]  ;;  %v4338_v12 = vld [vmem:[#allocation2 + $0x794] sm:$0xf] }
 0x1a2   :  { %2951 = vmatpush.bf16.msra.mxu1 %v3686_v52  ;;  %v4272_v52 = vld [vmem:[#allocation2 + $0x584] sm:$0xf]  ;;  %v2725_v22 = vpop.f32.mrf.mxu3 }
 0x1a3   :  { %2964 = vmatpush.bf16.msra.mxu2 %v3750_v18  ;;  %v3779_v18 = vld [vmem:[#allocation2 + $0x588] sm:$0xf0] }
 0x1a4   :  { %2977 = vmatpush.bf16.msra.mxu3 %v3814_v48  ;;  %v3963_v48 = vld [vmem:[#allocation2 + $0x6f8] sm:$0xf0] }
 0x1a5   :  { %2939 = vmatpush.bf16.msra.mxu0 %v3614_v0  ;;  %v3782_v0 = vor.u32 %v4272_v52, %v3779_v18  ;;  %v3867_v52 = vld [vmem:[#allocation2 + $0x638] sm:$0xf0]  ;;  %v4310_v18 = vld [vmem:[#allocation2 + $0x6b4] sm:$0xf] }
 0x1a6   :  { %2952 = vmatpush.bf16.msra.mxu1 %v3678_v61  ;;  %v3902_v61 = vor.u32 %v4302_v56, %v3899_v31  ;;  %v3931_v31 = vld [vmem:[#allocation2 + $0x6b8] sm:$0xf0]  ;;  %v3870_v26 = vor.u32 %v4294_v3, %v3867_v52 }
 0x1a7   :  { %2965 = vmatpush.bf16.msra.mxu2 %v3742_v38  ;;  %v3966_v38 = vor.u32 %v4318_v23, %v3963_v48  ;;  %v4326_v23 = vld [vmem:[#allocation2 + $0x734] sm:$0xf] }
 0x1a8   :  { %2978 = vmatpush.bf16.msra.mxu3 %v3806_v47  ;;  %v4094_v47 = vor.u32 %v4350_v7, %v4091_v50  ;;  %v4342_v48 = vld [vmem:[#allocation2 + $0x7b4] sm:$0xf]  ;;  %v3859_v7 = vld [vmem:[#allocation2 + $0x628] sm:$0xf0]  ;;  %v4308_v50 = vld [vmem:[#allocation2 + $0x6a4] sm:$0xf] }
 0x1a9   :  { %2940 = vmatpush.bf16.msra.mxu0 %v3606_v5  ;;  %v4022_v5 = vor.u32 %v4332_v1, %v4019_v43 }
 0x1aa   :  { %2953 = vmatpush.bf16.msra.mxu1 %v3670_v53  ;;  %v3883_v53 = vld [vmem:[#allocation2 + $0x658] sm:$0xf0] }
 0x1ab   :  { %2966 = vmatpush.bf16.msra.mxu2 %v3734_v45  ;;  %v4314_v45 = vld [vmem:[#allocation2 + $0x6d4] sm:$0xf]  ;;  %v3886_v60 = vor.u32 %v4298_v20, %v3883_v53  ;;  %v3851_v20 = vld [vmem:[#allocation2 + $0x618] sm:$0xf0] }
 0x1ac   :  { %2979 = vmatpush.bf16.msra.mxu3 %v3798_v57  ;;  %v4346_v57 = vld [vmem:[#allocation2 + $0x7d4] sm:$0xf]  ;;  %v3950_v33 = vor.u32 %v4314_v45, %v3947_v24 }
 0x1ad   :  { %2941 = vmatpush.bf16.msra.mxu0 %v3598_v55  ;;  %v4312_v55 = vld [vmem:[#allocation2 + $0x6c4] sm:$0xf]  ;;  %v4078_v4 = vor.u32 %v4346_v57, %v4075_v19  ;;  %v4306_v53 = vld [vmem:[#allocation2 + $0x694] sm:$0xf]  ;;  %v4043_v57 = vld [vmem:[#allocation2 + $0x798] sm:$0xf0] }
 0x1ae   :  { %2954 = vmatpush.bf16.msra.mxu1 %v3662_v15  ;;  %v4328_v15 = vld [vmem:[#allocation2 + $0x744] sm:$0xf]  ;;  %v3942_v39 = vor.u32 %v4312_v55, %v3939_v40  ;;  %v4322_v24 = vld [vmem:[#allocation2 + $0x714] sm:$0xf]  ;;  %v4046_v55 = vor.u32 %v4338_v12, %v4043_v57 }
 0x1af   :  { %2967 = vmatpush.bf16.msra.mxu2 %v3726_v10  ;;  %v4320_v40 = vld [vmem:[#allocation2 + $0x704] sm:$0xf] }
 0x1b0   :  { %2980 = vmatpush.bf16.msra.mxu3 %v3790_v42 }
 0x1b1   :  { %2942 = vmatpush.bf16.msra.mxu0 %v3590_v59  ;;  %v2736_v10 = vpop.f32.mrf.mxu0  ;;  %v3995_v59 = vld [vmem:[#allocation2 + $0x738] sm:$0xf0] }
 0x1b2   :  { %2955 = vmatpush.bf16.msra.mxu1 %v3654_v63  ;;  %v2749_v44 = vpop.f32.mrf.mxu1  ;;  %v3998_v63 = vor.u32 %v4326_v23, %v3995_v59  ;;  %v1340_v59 = vperm.slane %v5646_v32, 1 }
 0x1b3   :  { %2968 = vmatpush.bf16.msra.mxu2 %v3718_v49  ;;  %v4292_v49 = vld [vmem:[#allocation2 + $0x624] sm:$0xf] }
 0x1b4   :  { %2981 = vmatpush.bf16.msra.mxu3 %v3782_v0  ;;  %2943 = vmatmul.bf16.vlgmr.msra.gmra.mxu0 %v5615_v11  ;;  %v3875_v11 = vld [vmem:[#allocation2 + $0x648] sm:$0xf0]  ;;  %v4062_v0 = vor.u32 %v4342_v48, %v4059_v62  ;;  %v3862_v43 = vor.u32 %v4292_v49, %v3859_v7 }
 0x1b5   :  { %2987 = vmatpush.bf16.msrb.mxu0 %v3902_v61  ;;  %2956 = vmatmul.bf16.vlgmr.msra.gmra.mxu1 %v5619_v30  ;;  %v4344_v30 = vld [vmem:[#allocation2 + $0x7c4] sm:$0xf]  ;;  %v3878_v27 = vor.u32 %v4296_v28, %v3875_v11  ;;  %v3843_v28 = vld [vmem:[#allocation2 + $0x608] sm:$0xf0] }
 0x1b6   :  { %3000 = vmatpush.bf16.msrb.mxu1 %v3966_v38  ;;  %2969 = vmatmul.bf16.vlgmr.msra.gmra.mxu2 %v5617_v6  ;;  %v4003_v6 = vld [vmem:[#allocation2 + $0x748] sm:$0xf0]  ;;  %v4070_v22 = vor.u32 %v4344_v30, %v4067_v21  ;;  %v4304_v11 = vld [vmem:[#allocation2 + $0x684] sm:$0xf] }
 0x1b7   :  { %3013 = vmatpush.bf16.msrb.mxu2 %v4030_v51  ;;  %2982 = vmatmul.bf16.vlgmr.msra.gmra.mxu3 %v5621_v9  ;;  %v2737_v9 = vadd.f32 %v2736_v10, %v5656_v16  ;;  %v4006_v42 = vor.u32 %v4328_v15, %v4003_v6  ;;  %v3934_v16 = vor.u32 %v4310_v18, %v3931_v31  ;;  %v3923_v38 = vld [vmem:[#allocation2 + $0x6a8] sm:$0xf0]  ;;  %v4324_v51 = vld [vmem:[#allocation2 + $0x724] sm:$0xf] }
 0x1b8   :  { %3026 = vmatpush.bf16.msrb.mxu3 %v4094_v47  ;;  %v4340_v47 = vld [vmem:[#allocation2 + $0x7a4] sm:$0xf]  ;;  %v3971_v15 = vld [vmem:[#allocation2 + $0x708] sm:$0xf0] }
 0x1b9   :  { %2988 = vmatpush.bf16.msrb.mxu0 %v3894_v46  ;;  %v2750_v56 = vadd.f32 %v2749_v44, %v2737_v9  ;;  %v2762_v61 = vpop.f32.mrf.mxu2  ;;  %v2738_v1 = vpop.f32.mrf.mxu0  ;;  %v3926_v46 = vor.u32 %v4308_v50, %v3923_v38  ;;  %v4054_v45 = vor.u32 %v4340_v47, %v4051_v29  ;;  %v4336_v10 = vld [vmem:[#allocation2 + $0x784] sm:$0xf]  ;;  %v4035_v30 = vld [vmem:[#allocation2 + $0x788] sm:$0xf0]  ;;  %v3974_v44 = vor.u32 %v4320_v40, %v3971_v15 }
 0x1ba   :  { %3001 = vmatpush.bf16.msrb.mxu1 %v3958_v41  ;;  %v2775_v34 = vpop.f32.mrf.mxu3  ;;  %v2751_v37 = vpop.f32.mrf.mxu1  ;;  %v3990_v41 = vor.u32 %v4324_v51, %v3987_v8 }
 0x1bb   :  { %3014 = vmatpush.bf16.msrb.mxu2 %v4022_v5  ;;  %v2763_v14 = vadd.f32 %v2762_v61, %v2750_v56  ;;  %v4290_v5 = vld [vmem:[#allocation2 + $0x614] sm:$0xf] }
 0x1bc   :  { %3027 = vmatpush.bf16.msrb.mxu3 %v4086_v13  ;;  %v3915_v13 = vld [vmem:[#allocation2 + $0x698] sm:$0xf0]  ;;  %v3854_v19 = vor.u32 %v4290_v5, %v3851_v20 }
 0x1bd   :  { %2989 = vmatpush.bf16.msrb.mxu0 %v3886_v60  ;;  %v2776_v58 = vadd.f32 %v2775_v34, %v2763_v14  ;;  %v3918_v60 = vor.u32 %v4306_v53, %v3915_v13 }
 0x1be   :  { %3002 = vmatpush.bf16.msrb.mxu1 %v3950_v33  ;;  %v3982_v33 = vor.u32 %v4322_v24, %v3979_v17 }
 0x1bf   :  { %3015 = vmatpush.bf16.msrb.mxu2 %v4014_v2  ;;  %v4288_v2 = vld [vmem:[#allocation2 + $0x604] sm:$0xf] }
 0x1c0   :  { %3028 = vmatpush.bf16.msrb.mxu3 %v4078_v4  ;;  %v3907_v4 = vld [vmem:[#allocation2 + $0x688] sm:$0xf0]  ;;  %v3846_v9 = vor.u32 %v4288_v2, %v3843_v28 }
 0x1c1   :  { %2990 = vmatpush.bf16.msrb.mxu0 %v3878_v27  ;;  %v2764_v6 = vpop.f32.mrf.mxu2  ;;  %v3910_v27 = vor.u32 %v4304_v11, %v3907_v4 }
 0x1c2   :  { %3003 = vmatpush.bf16.msrb.mxu1 %v3942_v39  ;;  %v2777_v21 = vpop.f32.mrf.mxu3  ;;  %v4038_v39 = vor.u32 %v4336_v10, %v4035_v30 }
 0x1c3   :  { %3016 = vmatpush.bf16.msrb.mxu2 %v4006_v42 }
 0x1c4   :  { %3029 = vmatpush.bf16.msrb.mxu3 %v4070_v22 }
 0x1c5   :  { %2991 = vmatpush.bf16.msrb.mxu0 %v3870_v26 }
 0x1c6   :  { %3004 = vmatpush.bf16.msrb.mxu1 %v3934_v16 }
 0x1c7   :  { %3017 = vmatpush.bf16.msrb.mxu2 %v3998_v63 }
 0x1c8   :  { %3030 = vmatpush.bf16.msrb.mxu3 %v4062_v0 }
 0x1c9   :  { %2992 = vmatpush.bf16.msrb.mxu0 %v3862_v43 }
 0x1ca   :  { %3005 = vmatpush.bf16.msrb.mxu1 %v3926_v46 }
 0x1cb   :  { %3018 = vmatpush.bf16.msrb.mxu2 %v3990_v41 }
 0x1cc   :  { %3031 = vmatpush.bf16.msrb.mxu3 %v4054_v45 }
 0x1cd   :  { %2993 = vmatpush.bf16.msrb.mxu0 %v3854_v19 }
 0x1ce   :  { %3006 = vmatpush.bf16.msrb.mxu1 %v3918_v60 }
 0x1cf   :  { %3019 = vmatpush.bf16.msrb.mxu2 %v3982_v33 }
 0x1d0   :  { %3032 = vmatpush.bf16.msrb.mxu3 %v4046_v55 }
 0x1d1   :  { %2994 = vmatpush.bf16.msrb.mxu0 %v3846_v9  ;;  %v2788_v42 = vpop.f32.mrf.mxu0 }
 0x1d2   :  { %3007 = vmatpush.bf16.msrb.mxu1 %v3910_v27  ;;  %v2789_v3 = vadd.f32 %v2788_v42, %v2776_v58  ;;  %v2801_v52 = vpop.f32.mrf.mxu1 }
 0x1d3   :  { %3020 = vmatpush.bf16.msrb.mxu2 %v3974_v44 }
 0x1d4   :  { %3033 = vmatpush.bf16.msrb.mxu3 %v4038_v39  ;;  %2995 = vmatmul.bf16.vlgmr.msrb.gmra.mxu0 %v5627_v54  ;;  %v2802_v18 = vadd.f32 %v2801_v52, %v2789_v3 }
 0x1d5   :  { %3008 = vmatmul.bf16.vlgmr.msrb.gmra.mxu1 %v5631_v35 }
 0x1d6   :  { %3021 = vmatmul.bf16.vlgmr.msrb.gmra.mxu2 %v5629_v36 }
 0x1d7   :  { %3034 = vmatmul.bf16.vlgmr.msrb.gmra.mxu3 %v5633_v25 }
 0x1d9   :  { %v2814_v22 = vpop.f32.mrf.mxu2  ;;  %v2790_v56 = vpop.f32.mrf.mxu0 }
 0x1da   :  { %v2815_v54 = vadd.f32 %v2814_v22, %v2802_v18  ;;  %v2827_v35 = vpop.f32.mrf.mxu3  ;;  %v2803_v36 = vpop.f32.mrf.mxu1 }
 0x1dc   :  { %v2828_v31 = vadd.f32 %v2827_v35, %v2815_v54 }
 0x1e1   :  { %v2816_v25 = vpop.f32.mrf.mxu2 }
 0x1e2   :  { %v2829_v23 = vpop.f32.mrf.mxu3 }
 0x1f1   :  { %v2840_v48 = vpop.f32.mrf.mxu0 }
 0x1f2   :  { %v2841_v62 = vadd.f32 %v2840_v48, %v1340_v59  ;;  %v2853_v26 = vpop.f32.mrf.mxu1 }
 0x1f4   :  { %v2854_v16 = vadd.f32 %v2853_v26, %v2841_v62 }
 0x1f9   :  { %v2866_v63 = vpop.f32.mrf.mxu2  ;;  %v2842_v0 = vpop.f32.mrf.mxu0 }
 0x1fa   :  { %v2867_v49 = vadd.f32 %v2866_v63, %v2854_v16  ;;  %v2879_v7 = vpop.f32.mrf.mxu3  ;;  %v2855_v61 = vpop.f32.mrf.mxu1 }
 0x1fc   :  { %v2880_v50 = vadd.f32 %v2879_v7, %v2867_v49 }
 0x201   :  { %v2868_v38 = vpop.f32.mrf.mxu2 }
 0x202   :  { %v2881_v51 = vpop.f32.mrf.mxu3 }
 0x211   :  { %v2892_v8 = vpop.f32.mrf.mxu0 }
 0x212   :  { %v2905_v14 = vpop.f32.mrf.mxu1  ;;  %v2893_v46 = vadd.f32 %v2892_v8, %v2880_v50 }
 0x214   :  { %v2906_v53 = vadd.f32 %v2905_v14, %v2893_v46 }
 0x219   :  { %v2918_v34 = vpop.f32.mrf.mxu2  ;;  %v2894_v29 = vpop.f32.mrf.mxu0 }
 0x21a   :  { %v2931_v47 = vpop.f32.mrf.mxu3  ;;  %v2907_v1 = vpop.f32.mrf.mxu1  ;;  %v2919_v13 = vadd.f32 %v2918_v34, %v2906_v53 }
 0x21c   :  { %v2932_v12 = vadd.f32 %v2931_v47, %v2919_v13 }
 0x221   :  { %v2920_v43 = vpop.f32.mrf.mxu2 }
 0x222   :  { %v2933_v32 = vpop.f32.mrf.mxu3 }
 0x231   :  { %v2944_v37 = vpop.f32.mrf.mxu0 }
 0x232   :  { %v2957_v58 = vpop.f32.mrf.mxu1  ;;  %v2945_v57 = vadd.f32 %v2944_v37, %v2932_v12 }
 0x234   :  { %v2958_v19 = vadd.f32 %v2957_v58, %v2945_v57 }
 0x239   :  { %v2970_v41 = vpop.f32.mrf.mxu2  ;;  %v2946_v20 = vpop.f32.mrf.mxu0 }
 0x23a   :  { %v2983_v5 = vpop.f32.mrf.mxu3  ;;  %v2959_v45 = vpop.f32.mrf.mxu1  ;;  %v2971_v60 = vadd.f32 %v2970_v41, %v2958_v19 }
 0x23c   :  { %v2984_v33 = vadd.f32 %v2983_v5, %v2971_v60 }
 0x241   :  { %v2972_v24 = vpop.f32.mrf.mxu2 }
 0x242   :  { %v2985_v17 = vpop.f32.mrf.mxu3 }
 0x251   :  { %v2996_v2 = vpop.f32.mrf.mxu0 }
 0x252   :  { %v3009_v28 = vpop.f32.mrf.mxu1  ;;  %v2997_v11 = vadd.f32 %v2996_v2, %v2984_v33 }
 0x254   :  { %v3010_v55 = vadd.f32 %v3009_v28, %v2997_v11 }
 0x259   :  { %v3022_v4 = vpop.f32.mrf.mxu2  ;;  %v2998_v6 = vpop.f32.mrf.mxu0 }
 0x25a   :  { %v3023_v40 = vadd.f32 %v3022_v4, %v3010_v55  ;;  %v3035_v15 = vpop.f32.mrf.mxu3  ;;  %v3011_v10 = vpop.f32.mrf.mxu1 }
 0x25c   :  { %v3036_v30 = vadd.f32 %v3035_v15, %v3023_v40 }
 0x25e   :  { %v3041_v21 = vrot.slane %v3036_v30, 6 }
 0x260   :  { %v3042_v9 = vsel %vm726_vm2, %v2828_v31, %v3041_v21 }
 0x261   :  { %3044 = vst [vmem:[%s5681_s6] sm:$0xf] %v3042_v9  ;;  %v3024_v27 = vpop.f32.mrf.mxu2 }
 0x262   :  { %v3037_v44 = vpop.f32.mrf.mxu3 }
 0x263   :  { %4436 = dma.done.wait [#allocation5], 512  }
 0x264   :  { %4437 = vsyncadd [#allocation5], 4294966784 }
 0x265   :  { %3064 = vsyncpa [#allocation5], 1 }
 0x266   :  { %3065 = vsyncmov [#allocation3] }
 0x269   :  { %s3066_s21 = vpop.sfrf %3065 }
 0x26a   :  { %p4095_p0 = scmp.ne.s32.totalorder %s3066_s21, 0 }
 0x26c   :  { %3070 = shalt.err (%p4095_p0)  }

</bundles_post_ra>
